<compile_context>
chip_gen: v7x
topology: tpu7x:2x2x1
jax: 0.10.0
libtpu: 0.0.40
codegen_flags: <defaults>
</compile_context>

<pallas_src>
import functools

import jax
import jax.numpy as jnp
import numpy as np
from jax.experimental import pallas as pl
from jax.experimental.pallas import tpu as pltpu

LANE = 128
SUBLANE = 8


def _round_up(x, m):
    return ((x + m - 1) // m) * m


def _pad_axis(arr, axis, target):
    pad = target - arr.shape[axis]
    if pad == 0:
        return arr
    widths = [(0, 0)] * arr.ndim
    widths[axis] = (0, pad)
    return jnp.pad(arr, widths)


# ----------------------------------------------------------------------------
# Fused Pallas kernel: full forward pass for one batch tile
# ----------------------------------------------------------------------------
def _fused_forward_kernel(
    x1_ref, x2_ref,
    e1w0, e1b0, e1w1, e1b1,
    e2w0, e2b0, e2w1, e2b1,
    sw0a, sw0b, sb0, sw1, sb1, sw2, sb2, sw3, sb3,
    d1w0, d1b0, d1w1, d1b1,
    d2w0, d2b0, d2w1, d2b1,
    out1_ref, out2_ref,
):
    f32 = jnp.float32

    def dense(x, w_ref, b_ref, relu=True):
        # MXU matmul with f32 accumulation; f32 bias/ReLU epilogue (v5e-safe).
        y = jnp.dot(x, w_ref[...], preferred_element_type=f32) + b_ref[...]
        if relu:
            y = jnp.maximum(y, 0.0)
        return y

    x1 = x1_ref[...]
    x2 = x2_ref[...]

    # Channel encoders: Linear->ReLU->Linear->ReLU           (TB, 128) each
    h1 = dense(dense(x1, e1w0, e1b0), e1w1, e1b1)
    h2 = dense(dense(x2, e2w0, e2b0), e2w1, e2b1)

    # Shared autoencoder. First layer folds the concat:
    #   cat([h1, h2]) @ W0 == h1 @ W0[:128] + h2 @ W0[128:]
    s = jnp.dot(h1, sw0a[...], preferred_element_type=f32)
    s = s + jnp.dot(h2, sw0b[...], preferred_element_type=f32)
    s = jnp.maximum(s + sb0[...], 0.0)                       # (TB, 128)
    s = dense(s, sw1, sb1)                                   # (TB, 128)  (64 padded)
    s = dense(s, sw2, sb2)                                   # (TB, 128)
    s = dense(s, sw3, sb3)                                   # (TB, 256)

    # Decoders: Linear->ReLU->Linear (no final ReLU), lane-padded output width.
    out1_ref[...] = dense(dense(s, d1w0, d1b0), d1w1, d1b1,
                          relu=False).astype(out1_ref.dtype)
    out2_ref[...] = dense(dense(s, d2w0, d2b0), d2w1, d2b1,
                          relu=False).astype(out2_ref.dtype)


# ----------------------------------------------------------------------------
# Parameter construction (deterministic, PyTorch-style uniform init)
# Weights are stored (in_features, out_features): y = x @ W + b.
# ----------------------------------------------------------------------------
def _init_linear(key, fan_in, fan_out, dtype=jnp.float32):
    kw, kb = jax.random.split(key)
    bound = 1.0 / (fan_in ** 0.5)
    w = jax.random.uniform(kw, (fan_in, fan_out), dtype, -bound, bound)
    b = jax.random.uniform(kb, (1, fan_out), dtype, -bound, bound)
    return w, b


def init_params(key, input_size):
    specs = {
        "channel1_encoder": [(input_size, 256), (256, 128)],
        "channel2_encoder": [(input_size, 256), (256, 128)],
        "shared_autoencoder": [(256, 128), (128, 64), (64, 128), (128, 256)],
        "channel1_decoder": [(256, 128), (128, input_size)],
        "channel2_decoder": [(256, 128), (128, input_size)],
    }
    params = {}
    for name, layer_dims in specs.items():
        layers = []
        for fan_in, fan_out in layer_dims:
            key, sub = jax.random.split(key)
            layers.append(_init_linear(sub, fan_in, fan_out))
        params[name] = layers
    return params


def prepare_params(params, input_size, weight_dtype=jnp.float32):
    """Lane-align / split weights once, ahead of time. All padding is with
    zeros, so the padded network is numerically identical to the original."""
    f_pad = _round_up(input_size, LANE)

    (e1w0, e1b0), (e1w1, e1b1) = params["channel1_encoder"]
    (e2w0, e2b0), (e2w1, e2b1) = params["channel2_encoder"]
    (sw0, sb0), (sw1, sb1), (sw2, sb2), (sw3, sb3) = params["shared_autoencoder"]
    (d1w0, d1b0), (d1w1, d1b1) = params["channel1_decoder"]
    (d2w0, d2b0), (d2w1, d2b1) = params["channel2_decoder"]

    # Lane-align the input feature dim (zero weight rows -> exact).
    e1w0 = _pad_axis(e1w0, 0, f_pad)
    e2w0 = _pad_axis(e2w0, 0, f_pad)

    # Fold the concat: split the first shared weight into the two halves.
    sw0a, sw0b = sw0[:128, :], sw0[128:, :]

    # Lane-align the 64-wide bottleneck (zero cols + zero bias + zero rows).
    sw1 = _pad_axis(sw1, 1, LANE)
    sb1 = _pad_axis(sb1, 1, LANE)
    sw2 = _pad_axis(sw2, 0, LANE)

    # Lane-align the output feature dim (zero cols + zero bias -> exact,
    # padded output columns are sliced off in the wrapper).
    d1w1 = _pad_axis(d1w1, 1, f_pad)
    d1b1 = _pad_axis(d1b1, 1, f_pad)
    d2w1 = _pad_axis(d2w1, 1, f_pad)
    d2b1 = _pad_axis(d2b1, 1, f_pad)

    flat = [e1w0, e1b0, e1w1, e1b1,
            e2w0, e2b0, e2w1, e2b1,
            sw0a, sw0b, sb0, sw1, sb1, sw2, sb2, sw3, sb3,
            d1w0, d1b0, d1w1, d1b1,
            d2w0, d2b0, d2w1, d2b1]

    # Optionally store weights in bf16 (halves weight DMA on v6e/v7x); biases
    # stay f32 so the epilogue is pure f32.  Default f32 = exact parity.
    def cast(a):
        return a.astype(weight_dtype) if a.shape[0] > 1 else a

    return tuple(cast(a) for a in flat)


# ----------------------------------------------------------------------------
# Forward pass (single fused pallas_call, batch-tiled grid)
# ----------------------------------------------------------------------------
@functools.partial(jax.jit, static_argnames=("input_size", "block_batch"))
def diagonal_integration_net_forward(flat_params, x1, x2, *,
                                     input_size, block_batch=256):
    f_pad = _round_up(input_size, LANE)
    B = x1.shape[0]
    assert x1.shape == (B, input_size) and x2.shape == (B, input_size)

    # Batch tile: multiple of 8 sublanes; pad the batch so it divides evenly.
    tb = min(block_batch, _round_up(B, SUBLANE))
    tb = _round_up(tb, SUBLANE)
    b_pad = _round_up(B, tb)

    x1p = _pad_axis(_pad_axis(x1, 1, f_pad), 0, b_pad)
    x2p = _pad_axis(_pad_axis(x2, 1, f_pad), 0, b_pad)

    grid = (b_pad // tb,)

    x_spec = pl.BlockSpec((tb, f_pad), lambda i: (i, 0))
    out_spec = pl.BlockSpec((tb, f_pad), lambda i: (i, 0))
    # Weights/biases: full-array blocks with a constant index_map, so they are
    # copied to VMEM once and stay resident across all batch tiles.
    w_specs = [pl.BlockSpec(p.shape, lambda i: (0, 0)) for p in flat_params]

    out_shape = (jax.ShapeDtypeStruct((b_pad, f_pad), x1.dtype),
                 jax.ShapeDtypeStruct((b_pad, f_pad), x2.dtype))

    d1p, d2p = pl.pallas_call(
        _fused_forward_kernel,
        out_shape=out_shape,
        grid=grid,
        in_specs=[x_spec, x_spec] + w_specs,
        out_specs=(out_spec, out_spec),
        compiler_params=pltpu.CompilerParams(
            # Batch tiles are independent -> megacore sharding on v7x.
            dimension_semantics=("parallel",),
            # Explicit VMEM budget: weights (~8 MB at input_size=2438) +
            # double-buffered 256-row I/O tiles fit comfortably under 48 MiB,
            # which is safe on v7x's 64 MiB as well as v5e/v6e's 128 MiB.
            vmem_limit_bytes=48 * 1024 * 1024,
        ),
    )(x1p, x2p, *flat_params)

    return d1p[:B, :input_size], d2p[:B, :input_size]


# ----------------------------------------------------------------------------
# Pure-JAX reference (mirrors DiagonalIntegrationNet.forward)
# ----------------------------------------------------------------------------
def _reference_forward(params, x1, x2):
    def mlp(layers, x, relus):
        for (w, b), r in zip(layers, relus):
            x = x @ w + b
            if r:
                x = jnp.maximum(x, 0.0)
        return x

    e1 = mlp(params["channel1_encoder"], x1, [True, True])
    e2 = mlp(params["channel2_encoder"], x2, [True, True])
    combined = jnp.concatenate([e1, e2], axis=1)
    s = mlp(params["shared_autoencoder"], combined, [True, True, True, True])
    d1 = mlp(params["channel1_decoder"], s, [True, False])
    d2 = mlp(params["channel2_decoder"], s, [True, False])
    return d1, d2


# ----------------------------------------------------------------------------
# Demo
# ----------------------------------------------------------------------------
if __name__ == "__main__":
    # Small shapes consistent with the module (real model uses input_size=2438).
    # 300 is deliberately not lane-aligned and 12 not tile-aligned, to exercise
    # the zero-padding paths.
    INPUT_SIZE = 300
    BATCH = 12

    key = jax.random.PRNGKey(0)
    k_params, k_x1, k_x2 = jax.random.split(key, 3)

    params = init_params(k_params, INPUT_SIZE)
    flat_params = prepare_params(params, INPUT_SIZE, weight_dtype=jnp.float32)

    x1 = jax.random.normal(k_x1, (BATCH, INPUT_SIZE), jnp.float32)
    x2 = jax.random.normal(k_x2, (BATCH, INPUT_SIZE), jnp.float32)

    decoded1, decoded2 = diagonal_integration_net_forward(
        flat_params, x1, x2, input_size=INPUT_SIZE)
    jax.block_until_ready((decoded1, decoded2))

    assert decoded1.shape == (BATCH, INPUT_SIZE)
    assert decoded2.shape == (BATCH, INPUT_SIZE)

    ref1, ref2 = _reference_forward(params, x1, x2)
    np.testing.assert_allclose(np.asarray(decoded1), np.asarray(ref1),
                               rtol=5e-3, atol=5e-3)
    np.testing.assert_allclose(np.asarray(decoded2), np.asarray(ref2),
                               rtol=5e-3, atol=5e-3)

    print("KERNEL_OK")
</pallas_src>

<mosaic_0001>
module attributes {stable_mosaic.version = 11 : i64} {
  func.func @_fused_forward_kernel(%arg0: i32, %arg1: memref<16x384xf32, #tpu.memory_space<vmem>>, %arg2: memref<16x384xf32, #tpu.memory_space<vmem>>, %arg3: memref<384x256xf32, #tpu.memory_space<vmem>>, %arg4: memref<1x256xf32, #tpu.memory_space<vmem>>, %arg5: memref<256x128xf32, #tpu.memory_space<vmem>>, %arg6: memref<1x128xf32, #tpu.memory_space<vmem>>, %arg7: memref<384x256xf32, #tpu.memory_space<vmem>>, %arg8: memref<1x256xf32, #tpu.memory_space<vmem>>, %arg9: memref<256x128xf32, #tpu.memory_space<vmem>>, %arg10: memref<1x128xf32, #tpu.memory_space<vmem>>, %arg11: memref<128x128xf32, #tpu.memory_space<vmem>>, %arg12: memref<128x128xf32, #tpu.memory_space<vmem>>, %arg13: memref<1x128xf32, #tpu.memory_space<vmem>>, %arg14: memref<128x128xf32, #tpu.memory_space<vmem>>, %arg15: memref<1x128xf32, #tpu.memory_space<vmem>>, %arg16: memref<128x128xf32, #tpu.memory_space<vmem>>, %arg17: memref<1x128xf32, #tpu.memory_space<vmem>>, %arg18: memref<128x256xf32, #tpu.memory_space<vmem>>, %arg19: memref<1x256xf32, #tpu.memory_space<vmem>>, %arg20: memref<256x128xf32, #tpu.memory_space<vmem>>, %arg21: memref<1x128xf32, #tpu.memory_space<vmem>>, %arg22: memref<128x384xf32, #tpu.memory_space<vmem>>, %arg23: memref<1x384xf32, #tpu.memory_space<vmem>>, %arg24: memref<256x128xf32, #tpu.memory_space<vmem>>, %arg25: memref<1x128xf32, #tpu.memory_space<vmem>>, %arg26: memref<128x384xf32, #tpu.memory_space<vmem>>, %arg27: memref<1x384xf32, #tpu.memory_space<vmem>>, %arg28: memref<16x384xf32, #tpu.memory_space<vmem>>, %arg29: memref<16x384xf32, #tpu.memory_space<vmem>>) attributes {dimension_semantics = [#tpu.dimension_semantics<parallel>], iteration_bounds = array<i64: 1>, scalar_prefetch = 0 : i64, scratch_operands = 0 : i64, tpu.core_type = #tpu.core_type<tc>, window_params = [{transform_indices = @transform_0, window_bounds = array<i64: 16, 384>}, {transform_indices = @transform_1, window_bounds = array<i64: 16, 384>}, {pipeline_mode = #tpu.pipeline_mode<synchronous>, transform_indices = @transform_2, window_bounds = array<i64: 384, 256>}, {pipeline_mode = #tpu.pipeline_mode<synchronous>, transform_indices = @transform_3, window_bounds = array<i64: 1, 256>}, {pipeline_mode = #tpu.pipeline_mode<synchronous>, transform_indices = @transform_4, window_bounds = array<i64: 256, 128>}, {pipeline_mode = #tpu.pipeline_mode<synchronous>, transform_indices = @transform_5, window_bounds = array<i64: 1, 128>}, {pipeline_mode = #tpu.pipeline_mode<synchronous>, transform_indices = @transform_6, window_bounds = array<i64: 384, 256>}, {pipeline_mode = #tpu.pipeline_mode<synchronous>, transform_indices = @transform_7, window_bounds = array<i64: 1, 256>}, {pipeline_mode = #tpu.pipeline_mode<synchronous>, transform_indices = @transform_8, window_bounds = array<i64: 256, 128>}, {pipeline_mode = #tpu.pipeline_mode<synchronous>, transform_indices = @transform_9, window_bounds = array<i64: 1, 128>}, {pipeline_mode = #tpu.pipeline_mode<synchronous>, transform_indices = @transform_10, window_bounds = array<i64: 128, 128>}, {pipeline_mode = #tpu.pipeline_mode<synchronous>, transform_indices = @transform_11, window_bounds = array<i64: 128, 128>}, {pipeline_mode = #tpu.pipeline_mode<synchronous>, transform_indices = @transform_12, window_bounds = array<i64: 1, 128>}, {pipeline_mode = #tpu.pipeline_mode<synchronous>, transform_indices = @transform_13, window_bounds = array<i64: 128, 128>}, {pipeline_mode = #tpu.pipeline_mode<synchronous>, transform_indices = @transform_14, window_bounds = array<i64: 1, 128>}, {pipeline_mode = #tpu.pipeline_mode<synchronous>, transform_indices = @transform_15, window_bounds = array<i64: 128, 128>}, {pipeline_mode = #tpu.pipeline_mode<synchronous>, transform_indices = @transform_16, window_bounds = array<i64: 1, 128>}, {pipeline_mode = #tpu.pipeline_mode<synchronous>, transform_indices = @transform_17, window_bounds = array<i64: 128, 256>}, {pipeline_mode = #tpu.pipeline_mode<synchronous>, transform_indices = @transform_18, window_bounds = array<i64: 1, 256>}, {pipeline_mode = #tpu.pipeline_mode<synchronous>, transform_indices = @transform_19, window_bounds = array<i64: 256, 128>}, {pipeline_mode = #tpu.pipeline_mode<synchronous>, transform_indices = @transform_20, window_bounds = array<i64: 1, 128>}, {pipeline_mode = #tpu.pipeline_mode<synchronous>, transform_indices = @transform_21, window_bounds = array<i64: 128, 384>}, {pipeline_mode = #tpu.pipeline_mode<synchronous>, transform_indices = @transform_22, window_bounds = array<i64: 1, 384>}, {pipeline_mode = #tpu.pipeline_mode<synchronous>, transform_indices = @transform_23, window_bounds = array<i64: 256, 128>}, {pipeline_mode = #tpu.pipeline_mode<synchronous>, transform_indices = @transform_24, window_bounds = array<i64: 1, 128>}, {pipeline_mode = #tpu.pipeline_mode<synchronous>, transform_indices = @transform_25, window_bounds = array<i64: 128, 384>}, {pipeline_mode = #tpu.pipeline_mode<synchronous>, transform_indices = @transform_26, window_bounds = array<i64: 1, 384>}, {transform_indices = @transform_27, window_bounds = array<i64: 16, 384>}, {transform_indices = @transform_28, window_bounds = array<i64: 16, 384>}]} {
    %c0 = arith.constant 0 : index
    %c0_0 = arith.constant 0 : index
    %0 = vector.load %arg1[%c0, %c0_0] : memref<16x384xf32, #tpu.memory_space<vmem>>, vector<16x384xf32>
    %c0_1 = arith.constant 0 : index
    %c0_2 = arith.constant 0 : index
    %1 = vector.load %arg2[%c0_1, %c0_2] : memref<16x384xf32, #tpu.memory_space<vmem>>, vector<16x384xf32>
    %c0_3 = arith.constant 0 : index
    %c0_4 = arith.constant 0 : index
    %2 = vector.load %arg3[%c0_3, %c0_4] : memref<384x256xf32, #tpu.memory_space<vmem>>, vector<384x256xf32>
    %cst = arith.constant dense<0.000000e+00> : vector<16x256xf32>
    %3 = tpu.matmul %0, %2, %cst {dimension_numbers = #tpu.dot_dimension_numbers<[1], [0], [0], [1], [0, 0, 1, 1], [], []>} : vector<16x384xf32>, vector<384x256xf32>, vector<16x256xf32> -> vector<16x256xf32>
    %c0_5 = arith.constant 0 : index
    %c0_6 = arith.constant 0 : index
    %4 = vector.load %arg4[%c0_5, %c0_6] : memref<1x256xf32, #tpu.memory_space<vmem>>, vector<1x256xf32>
    %5 = vector.broadcast %4 : vector<1x256xf32> to vector<16x256xf32>
    %6 = arith.addf %3, %5 : vector<16x256xf32>
    %cst_7 = arith.constant 0.000000e+00 : f32
    %7 = vector.broadcast %cst_7 : f32 to vector<16x256xf32>
    %8 = arith.maximumf %6, %7 : vector<16x256xf32>
    %c0_8 = arith.constant 0 : index
    %c0_9 = arith.constant 0 : index
    %9 = vector.load %arg5[%c0_8, %c0_9] : memref<256x128xf32, #tpu.memory_space<vmem>>, vector<256x128xf32>
    %cst_10 = arith.constant dense<0.000000e+00> : vector<16x128xf32>
    %10 = tpu.matmul %8, %9, %cst_10 {dimension_numbers = #tpu.dot_dimension_numbers<[1], [0], [0], [1], [0, 0, 1, 1], [], []>} : vector<16x256xf32>, vector<256x128xf32>, vector<16x128xf32> -> vector<16x128xf32>
    %c0_11 = arith.constant 0 : index
    %c0_12 = arith.constant 0 : index
    %11 = vector.load %arg6[%c0_11, %c0_12] : memref<1x128xf32, #tpu.memory_space<vmem>>, vector<1x128xf32>
    %12 = vector.broadcast %11 : vector<1x128xf32> to vector<16x128xf32>
    %13 = arith.addf %10, %12 : vector<16x128xf32>
    %cst_13 = arith.constant 0.000000e+00 : f32
    %14 = vector.broadcast %cst_13 : f32 to vector<16x128xf32>
    %15 = arith.maximumf %13, %14 : vector<16x128xf32>
    %c0_14 = arith.constant 0 : index
    %c0_15 = arith.constant 0 : index
    %16 = vector.load %arg7[%c0_14, %c0_15] : memref<384x256xf32, #tpu.memory_space<vmem>>, vector<384x256xf32>
    %cst_16 = arith.constant dense<0.000000e+00> : vector<16x256xf32>
    %17 = tpu.matmul %1, %16, %cst_16 {dimension_numbers = #tpu.dot_dimension_numbers<[1], [0], [0], [1], [0, 0, 1, 1], [], []>} : vector<16x384xf32>, vector<384x256xf32>, vector<16x256xf32> -> vector<16x256xf32>
    %c0_17 = arith.constant 0 : index
    %c0_18 = arith.constant 0 : index
    %18 = vector.load %arg8[%c0_17, %c0_18] : memref<1x256xf32, #tpu.memory_space<vmem>>, vector<1x256xf32>
    %19 = vector.broadcast %18 : vector<1x256xf32> to vector<16x256xf32>
    %20 = arith.addf %17, %19 : vector<16x256xf32>
    %cst_19 = arith.constant 0.000000e+00 : f32
    %21 = vector.broadcast %cst_19 : f32 to vector<16x256xf32>
    %22 = arith.maximumf %20, %21 : vector<16x256xf32>
    %c0_20 = arith.constant 0 : index
    %c0_21 = arith.constant 0 : index
    %23 = vector.load %arg9[%c0_20, %c0_21] : memref<256x128xf32, #tpu.memory_space<vmem>>, vector<256x128xf32>
    %cst_22 = arith.constant dense<0.000000e+00> : vector<16x128xf32>
    %24 = tpu.matmul %22, %23, %cst_22 {dimension_numbers = #tpu.dot_dimension_numbers<[1], [0], [0], [1], [0, 0, 1, 1], [], []>} : vector<16x256xf32>, vector<256x128xf32>, vector<16x128xf32> -> vector<16x128xf32>
    %c0_23 = arith.constant 0 : index
    %c0_24 = arith.constant 0 : index
    %25 = vector.load %arg10[%c0_23, %c0_24] : memref<1x128xf32, #tpu.memory_space<vmem>>, vector<1x128xf32>
    %26 = vector.broadcast %25 : vector<1x128xf32> to vector<16x128xf32>
    %27 = arith.addf %24, %26 : vector<16x128xf32>
    %cst_25 = arith.constant 0.000000e+00 : f32
    %28 = vector.broadcast %cst_25 : f32 to vector<16x128xf32>
    %29 = arith.maximumf %27, %28 : vector<16x128xf32>
    %c0_26 = arith.constant 0 : index
    %c0_27 = arith.constant 0 : index
    %30 = vector.load %arg11[%c0_26, %c0_27] : memref<128x128xf32, #tpu.memory_space<vmem>>, vector<128x128xf32>
    %cst_28 = arith.constant dense<0.000000e+00> : vector<16x128xf32>
    %31 = tpu.matmul %15, %30, %cst_28 {dimension_numbers = #tpu.dot_dimension_numbers<[1], [0], [0], [1], [0, 0, 1, 1], [], []>} : vector<16x128xf32>, vector<128x128xf32>, vector<16x128xf32> -> vector<16x128xf32>
    %c0_29 = arith.constant 0 : index
    %c0_30 = arith.constant 0 : index
    %32 = vector.load %arg12[%c0_29, %c0_30] : memref<128x128xf32, #tpu.memory_space<vmem>>, vector<128x128xf32>
    %cst_31 = arith.constant dense<0.000000e+00> : vector<16x128xf32>
    %33 = tpu.matmul %29, %32, %cst_31 {dimension_numbers = #tpu.dot_dimension_numbers<[1], [0], [0], [1], [0, 0, 1, 1], [], []>} : vector<16x128xf32>, vector<128x128xf32>, vector<16x128xf32> -> vector<16x128xf32>
    %34 = arith.addf %31, %33 : vector<16x128xf32>
    %c0_32 = arith.constant 0 : index
    %c0_33 = arith.constant 0 : index
    %35 = vector.load %arg13[%c0_32, %c0_33] : memref<1x128xf32, #tpu.memory_space<vmem>>, vector<1x128xf32>
    %36 = vector.broadcast %35 : vector<1x128xf32> to vector<16x128xf32>
    %37 = arith.addf %34, %36 : vector<16x128xf32>
    %cst_34 = arith.constant 0.000000e+00 : f32
    %38 = vector.broadcast %cst_34 : f32 to vector<16x128xf32>
    %39 = arith.maximumf %37, %38 : vector<16x128xf32>
    %c0_35 = arith.constant 0 : index
    %c0_36 = arith.constant 0 : index
    %40 = vector.load %arg14[%c0_35, %c0_36] : memref<128x128xf32, #tpu.memory_space<vmem>>, vector<128x128xf32>
    %cst_37 = arith.constant dense<0.000000e+00> : vector<16x128xf32>
    %41 = tpu.matmul %39, %40, %cst_37 {dimension_numbers = #tpu.dot_dimension_numbers<[1], [0], [0], [1], [0, 0, 1, 1], [], []>} : vector<16x128xf32>, vector<128x128xf32>, vector<16x128xf32> -> vector<16x128xf32>
    %c0_38 = arith.constant 0 : index
    %c0_39 = arith.constant 0 : index
    %42 = vector.load %arg15[%c0_38, %c0_39] : memref<1x128xf32, #tpu.memory_space<vmem>>, vector<1x128xf32>
    %43 = vector.broadcast %42 : vector<1x128xf32> to vector<16x128xf32>
    %44 = arith.addf %41, %43 : vector<16x128xf32>
    %cst_40 = arith.constant 0.000000e+00 : f32
    %45 = vector.broadcast %cst_40 : f32 to vector<16x128xf32>
    %46 = arith.maximumf %44, %45 : vector<16x128xf32>
    %c0_41 = arith.constant 0 : index
    %c0_42 = arith.constant 0 : index
    %47 = vector.load %arg16[%c0_41, %c0_42] : memref<128x128xf32, #tpu.memory_space<vmem>>, vector<128x128xf32>
    %cst_43 = arith.constant dense<0.000000e+00> : vector<16x128xf32>
    %48 = tpu.matmul %46, %47, %cst_43 {dimension_numbers = #tpu.dot_dimension_numbers<[1], [0], [0], [1], [0, 0, 1, 1], [], []>} : vector<16x128xf32>, vector<128x128xf32>, vector<16x128xf32> -> vector<16x128xf32>
    %c0_44 = arith.constant 0 : index
    %c0_45 = arith.constant 0 : index
    %49 = vector.load %arg17[%c0_44, %c0_45] : memref<1x128xf32, #tpu.memory_space<vmem>>, vector<1x128xf32>
    %50 = vector.broadcast %49 : vector<1x128xf32> to vector<16x128xf32>
    %51 = arith.addf %48, %50 : vector<16x128xf32>
    %cst_46 = arith.constant 0.000000e+00 : f32
    %52 = vector.broadcast %cst_46 : f32 to vector<16x128xf32>
    %53 = arith.maximumf %51, %52 : vector<16x128xf32>
    %c0_47 = arith.constant 0 : index
    %c0_48 = arith.constant 0 : index
    %54 = vector.load %arg18[%c0_47, %c0_48] : memref<128x256xf32, #tpu.memory_space<vmem>>, vector<128x256xf32>
    %cst_49 = arith.constant dense<0.000000e+00> : vector<16x256xf32>
    %55 = tpu.matmul %53, %54, %cst_49 {dimension_numbers = #tpu.dot_dimension_numbers<[1], [0], [0], [1], [0, 0, 1, 1], [], []>} : vector<16x128xf32>, vector<128x256xf32>, vector<16x256xf32> -> vector<16x256xf32>
    %c0_50 = arith.constant 0 : index
    %c0_51 = arith.constant 0 : index
    %56 = vector.load %arg19[%c0_50, %c0_51] : memref<1x256xf32, #tpu.memory_space<vmem>>, vector<1x256xf32>
    %57 = vector.broadcast %56 : vector<1x256xf32> to vector<16x256xf32>
    %58 = arith.addf %55, %57 : vector<16x256xf32>
    %cst_52 = arith.constant 0.000000e+00 : f32
    %59 = vector.broadcast %cst_52 : f32 to vector<16x256xf32>
    %60 = arith.maximumf %58, %59 : vector<16x256xf32>
    %c0_53 = arith.constant 0 : index
    %c0_54 = arith.constant 0 : index
    %61 = vector.load %arg20[%c0_53, %c0_54] : memref<256x128xf32, #tpu.memory_space<vmem>>, vector<256x128xf32>
    %cst_55 = arith.constant dense<0.000000e+00> : vector<16x128xf32>
    %62 = tpu.matmul %60, %61, %cst_55 {dimension_numbers = #tpu.dot_dimension_numbers<[1], [0], [0], [1], [0, 0, 1, 1], [], []>} : vector<16x256xf32>, vector<256x128xf32>, vector<16x128xf32> -> vector<16x128xf32>
    %c0_56 = arith.constant 0 : index
    %c0_57 = arith.constant 0 : index
    %63 = vector.load %arg21[%c0_56, %c0_57] : memref<1x128xf32, #tpu.memory_space<vmem>>, vector<1x128xf32>
    %64 = vector.broadcast %63 : vector<1x128xf32> to vector<16x128xf32>
    %65 = arith.addf %62, %64 : vector<16x128xf32>
    %cst_58 = arith.constant 0.000000e+00 : f32
    %66 = vector.broadcast %cst_58 : f32 to vector<16x128xf32>
    %67 = arith.maximumf %65, %66 : vector<16x128xf32>
    %c0_59 = arith.constant 0 : index
    %c0_60 = arith.constant 0 : index
    %68 = vector.load %arg22[%c0_59, %c0_60] : memref<128x384xf32, #tpu.memory_space<vmem>>, vector<128x384xf32>
    %cst_61 = arith.constant dense<0.000000e+00> : vector<16x384xf32>
    %69 = tpu.matmul %67, %68, %cst_61 {dimension_numbers = #tpu.dot_dimension_numbers<[1], [0], [0], [1], [0, 0, 1, 1], [], []>} : vector<16x128xf32>, vector<128x384xf32>, vector<16x384xf32> -> vector<16x384xf32>
    %c0_62 = arith.constant 0 : index
    %c0_63 = arith.constant 0 : index
    %70 = vector.load %arg23[%c0_62, %c0_63] : memref<1x384xf32, #tpu.memory_space<vmem>>, vector<1x384xf32>
    %71 = vector.broadcast %70 : vector<1x384xf32> to vector<16x384xf32>
    %72 = arith.addf %69, %71 : vector<16x384xf32>
    %c0_64 = arith.constant 0 : index
    %c0_65 = arith.constant 0 : index
    %73 = vector.load %arg28[%c0_64, %c0_65] : memref<16x384xf32, #tpu.memory_space<vmem>>, vector<16x384xf32>
    tpu.vector_store %arg28[%c0_64, %c0_65], %72 {strides = array<i32>} : memref<16x384xf32, #tpu.memory_space<vmem>>, vector<16x384xf32>,
    %c0_66 = arith.constant 0 : index
    %c0_67 = arith.constant 0 : index
    %74 = vector.load %arg24[%c0_66, %c0_67] : memref<256x128xf32, #tpu.memory_space<vmem>>, vector<256x128xf32>
    %cst_68 = arith.constant dense<0.000000e+00> : vector<16x128xf32>
    %75 = tpu.matmul %60, %74, %cst_68 {dimension_numbers = #tpu.dot_dimension_numbers<[1], [0], [0], [1], [0, 0, 1, 1], [], []>} : vector<16x256xf32>, vector<256x128xf32>, vector<16x128xf32> -> vector<16x128xf32>
    %c0_69 = arith.constant 0 : index
    %c0_70 = arith.constant 0 : index
    %76 = vector.load %arg25[%c0_69, %c0_70] : memref<1x128xf32, #tpu.memory_space<vmem>>, vector<1x128xf32>
    %77 = vector.broadcast %76 : vector<1x128xf32> to vector<16x128xf32>
    %78 = arith.addf %75, %77 : vector<16x128xf32>
    %cst_71 = arith.constant 0.000000e+00 : f32
    %79 = vector.broadcast %cst_71 : f32 to vector<16x128xf32>
    %80 = arith.maximumf %78, %79 : vector<16x128xf32>
    %c0_72 = arith.constant 0 : index
    %c0_73 = arith.constant 0 : index
    %81 = vector.load %arg26[%c0_72, %c0_73] : memref<128x384xf32, #tpu.memory_space<vmem>>, vector<128x384xf32>
    %cst_74 = arith.constant dense<0.000000e+00> : vector<16x384xf32>
    %82 = tpu.matmul %80, %81, %cst_74 {dimension_numbers = #tpu.dot_dimension_numbers<[1], [0], [0], [1], [0, 0, 1, 1], [], []>} : vector<16x128xf32>, vector<128x384xf32>, vector<16x384xf32> -> vector<16x384xf32>
    %c0_75 = arith.constant 0 : index
    %c0_76 = arith.constant 0 : index
    %83 = vector.load %arg27[%c0_75, %c0_76] : memref<1x384xf32, #tpu.memory_space<vmem>>, vector<1x384xf32>
    %84 = vector.broadcast %83 : vector<1x384xf32> to vector<16x384xf32>
    %85 = arith.addf %82, %84 : vector<16x384xf32>
    %c0_77 = arith.constant 0 : index
    %c0_78 = arith.constant 0 : index
    %86 = vector.load %arg29[%c0_77, %c0_78] : memref<16x384xf32, #tpu.memory_space<vmem>>, vector<16x384xf32>
    tpu.vector_store %arg29[%c0_77, %c0_78], %85 {strides = array<i32>} : memref<16x384xf32, #tpu.memory_space<vmem>>, vector<16x384xf32>,
    return
  }
  func.func @transform_0(%arg0: i32) -> (i32, i32) {
    %c0_i32 = arith.constant 0 : i32
    %c0_i32_0 = arith.constant 0 : i32
    return %arg0, %c0_i32 : i32, i32
  }
  func.func @transform_1(%arg0: i32) -> (i32, i32) {
    %c0_i32 = arith.constant 0 : i32
    %c0_i32_0 = arith.constant 0 : i32
    return %arg0, %c0_i32 : i32, i32
  }
  func.func @transform_2(%arg0: i32) -> (i32, i32) {
    %c0_i32 = arith.constant 0 : i32
    %c0_i32_0 = arith.constant 0 : i32
    %c0_i32_1 = arith.constant 0 : i32
    return %c0_i32, %c0_i32_0 : i32, i32
  }
  func.func @transform_3(%arg0: i32) -> (i32, i32) {
    %c0_i32 = arith.constant 0 : i32
    %c0_i32_0 = arith.constant 0 : i32
    %c0_i32_1 = arith.constant 0 : i32
    return %c0_i32, %c0_i32_0 : i32, i32
  }
  func.func @transform_4(%arg0: i32) -> (i32, i32) {
    %c0_i32 = arith.constant 0 : i32
    %c0_i32_0 = arith.constant 0 : i32
    %c0_i32_1 = arith.constant 0 : i32
    return %c0_i32, %c0_i32_0 : i32, i32
  }
  func.func @transform_5(%arg0: i32) -> (i32, i32) {
    %c0_i32 = arith.constant 0 : i32
    %c0_i32_0 = arith.constant 0 : i32
    %c0_i32_1 = arith.constant 0 : i32
    return %c0_i32, %c0_i32_0 : i32, i32
  }
  func.func @transform_6(%arg0: i32) -> (i32, i32) {
    %c0_i32 = arith.constant 0 : i32
    %c0_i32_0 = arith.constant 0 : i32
    %c0_i32_1 = arith.constant 0 : i32
    return %c0_i32, %c0_i32_0 : i32, i32
  }
  func.func @transform_7(%arg0: i32) -> (i32, i32) {
    %c0_i32 = arith.constant 0 : i32
    %c0_i32_0 = arith.constant 0 : i32
    %c0_i32_1 = arith.constant 0 : i32
    return %c0_i32, %c0_i32_0 : i32, i32
  }
  func.func @transform_8(%arg0: i32) -> (i32, i32) {
    %c0_i32 = arith.constant 0 : i32
    %c0_i32_0 = arith.constant 0 : i32
    %c0_i32_1 = arith.constant 0 : i32
    return %c0_i32, %c0_i32_0 : i32, i32
  }
  func.func @transform_9(%arg0: i32) -> (i32, i32) {
    %c0_i32 = arith.constant 0 : i32
    %c0_i32_0 = arith.constant 0 : i32
    %c0_i32_1 = arith.constant 0 : i32
    return %c0_i32, %c0_i32_0 : i32, i32
  }
  func.func @transform_10(%arg0: i32) -> (i32, i32) {
    %c0_i32 = arith.constant 0 : i32
    %c0_i32_0 = arith.constant 0 : i32
    %c0_i32_1 = arith.constant 0 : i32
    return %c0_i32, %c0_i32_0 : i32, i32
  }
  func.func @transform_11(%arg0: i32) -> (i32, i32) {
    %c0_i32 = arith.constant 0 : i32
    %c0_i32_0 = arith.constant 0 : i32
    %c0_i32_1 = arith.constant 0 : i32
    return %c0_i32, %c0_i32_0 : i32, i32
  }
  func.func @transform_12(%arg0: i32) -> (i32, i32) {
    %c0_i32 = arith.constant 0 : i32
    %c0_i32_0 = arith.constant 0 : i32
    %c0_i32_1 = arith.constant 0 : i32
    return %c0_i32, %c0_i32_0 : i32, i32
  }
  func.func @transform_13(%arg0: i32) -> (i32, i32) {
    %c0_i32 = arith.constant 0 : i32
    %c0_i32_0 = arith.constant 0 : i32
    %c0_i32_1 = arith.constant 0 : i32
    return %c0_i32, %c0_i32_0 : i32, i32
  }
  func.func @transform_14(%arg0: i32) -> (i32, i32) {
    %c0_i32 = arith.constant 0 : i32
    %c0_i32_0 = arith.constant 0 : i32
    %c0_i32_1 = arith.constant 0 : i32
    return %c0_i32, %c0_i32_0 : i32, i32
  }
  func.func @transform_15(%arg0: i32) -> (i32, i32) {
    %c0_i32 = arith.constant 0 : i32
    %c0_i32_0 = arith.constant 0 : i32
    %c0_i32_1 = arith.constant 0 : i32
    return %c0_i32, %c0_i32_0 : i32, i32
  }
  func.func @transform_16(%arg0: i32) -> (i32, i32) {
    %c0_i32 = arith.constant 0 : i32
    %c0_i32_0 = arith.constant 0 : i32
    %c0_i32_1 = arith.constant 0 : i32
    return %c0_i32, %c0_i32_0 : i32, i32
  }
  func.func @transform_17(%arg0: i32) -> (i32, i32) {
    %c0_i32 = arith.constant 0 : i32
    %c0_i32_0 = arith.constant 0 : i32
    %c0_i32_1 = arith.constant 0 : i32
    return %c0_i32, %c0_i32_0 : i32, i32
  }
  func.func @transform_18(%arg0: i32) -> (i32, i32) {
    %c0_i32 = arith.constant 0 : i32
    %c0_i32_0 = arith.constant 0 : i32
    %c0_i32_1 = arith.constant 0 : i32
    return %c0_i32, %c0_i32_0 : i32, i32
  }
  func.func @transform_19(%arg0: i32) -> (i32, i32) {
    %c0_i32 = arith.constant 0 : i32
    %c0_i32_0 = arith.constant 0 : i32
    %c0_i32_1 = arith.constant 0 : i32
    return %c0_i32, %c0_i32_0 : i32, i32
  }
  func.func @transform_20(%arg0: i32) -> (i32, i32) {
    %c0_i32 = arith.constant 0 : i32
    %c0_i32_0 = arith.constant 0 : i32
    %c0_i32_1 = arith.constant 0 : i32
    return %c0_i32, %c0_i32_0 : i32, i32
  }
  func.func @transform_21(%arg0: i32) -> (i32, i32) {
    %c0_i32 = arith.constant 0 : i32
    %c0_i32_0 = arith.constant 0 : i32
    %c0_i32_1 = arith.constant 0 : i32
    return %c0_i32, %c0_i32_0 : i32, i32
  }
  func.func @transform_22(%arg0: i32) -> (i32, i32) {
    %c0_i32 = arith.constant 0 : i32
    %c0_i32_0 = arith.constant 0 : i32
    %c0_i32_1 = arith.constant 0 : i32
    return %c0_i32, %c0_i32_0 : i32, i32
  }
  func.func @transform_23(%arg0: i32) -> (i32, i32) {
    %c0_i32 = arith.constant 0 : i32
    %c0_i32_0 = arith.constant 0 : i32
    %c0_i32_1 = arith.constant 0 : i32
    return %c0_i32, %c0_i32_0 : i32, i32
  }
  func.func @transform_24(%arg0: i32) -> (i32, i32) {
    %c0_i32 = arith.constant 0 : i32
    %c0_i32_0 = arith.constant 0 : i32
    %c0_i32_1 = arith.constant 0 : i32
    return %c0_i32, %c0_i32_0 : i32, i32
  }
  func.func @transform_25(%arg0: i32) -> (i32, i32) {
    %c0_i32 = arith.constant 0 : i32
    %c0_i32_0 = arith.constant 0 : i32
    %c0_i32_1 = arith.constant 0 : i32
    return %c0_i32, %c0_i32_0 : i32, i32
  }
  func.func @transform_26(%arg0: i32) -> (i32, i32) {
    %c0_i32 = arith.constant 0 : i32
    %c0_i32_0 = arith.constant 0 : i32
    %c0_i32_1 = arith.constant 0 : i32
    return %c0_i32, %c0_i32_0 : i32, i32
  }
  func.func @transform_27(%arg0: i32) -> (i32, i32) {
    %c0_i32 = arith.constant 0 : i32
    %c0_i32_0 = arith.constant 0 : i32
    return %arg0, %c0_i32 : i32, i32
  }
  func.func @transform_28(%arg0: i32) -> (i32, i32) {
    %c0_i32 = arith.constant 0 : i32
    %c0_i32_0 = arith.constant 0 : i32
    return %arg0, %c0_i32 : i32, i32
  }
}

</mosaic_0001>

<bundles_post_ra>
// kernel: diagonal_integration_net_forward.1
= control target key start
LH: loop header
LB: loop body
LE: loop exit
PB: predicated region body
PF: predicated region fallthrough
CT: control target
= control target key end

     0   :  { %s4740_s0 = inlined_call_operand.vmem [shape: f32[16,384], index: 0, kind: input, shape index: {}]   ;;  %s4741_s1 = inlined_call_operand.vmem [shape: f32[16,384], index: 1, kind: input, shape index: {}]   ;;  %s4742_s2 = inlined_call_operand.hbm [shape: f32[384,256], index: 2, kind: input, shape index: {}]   ;;  %s4743_s3 = inlined_call_operand.hbm [shape: f32[1,256], index: 3, kind: input, shape index: {}]   ;;  %s4744_s4 = inlined_call_operand.hbm [shape: f32[256,128], index: 4, kind: input, shape index: {}]   ;;  %s4745_s5 = inlined_call_operand.hbm [shape: f32[1,128], index: 5, kind: input, shape index: {}]   ;;  %s4746_s6 = inlined_call_operand.hbm [shape: f32[384,256], index: 6, kind: input, shape index: {}]   ;;  %s4747_s7 = inlined_call_operand.hbm [shape: f32[1,256], index: 7, kind: input, shape index: {}]   ;;  %s4748_s8 = inlined_call_operand.hbm [shape: f32[256,128], index: 8, kind: input, shape index: {}]   ;;  %s4749_s9 = inlined_call_operand.hbm [shape: f32[1,128], index: 9, kind: input, shape index: {}]   ;;  %s4750_s10 = inlined_call_operand.hbm [shape: f32[128,128], index: 10, kind: input, shape index: {}]   ;;  %s4751_s11 = inlined_call_operand.hbm [shape: f32[128,128], index: 11, kind: input, shape index: {}]   ;;  %s4752_s12 = inlined_call_operand.hbm [shape: f32[1,128], index: 12, kind: input, shape index: {}]   ;;  %s4753_s13 = inlined_call_operand.hbm [shape: f32[128,128], index: 13, kind: input, shape index: {}]   ;;  %s4754_s14 = inlined_call_operand.hbm [shape: f32[1,128], index: 14, kind: input, shape index: {}]   ;;  %s4755_s15 = inlined_call_operand.hbm [shape: f32[128,128], index: 15, kind: input, shape index: {}]   ;;  %s4756_s16 = inlined_call_operand.hbm [shape: f32[1,128], index: 16, kind: input, shape index: {}]   ;;  %s4757_s17 = inlined_call_operand.hbm [shape: f32[128,256], index: 17, kind: input, shape index: {}]   ;;  %s4758_s18 = inlined_call_operand.hbm [shape: f32[1,256], index: 18, kind: input, shape index: {}]   ;;  %s4759_s19 = inlined_call_operand.vmem [shape: f32[256,128], index: 19, kind: input, shape index: {}]   ;;  %s4760_s20 = inlined_call_operand.hbm [shape: f32[1,128], index: 20, kind: input, shape index: {}]   ;;  %s4761_s21 = inlined_call_operand.hbm [shape: f32[128,384], index: 21, kind: input, shape index: {}]   ;;  %s4762_s22 = inlined_call_operand.vmem [shape: f32[1,384], index: 22, kind: input, shape index: {}]   ;;  %s4763_s23 = inlined_call_operand.hbm [shape: f32[256,128], index: 23, kind: input, shape index: {}]   ;;  %s4764_s24 = inlined_call_operand.vmem [shape: f32[1,128], index: 24, kind: input, shape index: {}]   ;;  %s4765_s25 = inlined_call_operand.hbm [shape: f32[128,384], index: 25, kind: input, shape index: {}]   ;;  %s4766_s26 = inlined_call_operand.vmem [shape: f32[1,384], index: 26, kind: input, shape index: {}]   ;;  %s4767_s27 = inlined_call_operand.hbm [shape: f32[16,384], index: 27, kind: output, shape index: {0}]   ;;  %s4768_s28 = inlined_call_operand.hbm [shape: f32[16,384], index: 28, kind: output, shape index: {1}]  }
   0x1   :  { %4783 = sst [smem:[#allocation51_spill]] %s4740_s0 }
   0x2   :  { %4784 = sst [smem:[#allocation52_spill]] %s4741_s1 }
   0x3   :  { %4785 = sst [smem:[#allocation53_spill]] %s4742_s2 }
   0x4   :  { %4786 = sst [smem:[#allocation54_spill]] %s4743_s3 }
   0x5   :  { %4787 = sst [smem:[#allocation55_spill]] %s4744_s4 }
   0x6   :  { %4788 = sst [smem:[#allocation56_spill]] %s4745_s5 }
   0x7   :  { %4789 = sst [smem:[#allocation57_spill]] %s4746_s6 }
   0x8   :  { %4790 = sst [smem:[#allocation58_spill]] %s4747_s7 }
   0x9   :  { %4791 = sst [smem:[#allocation59_spill]] %s4748_s8 }
   0xa   :  { %4792 = sst [smem:[#allocation60_spill]] %s4749_s9 }
   0xb   :  { %4793 = sst [smem:[#allocation61_spill]] %s4750_s10 }
   0xc   :  { %4794 = sst [smem:[#allocation62_spill]] %s4751_s11 }
   0xd   :  { %4795 = sst [smem:[#allocation63_spill]] %s4752_s12 }
   0xe   :  { %4796 = sst [smem:[#allocation64_spill]] %s4768_s28 }
   0xf   :  { %34 = vsyncpa [#allocation3], 0 }
  0x10   :  { %35 = vsyncpa [#allocation6], 0 }
  0x11   :  { %36 = vsyncpa [#allocation9], 0 }
  0x12   :  { %37 = vsyncpa [#allocation12], 0 }
  0x13   :  { %38 = vsyncpa [#allocation15], 0 }
  0x14   :  { %39 = vsyncpa [#allocation18], 0 }
  0x15   :  { %40 = vsyncpa [#allocation21], 0 }
  0x16   :  { %41 = vsyncpa [#allocation24], 0 }
  0x17   :  { %42 = vsyncpa [#allocation27], 0 }
  0x18   :  { %43 = vsyncpa [#allocation30], 0 }
  0x19   :  { %44 = vsyncpa [#allocation33], 0 }
  0x1a   :  { %45 = vsyncpa [#allocation4], 0 }
  0x1b   :  { %46 = vsyncpa [#allocation37], 0  ;;  %s4036_s8 = smov [#allocation5]   ;;  %s4037_s9 = smov [#allocation8]  }
  0x1c   :  { %s69_s5 = sshll.u32 %s4036_s8, 4  ;;  %s91_s30 = sshll.u32 %s4037_s9, 4  ;;  %s70_s5 = int_to_ptr.vmem [resolvable:$true] %s69_s5  ;;  %s92_s30 = int_to_ptr.vmem [resolvable:$true] %s91_s30 }
  0x1d   :  { %s4797_s10 = sld [smem:[#allocation54_spill]] }
  0x23   :  { %s3504_s0 = scalar_lea.hbm %s4797_s10, 32 }
  0x24   :  { %p3505_p0 = scmp.ne.s32.totalorder %s4797_s10, %s3504_s0  ;;  %p3508_p1 = scmp.lt.u32.totalorder %s3504_s0, %s4797_s10 }
  0x26   :  { %p3510_p2 = pnand %p3508_p1, %p3505_p0 }
  0x28   :  { %3513 = shalt.err (!%p3510_p2)
}
  0x29   :  { %s3514_s12 = scalar_lea.vmem %s70_s5, 32  ;;  %p3519_p4 = scmp.lt.s32.totalorder %s70_s5, %s70_s5 }
  0x2a   :  { %p3515_p3 = scmp.ne.s32.totalorder %s70_s5, %s3514_s12  ;;  %p3520_p5 = scmp.lt.s32.totalorder %s3514_s12, %s3514_s12 }
  0x2c   :  { %p3521_p6 = por %p3520_p5, %p3519_p4 }
  0x2e   :  { %p3522_p7 = pnand %p3521_p6, %p3515_p3 }
  0x30   :  { %3525 = shalt.err (!%p3522_p7)
}
  0x31   :  { %72 = dma.hbm_to_vmem [thread:$0]  %s4797_s10, 32, %s70_s5, [#allocation6]  }
  0x32   :  { %s4798_s3 = sld [smem:[#allocation56_spill]] }
  0x38   :  { %s3526_s6 = scalar_lea.hbm %s4798_s3, 16 }
  0x39   :  { %p3527_p8 = scmp.ne.s32.totalorder %s4798_s3, %s3526_s6  ;;  %p3530_p9 = scmp.lt.u32.totalorder %s3526_s6, %s4798_s3 }
  0x3b   :  { %p3532_p10 = pnand %p3530_p9, %p3527_p8 }
  0x3d   :  { %3535 = shalt.err (!%p3532_p10)
}
  0x3e   :  { %s3536_s7 = scalar_lea.vmem %s92_s30, 16  ;;  %s3540_s12 = scalar_lea.vmem %s92_s30, 32 }
  0x3f   :  { %p3537_p11 = scmp.ne.s32.totalorder %s92_s30, %s3536_s7  ;;  %p3541_p12 = scmp.lt.s32.totalorder %s92_s30, %s92_s30 }
  0x40   :  { %p3542_p13 = scmp.lt.s32.totalorder %s3540_s12, %s3536_s7 }
  0x42   :  { %p3543_p0 = por %p3542_p13, %p3541_p12 }
  0x44   :  { %p3544_p1 = pnand %p3543_p0, %p3537_p11 }
  0x46   :  { %3547 = shalt.err (!%p3544_p1)
}
  0x47   :  { %94 = dma.hbm_to_vmem [thread:$0]  %s4798_s3, 16, %s92_s30, [#allocation9]  }
  0x48   :  { %s4038_s1 = smov [#allocation11]   ;;  %s4039_s8 = smov [#allocation14]  }
  0x49   :  { %s113_s4 = sshll.u32 %s4038_s1, 4  ;;  %s135_s9 = sshll.u32 %s4039_s8, 4  ;;  %s114_s4 = int_to_ptr.vmem [resolvable:$true] %s113_s4  ;;  %s136_s9 = int_to_ptr.vmem [resolvable:$true] %s135_s9 }
  0x4a   :  { %s4799_s29 = sld [smem:[#allocation58_spill]] }
  0x50   :  { %s3548_s0 = scalar_lea.hbm %s4799_s29, 32 }
  0x51   :  { %p3549_p2 = scmp.ne.s32.totalorder %s4799_s29, %s3548_s0  ;;  %p3552_p3 = scmp.lt.u32.totalorder %s3548_s0, %s4799_s29 }
  0x53   :  { %p3554_p4 = pnand %p3552_p3, %p3549_p2 }
  0x55   :  { %3557 = shalt.err (!%p3554_p4)
}
  0x56   :  { %s3558_s30 = scalar_lea.vmem %s114_s4, 32  ;;  %p3563_p6 = scmp.lt.s32.totalorder %s114_s4, %s114_s4 }
  0x57   :  { %p3559_p5 = scmp.ne.s32.totalorder %s114_s4, %s3558_s30  ;;  %p3564_p7 = scmp.lt.s32.totalorder %s3558_s30, %s3558_s30 }
  0x59   :  { %p3565_p8 = por %p3564_p7, %p3563_p6 }
  0x5b   :  { %p3566_p9 = pnand %p3565_p8, %p3559_p5 }
  0x5d   :  { %3569 = shalt.err (!%p3566_p9)
}
  0x5e   :  { %116 = dma.hbm_to_vmem [thread:$0]  %s4799_s29, 32, %s114_s4, [#allocation12]  }
  0x5f   :  { %s4800_s1 = sld [smem:[#allocation60_spill]] }
  0x65   :  { %s3570_s8 = scalar_lea.hbm %s4800_s1, 16 }
  0x66   :  { %p3571_p10 = scmp.ne.s32.totalorder %s4800_s1, %s3570_s8  ;;  %p3574_p11 = scmp.lt.u32.totalorder %s3570_s8, %s4800_s1 }
  0x68   :  { %p3576_p12 = pnand %p3574_p11, %p3571_p10 }
  0x6a   :  { %3579 = shalt.err (!%p3576_p12)
}
  0x6b   :  { %s3580_s7 = scalar_lea.vmem %s136_s9, 16  ;;  %s3584_s12 = scalar_lea.vmem %s136_s9, 32 }
  0x6c   :  { %p3581_p13 = scmp.ne.s32.totalorder %s136_s9, %s3580_s7  ;;  %p3585_p0 = scmp.lt.s32.totalorder %s136_s9, %s136_s9 }
  0x6d   :  { %p3586_p1 = scmp.lt.s32.totalorder %s3584_s12, %s3580_s7 }
  0x6f   :  { %p3587_p2 = por %p3586_p1, %p3585_p0 }
  0x71   :  { %p3588_p3 = pnand %p3587_p2, %p3581_p13 }
  0x73   :  { %3591 = shalt.err (!%p3588_p3)
}
  0x74   :  { %138 = dma.hbm_to_vmem [thread:$0]  %s4800_s1, 16, %s136_s9, [#allocation15]  }
  0x75   :  { %s4040_s30 = smov [#allocation17]   ;;  %s4041_s5 = smov [#allocation20]  }
  0x76   :  { %s156_s3 = sshll.u32 %s4040_s30, 4  ;;  %s178_s10 = sshll.u32 %s4041_s5, 4  ;;  %s157_s3 = int_to_ptr.vmem [resolvable:$true] %s156_s3  ;;  %s4259_s10 = int_to_ptr.vmem [resolvable:$true] %s178_s10 }
  0x77   :  { %s4801_s6 = sld [smem:[#allocation62_spill]] }
  0x7d   :  { %s3592_s11 = scalar_lea.hbm %s4801_s6, 2048 }
  0x7e   :  { %p3593_p4 = scmp.ne.s32.totalorder %s4801_s6, %s3592_s11  ;;  %p3596_p5 = scmp.lt.u32.totalorder %s3592_s11, %s4801_s6 }
  0x80   :  { %p3598_p6 = pnand %p3596_p5, %p3593_p4 }
  0x82   :  { %3601 = shalt.err (!%p3598_p6)
}
  0x83   :  { %s3602_s9 = scalar_lea.vmem %s157_s3, 2048  ;;  %p3607_p8 = scmp.lt.s32.totalorder %s157_s3, %s157_s3 }
  0x84   :  { %p3603_p7 = scmp.ne.s32.totalorder %s157_s3, %s3602_s9  ;;  %p3608_p9 = scmp.lt.s32.totalorder %s3602_s9, %s3602_s9 }
  0x86   :  { %p3609_p10 = por %p3608_p9, %p3607_p8 }
  0x88   :  { %p3610_p11 = pnand %p3609_p10, %p3603_p7 }
  0x8a   :  { %3613 = shalt.err (!%p3610_p11)
}
  0x8b   :  { %s4042_s1 = smov 128   ;;  %s4043_s4 = smov 8  }
  0x8c   :  { %162 = dma.hbm_to_vmem [thread:$0]  %s4801_s6, 2048, %s157_s3, [#allocation18], %s4042_s1, %s4042_s1, %s4043_s4  }
  0x8d   :  { %s3614_s8 = scalar_lea.hbm %s4753_s13, 2048 }
  0x8e   :  { %p3615_p12 = scmp.ne.s32.totalorder %s4753_s13, %s3614_s8  ;;  %p3618_p13 = scmp.lt.u32.totalorder %s3614_s8, %s4753_s13 }
  0x90   :  { %p3620_p0 = pnand %p3618_p13, %p3615_p12 }
  0x92   :  { %3623 = shalt.err (!%p3620_p0)
}
  0x93   :  { %s3624_s12 = scalar_lea.vmem %s4259_s10, 2048  ;;  %p3629_p2 = scmp.lt.s32.totalorder %s4259_s10, %s4259_s10 }
  0x94   :  { %p3625_p1 = scmp.ne.s32.totalorder %s4259_s10, %s3624_s12  ;;  %p3630_p3 = scmp.lt.s32.totalorder %s3624_s12, %s3624_s12 }
  0x96   :  { %p3631_p4 = por %p3630_p3, %p3629_p2 }
  0x98   :  { %p3632_p5 = pnand %p3631_p4, %p3625_p1 }
  0x9a   :  { %3635 = shalt.err (!%p3632_p5)
}
  0x9b   :  { %184 = dma.hbm_to_vmem [thread:$0]  %s4753_s13, 2048, %s4259_s10, [#allocation21], %s4042_s1, %s4042_s1, %s4043_s4  }
  0x9c   :  { %s4044_s9 = smov [#allocation23]   ;;  %s3636_s28 = scalar_lea.hbm %s4755_s15, 2048 }
  0x9d   :  { %s200_s29 = sshll.u32 %s4044_s9, 4  ;;  %p3637_p6 = scmp.ne.s32.totalorder %s4755_s15, %s3636_s28  ;;  %s201_s29 = int_to_ptr.vmem [resolvable:$true] %s200_s29 }
  0x9e   :  { %p3640_p7 = scmp.lt.u32.totalorder %s3636_s28, %s4755_s15 }
  0xa0   :  { %p3642_p8 = pnand %p3640_p7, %p3637_p6 }
  0xa2   :  { %3645 = shalt.err (!%p3642_p8)
}
  0xa3   :  { %s3646_s7 = scalar_lea.vmem %s201_s29, 2048  ;;  %p3651_p10 = scmp.lt.s32.totalorder %s201_s29, %s201_s29 }
  0xa4   :  { %p3647_p9 = scmp.ne.s32.totalorder %s201_s29, %s3646_s7  ;;  %p3652_p11 = scmp.lt.s32.totalorder %s3646_s7, %s3646_s7 }
  0xa6   :  { %p3653_p12 = por %p3652_p11, %p3651_p10 }
  0xa8   :  { %p3654_p13 = pnand %p3653_p12, %p3647_p9 }
  0xaa   :  { %3657 = shalt.err (!%p3654_p13)
}
  0xab   :  { %206 = dma.hbm_to_vmem [thread:$0]  %s4755_s15, 2048, %s201_s29, [#allocation24], %s4042_s1, %s4042_s1, %s4043_s4  }
  0xac   :  { %s4045_s12 = smov [#allocation26]   ;;  %s4046_s6 = smov [#allocation29]  }
  0xad   :  { %s222_s3 = sshll.u32 %s4045_s12, 4  ;;  %s247_s9 = sshll.u32 %s4046_s6, 4  ;;  %s223_s3 = int_to_ptr.vmem [resolvable:$true] %s222_s3  ;;  %s248_s9 = int_to_ptr.vmem [resolvable:$true] %s247_s9 }
  0xae   :  { %s3658_s28 = scalar_lea.hbm %s4757_s17, 4096 }
  0xaf   :  { %p3659_p0 = scmp.ne.s32.totalorder %s4757_s17, %s3658_s28  ;;  %p3662_p1 = scmp.lt.u32.totalorder %s3658_s28, %s4757_s17 }
  0xb1   :  { %p3664_p2 = pnand %p3662_p1, %p3659_p0 }
  0xb3   :  { %3667 = shalt.err (!%p3664_p2)
}
  0xb4   :  { %s3668_s15 = scalar_lea.vmem %s223_s3, 4096  ;;  %p3673_p4 = scmp.lt.s32.totalorder %s223_s3, %s223_s3 }
  0xb5   :  { %p3669_p3 = scmp.ne.s32.totalorder %s223_s3, %s3668_s15  ;;  %p3674_p5 = scmp.lt.s32.totalorder %s3668_s15, %s3668_s15 }
  0xb7   :  { %p3675_p6 = por %p3674_p5, %p3673_p4 }
  0xb9   :  { %p3676_p7 = pnand %p3675_p6, %p3669_p3 }
  0xbb   :  { %3679 = shalt.err (!%p3676_p7)
}
  0xbc   :  { %s4047_s29 = smov 256   ;;  %s4048_s7 = smov 16  }
  0xbd   :  { %228 = dma.hbm_to_vmem [thread:$0]  %s4757_s17, 4096, %s223_s3, [#allocation27], %s4047_s29, %s4047_s29, %s4048_s7  }
  0xbe   :  { %s3680_s30 = scalar_lea.hbm %s4760_s20, 16 }
  0xbf   :  { %p3681_p8 = scmp.ne.s32.totalorder %s4760_s20, %s3680_s30  ;;  %p3684_p9 = scmp.lt.u32.totalorder %s3680_s30, %s4760_s20 }
  0xc1   :  { %p3686_p10 = pnand %p3684_p9, %p3681_p8 }
  0xc3   :  { %3689 = shalt.err (!%p3686_p10)
}
  0xc4   :  { %s3690_s0 = scalar_lea.vmem %s248_s9, 16  ;;  %s3694_s2 = scalar_lea.vmem %s248_s9, 32 }
  0xc5   :  { %p3691_p11 = scmp.ne.s32.totalorder %s248_s9, %s3690_s0  ;;  %p3695_p12 = scmp.lt.s32.totalorder %s248_s9, %s248_s9 }
  0xc6   :  { %p3696_p13 = scmp.lt.s32.totalorder %s3694_s2, %s3690_s0 }
  0xc8   :  { %p3697_p0 = por %p3696_p13, %p3695_p12 }
  0xca   :  { %p3698_p1 = pnand %p3697_p0, %p3691_p11 }
  0xcc   :  { %3701 = shalt.err (!%p3698_p1)
}
  0xcd   :  { %250 = dma.hbm_to_vmem [thread:$0]  %s4760_s20, 16, %s248_s9, [#allocation30]  }
  0xce   :  { %s4049_s15 = smov [#allocation32]   ;;  %s4050_s10 = smov [#allocation2]  }
  0xcf   :  { %s270_s13 = sshll.u32 %s4049_s15, 4  ;;  %s56_s12 = sshll.u32 %s4050_s10, 4  ;;  %s271_s13 = int_to_ptr.vmem [resolvable:$true] %s270_s13  ;;  %s57_s12 = int_to_ptr.vmem [resolvable:$true] %s56_s12 }
  0xd0   :  { %s3702_s5 = scalar_lea.hbm %s4763_s23, 4096 }
  0xd1   :  { %p3703_p2 = scmp.ne.s32.totalorder %s4763_s23, %s3702_s5  ;;  %p3706_p3 = scmp.lt.u32.totalorder %s3702_s5, %s4763_s23 }
  0xd3   :  { %p3708_p4 = pnand %p3706_p3, %p3703_p2 }
  0xd5   :  { %3711 = shalt.err (!%p3708_p4)
}
  0xd6   :  { %s3712_s20 = scalar_lea.vmem %s271_s13, 4096  ;;  %p3717_p6 = scmp.lt.s32.totalorder %s271_s13, %s271_s13 }
  0xd7   :  { %p3713_p5 = scmp.ne.s32.totalorder %s271_s13, %s3712_s20  ;;  %p3718_p7 = scmp.lt.s32.totalorder %s3712_s20, %s3712_s20 }
  0xd9   :  { %p3719_p8 = por %p3718_p7, %p3717_p6 }
  0xdb   :  { %p3720_p9 = pnand %p3719_p8, %p3713_p5 }
  0xdd   :  { %3723 = shalt.err (!%p3720_p9)
}
  0xde   :  { %276 = dma.hbm_to_vmem [thread:$0]  %s4763_s23, 4096, %s271_s13, [#allocation33], %s4042_s1, %s4042_s1, %s4043_s4  }
  0xdf   :  { %s4802_s15 = sld [smem:[#allocation53_spill]] }
  0xe5   :  { %s3724_s10 = scalar_lea.hbm %s4802_s15, 12288 }
  0xe6   :  { %p3725_p10 = scmp.ne.s32.totalorder %s4802_s15, %s3724_s10  ;;  %p3728_p11 = scmp.lt.u32.totalorder %s3724_s10, %s4802_s15 }
  0xe8   :  { %p3730_p12 = pnand %p3728_p11, %p3725_p10 }
  0xea   :  { %3733 = shalt.err (!%p3730_p12)
}
  0xeb   :  { %s3734_s8 = scalar_lea.vmem %s57_s12, 12288  ;;  %p3739_p0 = scmp.lt.s32.totalorder %s57_s12, %s57_s12 }
  0xec   :  { %p3735_p13 = scmp.ne.s32.totalorder %s57_s12, %s3734_s8  ;;  %p3740_p1 = scmp.lt.s32.totalorder %s3734_s8, %s3734_s8 }
  0xee   :  { %p3741_p2 = por %p3740_p1, %p3739_p0 }
  0xf0   :  { %p3742_p3 = pnand %p3741_p2, %p3735_p13 }
  0xf2   :  { %3745 = shalt.err (!%p3742_p3)
}
  0xf3   :  { %62 = dma.hbm_to_vmem [thread:$0]  %s4802_s15, 12288, %s57_s12, [#allocation3], %s4047_s29, %s4047_s29, %s4048_s7  }
  0xf4   :  { %s4051_s11 = smov [#allocation7]   ;;  %s4052_s20 = smov [#allocation10]  }
  0xf5   :  { %s78_s0 = sshll.u32 %s4051_s11, 4  ;;  %s100_s9 = sshll.u32 %s4052_s20, 4  ;;  %s79_s0 = int_to_ptr.vmem [resolvable:$true] %s78_s0  ;;  %s101_s9 = int_to_ptr.vmem [resolvable:$true] %s100_s9 }
  0xf6   :  { %s4803_s3 = sld [smem:[#allocation55_spill]] }
  0xfc   :  { %s3746_s10 = scalar_lea.hbm %s4803_s3, 4096 }
  0xfd   :  { %p3747_p4 = scmp.ne.s32.totalorder %s4803_s3, %s3746_s10  ;;  %p3750_p5 = scmp.lt.u32.totalorder %s3746_s10, %s4803_s3 }
  0xff   :  { %p3752_p6 = pnand %p3750_p5, %p3747_p4 }
 0x101   :  { %3755 = shalt.err (!%p3752_p6)
}
 0x102   :  { %s3756_s12 = scalar_lea.vmem %s79_s0, 4096  ;;  %p3761_p8 = scmp.lt.s32.totalorder %s79_s0, %s79_s0 }
 0x103   :  { %p3757_p7 = scmp.ne.s32.totalorder %s79_s0, %s3756_s12  ;;  %p3762_p9 = scmp.lt.s32.totalorder %s3756_s12, %s3756_s12 }
 0x105   :  { %p3763_p10 = por %p3762_p9, %p3761_p8 }
 0x107   :  { %p3764_p11 = pnand %p3763_p10, %p3757_p7 }
 0x109   :  { %3767 = shalt.err (!%p3764_p11)
}
 0x10a   :  { %84 = dma.hbm_to_vmem [thread:$0]  %s4803_s3, 4096, %s79_s0, [#allocation6], %s4042_s1, %s4042_s1, %s4043_s4  }
 0x10b   :  { %s4804_s11 = sld [smem:[#allocation57_spill]] }
 0x111   :  { %s3768_s20 = scalar_lea.hbm %s4804_s11, 12288 }
 0x112   :  { %p3769_p12 = scmp.ne.s32.totalorder %s4804_s11, %s3768_s20  ;;  %p3772_p13 = scmp.lt.u32.totalorder %s3768_s20, %s4804_s11 }
 0x114   :  { %p3774_p0 = pnand %p3772_p13, %p3769_p12 }
 0x116   :  { %3777 = shalt.err (!%p3774_p0)
}
 0x117   :  { %s3778_s30 = scalar_lea.vmem %s101_s9, 12288  ;;  %p3783_p2 = scmp.lt.s32.totalorder %s101_s9, %s101_s9 }
 0x118   :  { %p3779_p1 = scmp.ne.s32.totalorder %s101_s9, %s3778_s30  ;;  %p3784_p3 = scmp.lt.s32.totalorder %s3778_s30, %s3778_s30 }
 0x11a   :  { %p3785_p4 = por %p3784_p3, %p3783_p2 }
 0x11c   :  { %p3786_p5 = pnand %p3785_p4, %p3779_p1 }
 0x11e   :  { %3789 = shalt.err (!%p3786_p5)
}
 0x11f   :  { %106 = dma.hbm_to_vmem [thread:$0]  %s4804_s11, 12288, %s101_s9, [#allocation9], %s4047_s29, %s4047_s29, %s4048_s7  }
 0x120   :  { %s4053_s5 = smov [#allocation13]   ;;  %s4054_s12 = smov [#allocation16]  }
 0x121   :  { %s122_s28 = sshll.u32 %s4053_s5, 4  ;;  %s144_s15 = sshll.u32 %s4054_s12, 4  ;;  %s123_s28 = int_to_ptr.vmem [resolvable:$true] %s122_s28  ;;  %s145_s15 = int_to_ptr.vmem [resolvable:$true] %s144_s15 }
 0x122   :  { %s4805_s13 = sld [smem:[#allocation59_spill]] }
 0x128   :  { %s3790_s20 = scalar_lea.hbm %s4805_s13, 4096 }
 0x129   :  { %p3791_p6 = scmp.ne.s32.totalorder %s4805_s13, %s3790_s20  ;;  %p3794_p7 = scmp.lt.u32.totalorder %s3790_s20, %s4805_s13 }
 0x12b   :  { %p3796_p8 = pnand %p3794_p7, %p3791_p6 }
 0x12d   :  { %3799 = shalt.err (!%p3796_p8)
}
 0x12e   :  { %s3800_s29 = scalar_lea.vmem %s123_s28, 4096  ;;  %p3805_p10 = scmp.lt.s32.totalorder %s123_s28, %s123_s28 }
 0x12f   :  { %p3801_p9 = scmp.ne.s32.totalorder %s123_s28, %s3800_s29  ;;  %p3806_p11 = scmp.lt.s32.totalorder %s3800_s29, %s3800_s29 }
 0x131   :  { %p3807_p12 = por %p3806_p11, %p3805_p10 }
 0x133   :  { %p3808_p13 = pnand %p3807_p12, %p3801_p9 }
 0x135   :  { %3811 = shalt.err (!%p3808_p13)
}
 0x136   :  { %128 = dma.hbm_to_vmem [thread:$0]  %s4805_s13, 4096, %s123_s28, [#allocation12], %s4042_s1, %s4042_s1, %s4043_s4  }
 0x137   :  { %s4806_s0 = sld [smem:[#allocation61_spill]] }
 0x13d   :  { %s3812_s3 = scalar_lea.hbm %s4806_s0, 2048 }
 0x13e   :  { %p3813_p0 = scmp.ne.s32.totalorder %s4806_s0, %s3812_s3  ;;  %p3816_p1 = scmp.lt.u32.totalorder %s3812_s3, %s4806_s0 }
 0x140   :  { %p3818_p2 = pnand %p3816_p1, %p3813_p0 }
 0x142   :  { %3821 = shalt.err (!%p3818_p2)
}
 0x143   :  { %s3822_s20 = scalar_lea.vmem %s145_s15, 2048  ;;  %p3827_p4 = scmp.lt.s32.totalorder %s145_s15, %s145_s15 }
 0x144   :  { %p3823_p3 = scmp.ne.s32.totalorder %s145_s15, %s3822_s20  ;;  %p3828_p5 = scmp.lt.s32.totalorder %s3822_s20, %s3822_s20 }
 0x146   :  { %p3829_p6 = por %p3828_p5, %p3827_p4 }
 0x148   :  { %p3830_p7 = pnand %p3829_p6, %p3823_p3 }
 0x14a   :  { %3833 = shalt.err (!%p3830_p7)
}
 0x14b   :  { %150 = dma.hbm_to_vmem [thread:$0]  %s4806_s0, 2048, %s145_s15, [#allocation15], %s4042_s1, %s4042_s1, %s4043_s4  }
 0x14c   :  { %s4055_s2 = smov [#allocation19]   ;;  %s4056_s10 = smov [#allocation22]  }
 0x14d   :  { %s169_s17 = sshll.u32 %s4055_s2, 4  ;;  %s191_s6 = sshll.u32 %s4056_s10, 4  ;;  %s170_s17 = int_to_ptr.vmem [resolvable:$true] %s169_s17  ;;  %s192_s6 = int_to_ptr.vmem [resolvable:$true] %s191_s6 }
 0x14e   :  { %s4807_s9 = sld [smem:[#allocation63_spill]] }
 0x154   :  { %s3834_s11 = scalar_lea.hbm %s4807_s9, 16 }
 0x155   :  { %p3835_p8 = scmp.ne.s32.totalorder %s4807_s9, %s3834_s11  ;;  %p3838_p9 = scmp.lt.u32.totalorder %s3834_s11, %s4807_s9 }
 0x157   :  { %p3840_p10 = pnand %p3838_p9, %p3835_p8 }
 0x159   :  { %3843 = shalt.err (!%p3840_p10)
}
 0x15a   :  { %s3844_s1 = scalar_lea.vmem %s170_s17, 16  ;;  %s3848_s4 = scalar_lea.vmem %s170_s17, 32 }
 0x15b   :  { %p3845_p11 = scmp.ne.s32.totalorder %s170_s17, %s3844_s1  ;;  %p3849_p12 = scmp.lt.s32.totalorder %s170_s17, %s170_s17 }
 0x15c   :  { %p3850_p13 = scmp.lt.s32.totalorder %s3848_s4, %s3844_s1 }
 0x15e   :  { %p3851_p0 = por %p3850_p13, %p3849_p12 }
 0x160   :  { %p3852_p1 = pnand %p3851_p0, %p3845_p11 }
 0x162   :  { %3855 = shalt.err (!%p3852_p1)
}
 0x163   :  { %172 = dma.hbm_to_vmem [thread:$0]  %s4807_s9, 16, %s170_s17, [#allocation18]  }
 0x164   :  { %s3856_s20 = scalar_lea.hbm %s4754_s14, 16 }
 0x165   :  { %p3857_p2 = scmp.ne.s32.totalorder %s4754_s14, %s3856_s20  ;;  %p3860_p3 = scmp.lt.u32.totalorder %s3856_s20, %s4754_s14 }
 0x167   :  { %p3862_p4 = pnand %p3860_p3, %p3857_p2 }
 0x169   :  { %3865 = shalt.err (!%p3862_p4)
}
 0x16a   :  { %s3866_s29 = scalar_lea.vmem %s192_s6, 16  ;;  %s3870_s7 = scalar_lea.vmem %s192_s6, 32 }
 0x16b   :  { %p3867_p5 = scmp.ne.s32.totalorder %s192_s6, %s3866_s29  ;;  %p3871_p6 = scmp.lt.s32.totalorder %s192_s6, %s192_s6 }
 0x16c   :  { %p3872_p7 = scmp.lt.s32.totalorder %s3870_s7, %s3866_s29 }
 0x16e   :  { %p3873_p8 = por %p3872_p7, %p3871_p6 }
 0x170   :  { %p3874_p9 = pnand %p3873_p8, %p3867_p5 }
 0x172   :  { %3877 = shalt.err (!%p3874_p9)
}
 0x173   :  { %194 = dma.hbm_to_vmem [thread:$0]  %s4754_s14, 16, %s192_s6, [#allocation21]  }
 0x174   :  { %s4057_s11 = smov [#allocation25]   ;;  %s4058_s3 = smov [#allocation28]  }
 0x175   :  { %s213_s30 = sshll.u32 %s4057_s11, 4  ;;  %s235_s5 = sshll.u32 %s4058_s3, 4  ;;  %s214_s30 = int_to_ptr.vmem [resolvable:$true] %s213_s30  ;;  %s236_s5 = int_to_ptr.vmem [resolvable:$true] %s235_s5 }
 0x176   :  { %s3878_s4 = scalar_lea.hbm %s4756_s16, 16 }
 0x177   :  { %p3879_p10 = scmp.ne.s32.totalorder %s4756_s16, %s3878_s4  ;;  %p3882_p11 = scmp.lt.u32.totalorder %s3878_s4, %s4756_s16 }
 0x179   :  { %p3884_p12 = pnand %p3882_p11, %p3879_p10 }
 0x17b   :  { %3887 = shalt.err (!%p3884_p12)
}
 0x17c   :  { %s3888_s14 = scalar_lea.vmem %s214_s30, 16  ;;  %s3892_s6 = scalar_lea.vmem %s214_s30, 32 }
 0x17d   :  { %p3889_p13 = scmp.ne.s32.totalorder %s214_s30, %s3888_s14  ;;  %p3893_p0 = scmp.lt.s32.totalorder %s214_s30, %s214_s30 }
 0x17e   :  { %p3894_p1 = scmp.lt.s32.totalorder %s3892_s6, %s3888_s14 }
 0x180   :  { %p3895_p2 = por %p3894_p1, %p3893_p0 }
 0x182   :  { %p3896_p3 = pnand %p3895_p2, %p3889_p13 }
 0x184   :  { %3899 = shalt.err (!%p3896_p3)
}
 0x185   :  { %216 = dma.hbm_to_vmem [thread:$0]  %s4756_s16, 16, %s214_s30, [#allocation24]  }
 0x186   :  { %s3900_s10 = scalar_lea.hbm %s4758_s18, 32 }
 0x187   :  { %p3901_p4 = scmp.ne.s32.totalorder %s4758_s18, %s3900_s10  ;;  %p3904_p5 = scmp.lt.u32.totalorder %s3900_s10, %s4758_s18 }
 0x189   :  { %p3906_p6 = pnand %p3904_p5, %p3901_p4 }
 0x18b   :  { %3909 = shalt.err (!%p3906_p6)
}
 0x18c   :  { %s3910_s11 = scalar_lea.vmem %s236_s5, 32  ;;  %p3915_p8 = scmp.lt.s32.totalorder %s236_s5, %s236_s5 }
 0x18d   :  { %p3911_p7 = scmp.ne.s32.totalorder %s236_s5, %s3910_s11  ;;  %p3916_p9 = scmp.lt.s32.totalorder %s3910_s11, %s3910_s11 }
 0x18f   :  { %p3917_p10 = por %p3916_p9, %p3915_p8 }
 0x191   :  { %p3918_p11 = pnand %p3917_p10, %p3911_p7 }
 0x193   :  { %3921 = shalt.err (!%p3918_p11)
}
 0x194   :  { %238 = dma.hbm_to_vmem [thread:$0]  %s4758_s18, 32, %s236_s5, [#allocation27]  }
 0x195   :  { %s4059_s3 = smov [#allocation31]   ;;  %s3922_s15 = scalar_lea.hbm %s4761_s21, 6144 }
 0x196   :  { %s256_s12 = sshll.u32 %s4059_s3, 4  ;;  %p3923_p12 = scmp.ne.s32.totalorder %s4761_s21, %s3922_s15  ;;  %s257_s12 = int_to_ptr.vmem [resolvable:$true] %s256_s12 }
 0x197   :  { %p3926_p13 = scmp.lt.u32.totalorder %s3922_s15, %s4761_s21 }
 0x199   :  { %p3928_p0 = pnand %p3926_p13, %p3923_p12 }
 0x19b   :  { %3931 = shalt.err (!%p3928_p0)
}
 0x19c   :  { %s3932_s6 = scalar_lea.vmem %s257_s12, 6144  ;;  %p3937_p2 = scmp.lt.s32.totalorder %s257_s12, %s257_s12 }
 0x19d   :  { %p3933_p1 = scmp.ne.s32.totalorder %s257_s12, %s3932_s6  ;;  %p3938_p3 = scmp.lt.s32.totalorder %s3932_s6, %s3932_s6 }
 0x19f   :  { %p3939_p4 = por %p3938_p3, %p3937_p2 }
 0x1a1   :  { %p3940_p5 = pnand %p3939_p4, %p3933_p1 }
 0x1a3   :  { %3943 = shalt.err (!%p3940_p5)
}
 0x1a4   :  { %s4060_s18 = smov 384   ;;  %s4061_s5 = smov 24  }
 0x1a5   :  { %262 = dma.hbm_to_vmem [thread:$0]  %s4761_s21, 6144, %s257_s12, [#allocation30], %s4060_s18, %s4060_s18, %s4061_s5  }
 0x1a6   :  { %s4062_s13 = smov [#allocation34]   ;;  %s3944_s7 = scalar_lea.hbm %s4765_s25, 6144 }
 0x1a7   :  { %s284_s2 = sshll.u32 %s4062_s13, 4  ;;  %p3945_p6 = scmp.ne.s32.totalorder %s4765_s25, %s3944_s7  ;;  %s285_s2 = int_to_ptr.vmem [resolvable:$true] %s284_s2 }
 0x1a8   :  { %p3948_p7 = scmp.lt.u32.totalorder %s3944_s7, %s4765_s25 }
 0x1aa   :  { %p3950_p8 = pnand %p3948_p7, %p3945_p6 }
 0x1ac   :  { %3953 = shalt.err (!%p3950_p8)
}
 0x1ad   :  { %s3954_s30 = scalar_lea.vmem %s285_s2, 6144  ;;  %p3959_p10 = scmp.lt.s32.totalorder %s285_s2, %s285_s2 }
 0x1ae   :  { %p3955_p9 = scmp.ne.s32.totalorder %s285_s2, %s3954_s30  ;;  %p3960_p11 = scmp.lt.s32.totalorder %s3954_s30, %s3954_s30 }
 0x1b0   :  { %p3961_p12 = por %p3960_p11, %p3959_p10 }
 0x1b2   :  { %p3962_p13 = pnand %p3961_p12, %p3955_p9 }
 0x1b4   :  { %3965 = shalt.err (!%p3962_p13)
}
 0x1b5   :  { %290 = dma.hbm_to_vmem [thread:$0]  %s4765_s25, 6144, %s285_s2, [#allocation33], %s4060_s18, %s4060_s18, %s4061_s5  }
 0x1b6   :  { %4010 = dma.done.wait [#allocation3], 12288  }
 0x1b7   :  { %4011 = vsyncadd [#allocation3], 4294955008 }
 0x1b8   :  { %4012 = dma.done.wait [#allocation6], 4128  }
 0x1b9   :  { %4013 = vsyncadd [#allocation6], 4294963168 }
 0x1ba   :  { %4014 = dma.done.wait [#allocation9], 12304  }
 0x1bb   :  { %4015 = vsyncadd [#allocation9], 4294954992 }
 0x1bc   :  { %4016 = dma.done.wait [#allocation12], 4128  }
 0x1bd   :  { %4017 = vsyncadd [#allocation12], 4294963168 }
 0x1be   :  { %4018 = dma.done.wait [#allocation15], 2064  }
 0x1bf   :  { %4019 = vsyncadd [#allocation15], 4294965232 }
 0x1c0   :  { %4020 = dma.done.wait [#allocation18], 2064  }
 0x1c1   :  { %4021 = vsyncadd [#allocation18], 4294965232 }
 0x1c2   :  { %4022 = dma.done.wait [#allocation21], 2064  }
 0x1c3   :  { %4023 = vsyncadd [#allocation21], 4294965232 }
 0x1c4   :  { %4024 = dma.done.wait [#allocation24], 2064  }
 0x1c5   :  { %4025 = vsyncadd [#allocation24], 4294965232 }
 0x1c6   :  { %4026 = dma.done.wait [#allocation27], 4128  }
 0x1c7   :  { %4027 = vsyncadd [#allocation27], 4294963168 }
 0x1c8   :  { %4028 = dma.done.wait [#allocation30], 6160  }
 0x1c9   :  { %4029 = vsyncadd [#allocation30], 4294961136 }
 0x1ca   :  { %4030 = dma.done.wait [#allocation33], 10240  }
 0x1cb   :  { %4031 = vsyncadd [#allocation33], 4294957056  ;;  %v369_v0 = vld [vmem:[#allocation2 + $0x8] sm:$0xff]  ;;  %v371_v1 = vld [vmem:[#allocation2 + $0x18] sm:$0xff]  ;;  %s4808_s1 = sld [smem:[#allocation51_spill]]  ;;  %s4809_s29 = sld [smem:[#allocation52_spill]] }
 0x1cc   :  { %v368_v2 = vld [vmem:[#allocation2] sm:$0xff]  ;;  %v2848_v3 = vpack.c.bf16 %v371_v1, %v369_v0  ;;  %v370_v4 = vld [vmem:[#allocation2 + $0x10] sm:$0xff]  ;;  %v373_v5 = vld [vmem:[#allocation2 + $0x28] sm:$0xff]  ;;  %s4064_s16 = smov [#allocation35]  }
 0x1cd   :  { %v375_v6 = vld [vmem:[#allocation2 + $0x38] sm:$0xff]  ;;  %v2850_v7 = vpack.c.bf16 %v370_v4, %v368_v2  ;;  %v372_v9 = vld [vmem:[#allocation2 + $0x20] sm:$0xff]  ;;  %v374_v10 = vld [vmem:[#allocation2 + $0x30] sm:$0xff]  ;;  %s2333_s30 = sshll.u32 %s4064_s16, 4  ;;  %s2334_s30 = int_to_ptr.vmem [resolvable:$true] %s2333_s30 }
 0x1ce   :  { %v2852_v8 = vpack.c.bf16 %v375_v6, %v373_v5  ;;  %v377_v11 = vld [vmem:[#allocation2 + $0x48] sm:$0xff]  ;;  %2849 = vmatprep.subr.bf16.mxu0 %v2848_v3  ;;  %v379_v12 = vld [vmem:[#allocation2 + $0x58] sm:$0xff]  ;;  %v2854_v13 = vpack.c.bf16 %v374_v10, %v372_v9  ;;  %v376_v15 = vld [vmem:[#allocation2 + $0x40] sm:$0xff]  ;;  %s3966_s21 = scalar_lea.vmem %s2334_s30, 768  ;;  %p3971_p1 = scmp.lt.s32.totalorder %s2334_s30, %s2334_s30 }
 0x1cf   :  { %2851 = vmatpush1.bf16.msra.mxu0 %v2850_v7  ;;  %v2856_v14 = vpack.c.bf16 %v379_v12, %v377_v11  ;;  %v378_v16 = vld [vmem:[#allocation2 + $0x50] sm:$0xff]  ;;  %v381_v17 = vld [vmem:[#allocation2 + $0x68] sm:$0xff]  ;;  %v383_v18 = vld [vmem:[#allocation2 + $0x78] sm:$0xff]  ;;  %p3967_p0 = scmp.ne.s32.totalorder %s2334_s30, %s3966_s21  ;;  %p3972_p2 = scmp.lt.s32.totalorder %s3966_s21, %s3966_s21 }
 0x1d0   :  { %2853 = vmatprep.subr.bf16.mxu0 %v2852_v8  ;;  %v2858_v19 = vpack.c.bf16 %v378_v16, %v376_v15  ;;  %v2860_v20 = vpack.c.bf16 %v383_v18, %v381_v17  ;;  %v380_v21 = vld [vmem:[#allocation2 + $0x60] sm:$0xff]  ;;  %v382_v22 = vld [vmem:[#allocation2 + $0x70] sm:$0xff]  ;;  %v385_v23 = vld [vmem:[#allocation2 + $0x88] sm:$0xff] }
 0x1d1   :  { %v387_v24 = vld [vmem:[#allocation2 + $0x98] sm:$0xff]  ;;  %v2862_v25 = vpack.c.bf16 %v382_v22, %v380_v21  ;;  %v384_v27 = vld [vmem:[#allocation2 + $0x80] sm:$0xff]  ;;  %v386_v28 = vld [vmem:[#allocation2 + $0x90] sm:$0xff]  ;;  %p3973_p3 = por %p3972_p2, %p3971_p1 }
 0x1d2   :  { %v2864_v26 = vpack.c.bf16 %v387_v24, %v385_v23  ;;  %v389_v29 = vld [vmem:[#allocation2 + $0xa8] sm:$0xff]  ;;  %v391_v30 = vld [vmem:[#allocation2 + $0xb8] sm:$0xff]  ;;  %v2866_v31 = vpack.c.bf16 %v386_v28, %v384_v27  ;;  %v388_v33 = vld [vmem:[#allocation2 + $0xa0] sm:$0xff] }
 0x1d3   :  { %2855 = vmatpush1.bf16.msra.mxu0 %v2854_v13  ;;  %v2868_v32 = vpack.c.bf16 %v391_v30, %v389_v29  ;;  %v390_v34 = vld [vmem:[#allocation2 + $0xb0] sm:$0xff]  ;;  %v393_v35 = vld [vmem:[#allocation2 + $0xc8] sm:$0xff]  ;;  %v395_v36 = vld [vmem:[#allocation2 + $0xd8] sm:$0xff]  ;;  %p3974_p4 = pnand %p3973_p3, %p3967_p0 }
 0x1d4   :  { %2857 = vmatprep.subr.bf16.mxu0 %v2856_v14  ;;  %v2870_v37 = vpack.c.bf16 %v390_v34, %v388_v33  ;;  %v2872_v38 = vpack.c.bf16 %v395_v36, %v393_v35  ;;  %v392_v39 = vld [vmem:[#allocation2 + $0xc0] sm:$0xff]  ;;  %v394_v40 = vld [vmem:[#allocation2 + $0xd0] sm:$0xff]  ;;  %v357_v41 = vld [vmem:[%s4808_s1 + $0x8] sm:$0xff] }
 0x1d5   :  { %v397_v42 = vld [vmem:[#allocation2 + $0xe8] sm:$0xff]  ;;  %v399_v43 = vld [vmem:[#allocation2 + $0xf8] sm:$0xff]  ;;  %540 = vmatprep.mubr.f32.mxu0 %v357_v41  ;;  %v2874_v44 = vpack.c.bf16 %v394_v40, %v392_v39  ;;  %v396_v46 = vld [vmem:[#allocation2 + $0xe0] sm:$0xff] }
 0x1d6   :  { %v2876_v45 = vpack.c.bf16 %v399_v43, %v397_v42  ;;  %v398_v47 = vld [vmem:[#allocation2 + $0xf0] sm:$0xff]  ;;  %v401_v48 = vld [vmem:[#allocation2 + $0x108] sm:$0xff]  ;;  %v403_v49 = vld [vmem:[#allocation2 + $0x118] sm:$0xff] }
 0x1d7   :  { %2859 = vmatpush1.bf16.msra.mxu0 %v2858_v19  ;;  %v2878_v50 = vpack.c.bf16 %v398_v47, %v396_v46  ;;  %v2880_v51 = vpack.c.bf16 %v403_v49, %v401_v48  ;;  %v400_v52 = vld [vmem:[#allocation2 + $0x100] sm:$0xff]  ;;  %v402_v53 = vld [vmem:[#allocation2 + $0x110] sm:$0xff]  ;;  %v405_v54 = vld [vmem:[#allocation2 + $0x128] sm:$0xff] }
 0x1d8   :  { %2861 = vmatprep.subr.bf16.mxu0 %v2860_v20  ;;  %v407_v55 = vld [vmem:[#allocation2 + $0x138] sm:$0xff]  ;;  %v2882_v56 = vpack.c.bf16 %v402_v53, %v400_v52  ;;  %v404_v57 = vld [vmem:[#allocation2 + $0x120] sm:$0xff]  ;;  %v406_v59 = vld [vmem:[#allocation2 + $0x130] sm:$0xff] }
 0x1d9   :  { %v2884_v58 = vpack.c.bf16 %v407_v55, %v405_v54  ;;  %v409_v60 = vld [vmem:[#allocation2 + $0x148] sm:$0xff]  ;;  %v411_v61 = vld [vmem:[#allocation2 + $0x158] sm:$0xff]  ;;  %v2886_v5 = vpack.c.bf16 %v406_v59, %v404_v57  ;;  %v408_v12 = vld [vmem:[#allocation2 + $0x140] sm:$0xff] }
 0x1da   :  { %v650_v62 = vld [vmem:[#allocation7 + $0x80] sm:$0xff]  ;;  %v651_v63 = vld [vmem:[#allocation7 + $0x88] sm:$0xff]  ;;  %v652_v3 = vld [vmem:[#allocation7 + $0x90] sm:$0xff]  ;;  %v2888_v11 = vpack.c.bf16 %v411_v61, %v409_v60 }
 0x1db   :  { %2863 = vmatpush1.bf16.msra.mxu0 %v2862_v25  ;;  %v634_v0 = vld [vmem:[#allocation7] sm:$0xff]  ;;  %v2944_v1 = vpack.c.bf16 %v651_v63, %v650_v62  ;;  %v635_v2 = vld [vmem:[#allocation7 + $0x8] sm:$0xff]  ;;  %v653_v4 = vld [vmem:[#allocation7 + $0x98] sm:$0xff] }
 0x1dc   :  { %2865 = vmatprep.subr.bf16.mxu0 %v2864_v26  ;;  %v2946_v6 = vpack.c.bf16 %v635_v2, %v634_v0  ;;  %v2948_v7 = vpack.c.bf16 %v653_v4, %v652_v3  ;;  %v636_v8 = vld [vmem:[#allocation7 + $0x10] sm:$0xff]  ;;  %v637_v9 = vld [vmem:[#allocation7 + $0x18] sm:$0xff]  ;;  %v654_v10 = vld [vmem:[#allocation7 + $0xa0] sm:$0xff] }
 0x1dd   :  { %v410_v13 = vld [vmem:[#allocation2 + $0x150] sm:$0xff]  ;;  %2945 = vmatprep.subr.bf16.mxu1 %v2944_v1  ;;  %v413_v15 = vld [vmem:[#allocation2 + $0x168] sm:$0xff]  ;;  %v415_v16 = vld [vmem:[#allocation2 + $0x178] sm:$0xff]  ;;  %v2950_v17 = vpack.c.bf16 %v637_v9, %v636_v8 }
 0x1de   :  { %v655_v14 = vld [vmem:[#allocation7 + $0xa8] sm:$0xff]  ;;  %2947 = vmatpush3.bf16.msra.mxu1 %v2946_v6  ;;  %v638_v19 = vld [vmem:[#allocation7 + $0x20] sm:$0xff]  ;;  %v2890_v21 = vpack.c.bf16 %v410_v13, %v408_v12  ;;  %v656_v22 = vld [vmem:[#allocation7 + $0xb0] sm:$0xff]  ;;  %v2892_v24 = vpack.c.bf16 %v415_v16, %v413_v15 }
 0x1df   :  { %2867 = vmatpush1.bf16.msra.mxu0 %v2866_v31  ;;  %2949 = vmatprep.subr.bf16.mxu1 %v2948_v7  ;;  %v2952_v18 = vpack.c.bf16 %v655_v14, %v654_v10  ;;  %v639_v20 = vld [vmem:[#allocation7 + $0x28] sm:$0xff]  ;;  %v657_v23 = vld [vmem:[#allocation7 + $0xb8] sm:$0xff]  ;;  %v640_v31 = vld [vmem:[#allocation7 + $0x30] sm:$0xff] }
 0x1e0   :  { %2869 = vmatprep.subr.bf16.mxu0 %v2868_v32  ;;  %v412_v25 = vld [vmem:[#allocation2 + $0x160] sm:$0xff]  ;;  %v414_v26 = vld [vmem:[#allocation2 + $0x170] sm:$0xff]  ;;  %v417_v27 = vld [vmem:[#allocation2 + $0x188] sm:$0xff]  ;;  %v2954_v29 = vpack.c.bf16 %v639_v20, %v638_v19  ;;  %v2956_v30 = vpack.c.bf16 %v657_v23, %v656_v22 }
 0x1e1   :  { %v419_v28 = vld [vmem:[#allocation2 + $0x198] sm:$0xff]  ;;  %v2894_v33 = vpack.c.bf16 %v414_v26, %v412_v25  ;;  %v658_v34 = vld [vmem:[#allocation7 + $0xc0] sm:$0xff]  ;;  %v659_v35 = vld [vmem:[#allocation7 + $0xc8] sm:$0xff] }
 0x1e2   :  { %2951 = vmatpush3.bf16.msra.mxu1 %v2950_v17  ;;  %v641_v32 = vld [vmem:[#allocation7 + $0x38] sm:$0xff]  ;;  %v2896_v36 = vpack.c.bf16 %v419_v28, %v417_v27  ;;  %v421_v39 = vld [vmem:[#allocation2 + $0x1a8] sm:$0xff]  ;;  %v2960_v42 = vpack.c.bf16 %v659_v35, %v658_v34  ;;  %v660_v46 = vld [vmem:[#allocation7 + $0xd0] sm:$0xff]  ;;  %v4063_v34 = vmov 0.0  }
 0x1e3   :  { %2871 = vmatpush1.bf16.msra.mxu0 %v2870_v37  ;;  %2953 = vmatprep.subr.bf16.mxu1 %v2952_v18  ;;  %v416_v37 = vld [vmem:[#allocation2 + $0x180] sm:$0xff]  ;;  %v423_v40 = vld [vmem:[#allocation2 + $0x1b8] sm:$0xff]  ;;  %v2958_v41 = vpack.c.bf16 %v641_v32, %v640_v31  ;;  %v663_v59 = vld [vmem:[#allocation7 + $0xe8] sm:$0xff] }
 0x1e4   :  { %2873 = vmatprep.subr.bf16.mxu0 %v2872_v38  ;;  %v418_v38 = vld [vmem:[#allocation2 + $0x190] sm:$0xff]  ;;  %v642_v43 = vld [vmem:[#allocation7 + $0x40] sm:$0xff]  ;;  %v661_v47 = vld [vmem:[#allocation7 + $0xd8] sm:$0xff]  ;;  %v2900_v48 = vpack.c.bf16 %v423_v40, %v421_v39 }
 0x1e5   :  { %v420_v49 = vld [vmem:[#allocation2 + $0x1a0] sm:$0xff]  ;;  %v427_v52 = vld [vmem:[#allocation2 + $0x1d8] sm:$0xff]  ;;  %v2964_v54 = vpack.c.bf16 %v661_v47, %v660_v46  ;;  %v426_v62 = vld [vmem:[#allocation2 + $0x1d0] sm:$0xff] }
 0x1e6   :  { %2955 = vmatpush3.bf16.msra.mxu1 %v2954_v29  ;;  %v644_v55 = vld [vmem:[#allocation7 + $0x50] sm:$0xff]  ;;  %v424_v61 = vld [vmem:[#allocation2 + $0x1c0] sm:$0xff]  ;;  %v429_v63 = vld [vmem:[#allocation2 + $0x1e8] sm:$0xff] }
 0x1e7   :  { %2875 = vmatpush1.bf16.msra.mxu0 %v2874_v44  ;;  %2957 = vmatprep.subr.bf16.mxu1 %v2956_v30  ;;  %v643_v44 = vld [vmem:[#allocation7 + $0x48] sm:$0xff]  ;;  %v431_v0 = vld [vmem:[#allocation2 + $0x1f8] sm:$0xff]  ;;  %v646_v3 = vld [vmem:[#allocation7 + $0x60] sm:$0xff] }
 0x1e8   :  { %2877 = vmatprep.subr.bf16.mxu0 %v2876_v45  ;;  %v2898_v45 = vpack.c.bf16 %v418_v38, %v416_v37  ;;  %v2962_v53 = vpack.c.bf16 %v643_v44, %v642_v43  ;;  %v647_v4 = vld [vmem:[#allocation7 + $0x68] sm:$0xff]  ;;  %v2908_v6 = vpack.c.bf16 %v431_v0, %v429_v63  ;;  %v428_v7 = vld [vmem:[#allocation2 + $0x1e0] sm:$0xff]  ;;  %v435_v10 = vld [vmem:[#allocation2 + $0x218] sm:$0xff] }
 0x1e9   :  { %v430_v8 = vld [vmem:[#allocation2 + $0x1f0] sm:$0xff]  ;;  %v433_v9 = vld [vmem:[#allocation2 + $0x208] sm:$0xff]  ;;  %v432_v14 = vld [vmem:[#allocation2 + $0x200] sm:$0xff] }
 0x1ea   :  { %2959 = vmatpush3.bf16.msra.mxu1 %v2958_v41  ;;  %v2910_v12 = vpack.c.bf16 %v430_v8, %v428_v7  ;;  %v2912_v13 = vpack.c.bf16 %v435_v10, %v433_v9  ;;  %v434_v15 = vld [vmem:[#allocation2 + $0x210] sm:$0xff]  ;;  %v437_v16 = vld [vmem:[#allocation2 + $0x228] sm:$0xff]  ;;  %v439_v17 = vld [vmem:[#allocation2 + $0x238] sm:$0xff]  ;;  %v466_v10 = vlaneseq }
 0x1eb   :  { %2879 = vmatpush1.bf16.msra.mxu0 %v2878_v50  ;;  %v422_v50 = vld [vmem:[#allocation2 + $0x1b0] sm:$0xff]  ;;  %2961 = vmatprep.subr.bf16.mxu1 %v2960_v42  ;;  %v356_v18 = vld [vmem:[%s4808_s1] sm:$0xff]  ;;  %v2914_v19 = vpack.c.bf16 %v434_v15, %v432_v14  ;;  %v2916_v20 = vpack.c.bf16 %v439_v17, %v437_v16  ;;  %v443_v25 = vld [vmem:[#allocation2 + $0x258] sm:$0xff] }
 0x1ec   :  { %2881 = vmatprep.subr.bf16.mxu0 %v2880_v51  ;;  %v425_v51 = vld [vmem:[#allocation2 + $0x1c8] sm:$0xff]  ;;  %v2902_v57 = vpack.c.bf16 %v422_v50, %v420_v49  ;;  %v438_v22 = vld [vmem:[#allocation2 + $0x230] sm:$0xff]  ;;  %v360_v23 = vld [vmem:[%s4808_s1 + $0x20] sm:$0xff] }
 0x1ed   :  { %v2904_v60 = vpack.c.bf16 %v427_v52, %v425_v51  ;;  %v359_v27 = vld [vmem:[%s4808_s1 + $0x18] sm:$0xff]  ;;  %v440_v29 = vld [vmem:[#allocation2 + $0x240] sm:$0xff]  ;;  %v442_v30 = vld [vmem:[#allocation2 + $0x250] sm:$0xff] }
 0x1ee   :  { %2963 = vmatpush3.bf16.msra.mxu1 %v2962_v53  ;;  %v445_v31 = vld [vmem:[#allocation2 + $0x268] sm:$0xff]  ;;  %v447_v32 = vld [vmem:[#allocation2 + $0x278] sm:$0xff]  ;;  %v446_v37 = vld [vmem:[#allocation2 + $0x270] sm:$0xff] }
 0x1ef   :  { %2883 = vmatpush1.bf16.msra.mxu0 %v2882_v56  ;;  %v645_v56 = vld [vmem:[#allocation7 + $0x58] sm:$0xff]  ;;  %2965 = vmatprep.subr.bf16.mxu1 %v2964_v54  ;;  %v2924_v35 = vpack.c.bf16 %v447_v32, %v445_v31  ;;  %v449_v38 = vld [vmem:[#allocation2 + $0x288] sm:$0xff]  ;;  %v450_v43 = vld [vmem:[#allocation2 + $0x290] sm:$0xff] }
 0x1f0   :  { %2885 = vmatprep.subr.bf16.mxu0 %v2884_v58  ;;  %v662_v58 = vld [vmem:[#allocation7 + $0xe0] sm:$0xff]  ;;  %v2966_v1 = vpack.c.bf16 %v645_v56, %v644_v55  ;;  %v451_v39 = vld [vmem:[#allocation2 + $0x298] sm:$0xff]  ;;  %v454_v49 = vld [vmem:[#allocation2 + $0x2b0] sm:$0xff] }
 0x1f1   :  { %v2968_v2 = vpack.c.bf16 %v663_v59, %v662_v58  ;;  %v2928_v41 = vpack.c.bf16 %v451_v39, %v449_v38  ;;  %v448_v42 = vld [vmem:[#allocation2 + $0x280] sm:$0xff]  ;;  %v453_v44 = vld [vmem:[#allocation2 + $0x2a8] sm:$0xff]  ;;  %v459_v51 = vld [vmem:[#allocation2 + $0x2d8] sm:$0xff] }
 0x1f2   :  { %2967 = vmatpush3.bf16.msra.mxu1 %v2966_v1  ;;  %v2930_v46 = vpack.c.bf16 %v450_v43, %v448_v42  ;;  %v457_v50 = vld [vmem:[#allocation2 + $0x2c8] sm:$0xff]  ;;  %v456_v54 = vld [vmem:[#allocation2 + $0x2c0] sm:$0xff]  ;;  %v458_v55 = vld [vmem:[#allocation2 + $0x2d0] sm:$0xff] }
 0x1f3   :  { %2887 = vmatpush1.bf16.msra.mxu0 %v2886_v5  ;;  %v2906_v5 = vpack.c.bf16 %v426_v62, %v424_v61  ;;  %2969 = vmatprep.subr.bf16.mxu1 %v2968_v2  ;;  %v2936_v53 = vpack.c.bf16 %v459_v51, %v457_v50  ;;  %v461_v56 = vld [vmem:[#allocation2 + $0x2e8] sm:$0xff]  ;;  %v2938_v58 = vpack.c.bf16 %v458_v55, %v456_v54  ;;  %v462_v61 = vld [vmem:[#allocation2 + $0x2f0] sm:$0xff]  ;;  %v665_v2 = vld [vmem:[#allocation7 + $0xf8] sm:$0xff] }
 0x1f4   :  { %2889 = vmatprep.subr.bf16.mxu0 %v2888_v11  ;;  %v2970_v11 = vpack.c.bf16 %v647_v4, %v646_v3  ;;  %v358_v63 = vld [vmem:[%s4808_s1 + $0x10] sm:$0xff]  ;;  %v361_v0 = vld [vmem:[%s4808_s1 + $0x28] sm:$0xff]  ;;  %v753_v8 = vld [vmem:[#allocation10 + $0x18] sm:$0xff] }
 0x1f5   :  { %v664_v1 = vld [vmem:[#allocation7 + $0xf0] sm:$0xff]  ;;  %v754_v32 = vld [vmem:[#allocation10 + $0x20] sm:$0xff] }
 0x1f6   :  { %2971 = vmatpush3.bf16.msra.mxu1 %v2970_v11  ;;  %v2972_v3 = vpack.c.bf16 %v665_v2, %v664_v1  ;;  %v648_v4 = vld [vmem:[#allocation7 + $0x70] sm:$0xff]  ;;  %v4526_v11 = vshrl.u32 %v466_v10, 7  ;;  %v758_v42 = vld [vmem:[#allocation10 + $0x40] sm:$0xff] }
 0x1f7   :  { %2891 = vmatpush1.bf16.msra.mxu0 %v2890_v21  ;;  %v436_v21 = vld [vmem:[#allocation2 + $0x220] sm:$0xff]  ;;  %v751_v7 = vld [vmem:[#allocation10 + $0x8] sm:$0xff]  ;;  %v760_v43 = vld [vmem:[#allocation10 + $0x50] sm:$0xff] }
 0x1f8   :  { %2893 = vmatprep.subr.bf16.mxu0 %v2892_v24  ;;  %v441_v24 = vld [vmem:[#allocation2 + $0x248] sm:$0xff]  ;;  %v2918_v26 = vpack.c.bf16 %v438_v22, %v436_v21  ;;  %2973 = vmatprep.subr.bf16.mxu1 %v2972_v3  ;;  %v2976_v9 = vpack.c.bf16 %v753_v8, %v751_v7  ;;  %v4532_v14 = vsub.s32 1, %v4526_v11  ;;  %v752_v21 = vld [vmem:[#allocation10 + $0x10] sm:$0xff] }
 0x1f9   :  { %v2920_v28 = vpack.c.bf16 %v443_v25, %v441_v24  ;;  %v757_v24 = vld [vmem:[#allocation10 + $0x38] sm:$0xff]  ;;  %v764_v50 = vld [vmem:[#allocation10 + $0x70] sm:$0xff]  ;;  %v767_v51 = vld [vmem:[#allocation10 + $0x88] sm:$0xff] }
 0x1fa   :  { %v766_v55 = vld [vmem:[#allocation10 + $0x80] sm:$0xff]  ;;  %v780_v10 = vld [vmem:[#allocation10 + $0xf0] sm:$0xff] }
 0x1fb   :  { %2895 = vmatpush1.bf16.msra.mxu0 %v2894_v33  ;;  %v2922_v33 = vpack.c.bf16 %v442_v30, %v440_v29  ;;  %v774_v3 = vld [vmem:[#allocation10 + $0xc0] sm:$0xff] }
 0x1fc   :  { %2897 = vmatprep.subr.bf16.mxu0 %v2896_v36  ;;  %v444_v36 = vld [vmem:[#allocation2 + $0x260] sm:$0xff] }
 0x1fd   :  { %v2926_v40 = vpack.c.bf16 %v446_v37, %v444_v36  ;;  %v759_v36 = vld [vmem:[#allocation10 + $0x48] sm:$0xff]  ;;  %v761_v37 = vld [vmem:[#allocation10 + $0x58] sm:$0xff] }
 0x1ff   :  { %2899 = vmatpush1.bf16.msra.mxu0 %v2898_v45  ;;  %v455_v45 = vld [vmem:[#allocation2 + $0x2b8] sm:$0xff] }
 0x200   :  { %2901 = vmatprep.subr.bf16.mxu0 %v2900_v48  ;;  %v2932_v47 = vpack.c.bf16 %v455_v45, %v453_v44  ;;  %v452_v48 = vld [vmem:[#allocation2 + $0x2a0] sm:$0xff]  ;;  %v363_v44 = vld [vmem:[%s4809_s29 + $0x8] sm:$0xff] }
 0x201   :  { %v2934_v52 = vpack.c.bf16 %v454_v49, %v452_v48  ;;  %v763_v45 = vld [vmem:[#allocation10 + $0x68] sm:$0xff]  ;;  %v762_v49 = vld [vmem:[#allocation10 + $0x60] sm:$0xff] }
 0x203   :  { %2903 = vmatpush1.bf16.msra.mxu0 %v2902_v57  ;;  %v463_v57 = vld [vmem:[#allocation2 + $0x2f8] sm:$0xff] }
 0x204   :  { %2905 = vmatprep.subr.bf16.mxu0 %v2904_v60  ;;  %v2940_v59 = vpack.c.bf16 %v463_v57, %v461_v56  ;;  %v460_v60 = vld [vmem:[#allocation2 + $0x2e0] sm:$0xff]  ;;  %v768_v56 = vld [vmem:[#allocation10 + $0x90] sm:$0xff]  ;;  %v771_v57 = vld [vmem:[#allocation10 + $0xa8] sm:$0xff] }
 0x205   :  { %v2942_v62 = vpack.c.bf16 %v462_v61, %v460_v60  ;;  %v770_v61 = vld [vmem:[#allocation10 + $0xa0] sm:$0xff] }
 0x207   :  { %2907 = vmatpush1.bf16.msra.mxu0 %v2906_v5  ;;  %v649_v5 = vld [vmem:[#allocation7 + $0x78] sm:$0xff] }
 0x208   :  { %2909 = vmatprep.subr.bf16.mxu0 %v2908_v6  ;;  %v2974_v6 = vpack.c.bf16 %v649_v5, %v648_v4  ;;  %v776_v4 = vld [vmem:[#allocation10 + $0xd0] sm:$0xff]  ;;  %v779_v5 = vld [vmem:[#allocation10 + $0xe8] sm:$0xff] }
 0x209   :  { %v3002_v7 = vpack.c.bf16 %v776_v4, %v774_v3  ;;  %v814_v3 = vld [vmem:[#allocation10 + $0x200] sm:$0xff]  ;;  %v816_v4 = vld [vmem:[#allocation10 + $0x210] sm:$0xff] }
 0x20a   :  { %2975 = vmatpush3.bf16.msra.mxu1 %v2974_v6  ;;  %v781_v6 = vld [vmem:[#allocation10 + $0xf8] sm:$0xff] }
 0x20b   :  { %2911 = vmatpush1.bf16.msra.mxu0 %v2910_v12  ;;  %2977 = vmatprep.subr.bf16.mxu1 %v2976_v9  ;;  %v4529_v12 = vsub.s32 0, %v4526_v11  ;;  %v3004_v8 = vpack.c.bf16 %v781_v6, %v779_v5  ;;  %v778_v9 = vld [vmem:[#allocation10 + $0xe0] sm:$0xff]  ;;  %v819_v5 = vld [vmem:[#allocation10 + $0x228] sm:$0xff]  ;;  %v821_v6 = vld [vmem:[#allocation10 + $0x238] sm:$0xff] }
 0x20c   :  { %2913 = vmatprep.subr.bf16.mxu0 %v2912_v13  ;;  %v464_v13 = vld [vmem:[#allocation5] sm:$0x3] }
 0x20d   :  { %v469_v15 = vrot.slane %v464_v13, %v4529_v12  ;;  %v473_v16 = vrot.slane %v464_v13, %v4532_v14  ;;  %v783_v13 = vld [vmem:[#allocation10 + $0x108] sm:$0xff] }
 0x20e   :  { %541 = vmatmul.mubr.f32.vlgmr.msra.gmra.mrb[0].mxu0 %v356_v18 }
 0x20f   :  { %2915 = vmatpush1.bf16.msra.mxu0 %v2914_v19  ;;  %546 = vmatprep.mubr.f32.mxu0 %v360_v23  ;;  %v755_v23 = vld [vmem:[#allocation10 + $0x28] sm:$0xff] }
 0x210   :  { %2917 = vmatprep.subr.bf16.mxu0 %v2916_v20  ;;  %v750_v20 = vld [vmem:[#allocation10] sm:$0xff]  ;;  %v2980_v31 = vpack.c.bf16 %v757_v24, %v755_v23 }
 0x211   :  { %v786_v24 = vld [vmem:[#allocation10 + $0x120] sm:$0xff] }
 0x212   :  { %547 = vmatmul.mubr.f32.gmra.mrb[2].mxu0 %v359_v27  ;;  %v2978_v27 = vpack.c.bf16 %v752_v21, %v750_v20  ;;  %v787_v20 = vld [vmem:[#allocation10 + $0x128] sm:$0xff]  ;;  %v789_v21 = vld [vmem:[#allocation10 + $0x138] sm:$0xff] }
 0x213   :  { %2919 = vmatpush1.bf16.msra.mxu0 %v2918_v26  ;;  %617 = vmatprep.mubr.f32.mxu0 %v4063_v34  ;;  %v3012_v23 = vpack.c.bf16 %v789_v21, %v787_v20  ;;  %v822_v21 = vld [vmem:[#allocation10 + $0x240] sm:$0xff] }
 0x214   :  { %2921 = vmatprep.subr.bf16.mxu0 %v2920_v28 }
 0x217   :  { %2923 = vmatpush1.bf16.msra.mxu0 %v2922_v33  ;;  %v756_v33 = vld [vmem:[#allocation10 + $0x30] sm:$0xff] }
 0x218   :  { %2925 = vmatprep.subr.bf16.mxu0 %v2924_v35  ;;  %v2982_v39 = vpack.c.bf16 %v756_v33, %v754_v32  ;;  %v795_v32 = vld [vmem:[#allocation10 + $0x168] sm:$0xff]  ;;  %v797_v33 = vld [vmem:[#allocation10 + $0x178] sm:$0xff] }
 0x21b   :  { %2927 = vmatpush1.bf16.msra.mxu0 %v2926_v40 }
 0x21c   :  { %2929 = vmatprep.subr.bf16.mxu0 %v2928_v41  ;;  %v2984_v41 = vpack.c.bf16 %v761_v37, %v759_v36  ;;  %v3020_v36 = vpack.c.bf16 %v797_v33, %v795_v32  ;;  %v794_v37 = vld [vmem:[#allocation10 + $0x160] sm:$0xff] }
 0x21d   :  { %v830_v33 = vld [vmem:[#allocation10 + $0x280] sm:$0xff] }
 0x21f   :  { %2931 = vmatpush1.bf16.msra.mxu0 %v2930_v46  ;;  %v765_v46 = vld [vmem:[#allocation10 + $0x78] sm:$0xff] }
 0x220   :  { %2933 = vmatprep.subr.bf16.mxu0 %v2932_v47  ;;  %v2986_v47 = vpack.c.bf16 %v760_v43, %v758_v42  ;;  %v2988_v48 = vpack.c.bf16 %v765_v46, %v763_v45  ;;  %v798_v43 = vld [vmem:[#allocation10 + $0x180] sm:$0xff]  ;;  %v803_v45 = vld [vmem:[#allocation10 + $0x1a8] sm:$0xff]  ;;  %v805_v46 = vld [vmem:[#allocation10 + $0x1b8] sm:$0xff] }
 0x223   :  { %2935 = vmatpush1.bf16.msra.mxu0 %v2934_v52  ;;  %v769_v52 = vld [vmem:[#allocation10 + $0x98] sm:$0xff] }
 0x224   :  { %2937 = vmatprep.subr.bf16.mxu0 %v2936_v53  ;;  %v2990_v53 = vpack.c.bf16 %v764_v50, %v762_v49  ;;  %v2992_v54 = vpack.c.bf16 %v769_v52, %v767_v51  ;;  %v802_v49 = vld [vmem:[#allocation10 + $0x1a0] sm:$0xff]  ;;  %v804_v50 = vld [vmem:[#allocation10 + $0x1b0] sm:$0xff]  ;;  %v807_v51 = vld [vmem:[#allocation10 + $0x1c8] sm:$0xff] }
 0x225   :  { %v809_v52 = vld [vmem:[#allocation10 + $0x1d8] sm:$0xff] }
 0x227   :  { %2939 = vmatpush1.bf16.msra.mxu0 %v2938_v58  ;;  %v773_v58 = vld [vmem:[#allocation10 + $0xb8] sm:$0xff] }
 0x228   :  { %2941 = vmatprep.subr.bf16.mxu0 %v2940_v59  ;;  %v2994_v59 = vpack.c.bf16 %v768_v56, %v766_v55  ;;  %v2996_v60 = vpack.c.bf16 %v773_v58, %v771_v57  ;;  %v806_v55 = vld [vmem:[#allocation10 + $0x1c0] sm:$0xff]  ;;  %v808_v56 = vld [vmem:[#allocation10 + $0x1d0] sm:$0xff]  ;;  %v811_v57 = vld [vmem:[#allocation10 + $0x1e8] sm:$0xff] }
 0x229   :  { %v813_v58 = vld [vmem:[#allocation10 + $0x1f8] sm:$0xff] }
 0x22b   :  { %2943 = vmatpush1.bf16.msra.mxu0 %v2942_v62  ;;  %v772_v62 = vld [vmem:[#allocation10 + $0xb0] sm:$0xff] }
 0x22c   :  { %v2998_v1 = vpack.c.bf16 %v772_v62, %v770_v61  ;;  %v810_v61 = vld [vmem:[#allocation10 + $0x1e0] sm:$0xff]  ;;  %v812_v62 = vld [vmem:[#allocation10 + $0x1f0] sm:$0xff] }
 0x22e   :  { %618 = vmatmul.mubr.f32.vlgmr.msra.gmra.mrb[0].mxu0 %v358_v63  ;;  %v775_v63 = vld [vmem:[#allocation10 + $0xc8] sm:$0xff] }
 0x22f   :  { %623 = vmatprep.mubr.f32.mxu0 %v4063_v34 }
 0x232   :  { %624 = vmatmul.mubr.f32.gmra.mrb[2].mxu0 %v361_v0  ;;  %v777_v0 = vld [vmem:[#allocation10 + $0xd8] sm:$0xff] }
 0x233   :  { %v3000_v2 = vpack.c.bf16 %v777_v0, %v775_v63  ;;  %v815_v63 = vld [vmem:[#allocation10 + $0x208] sm:$0xff]  ;;  %v817_v0 = vld [vmem:[#allocation10 + $0x218] sm:$0xff] }
 0x301   :  { %v619_v17 = vpop.f32.mrb[0].mxu0 }
 0x302   :  { %v3456_v18 = vadd.f32 %v619_v17, %v469_v15  ;;  %v621_v19 = vpop.f32.mrb[1].mxu0 }
 0x303   :  { %v3457_v22 = vadd.f32 %v621_v19, %v473_v16  ;;  %v784_v19 = vld [vmem:[#allocation10 + $0x110] sm:$0xff] }
 0x304   :  { %v630_v28 = vmax.f32 %v3456_v18, 0.0  ;;  %v782_v18 = vld [vmem:[#allocation10 + $0x100] sm:$0xff] }
 0x305   :  { %v625_v25 = vpop.f32.mrb[2].mxu0  ;;  %v631_v26 = vmax.f32 %v3457_v22, 0.0  ;;  %v3010_v22 = vpack.c.bf16 %v784_v19, %v782_v18  ;;  %v365_v19 = vld [vmem:[%s4809_s29 + $0x18] sm:$0xff] }
 0x306   :  { %v3458_v29 = vadd.f32 %v625_v25, %v469_v15  ;;  %v627_v30 = vpop.f32.mrb[3].mxu0  ;;  %v785_v15 = vld [vmem:[#allocation10 + $0x118] sm:$0xff]  ;;  %v788_v25 = vld [vmem:[#allocation10 + $0x130] sm:$0xff] }
 0x307   :  { %v3459_v35 = vadd.f32 %v627_v30, %v473_v16  ;;  %737 = vmatprep.mubr.f32.mxu1 %v631_v26  ;;  %v3006_v16 = vpack.c.bf16 %v780_v10, %v778_v9  ;;  %v3008_v17 = vpack.c.bf16 %v785_v15, %v783_v13  ;;  %v791_v26 = vld [vmem:[#allocation10 + $0x148] sm:$0xff]  ;;  %v790_v30 = vld [vmem:[#allocation10 + $0x140] sm:$0xff]  ;;  %v3044_v9 = vpack.c.bf16 %v821_v6, %v819_v5  ;;  %v820_v13 = vld [vmem:[#allocation10 + $0x230] sm:$0xff] }
 0x308   :  { %738 = vmatmul.mubr.f32.vlgmr.msra.gmra.mrb[0].mxu1 %v630_v28  ;;  %v632_v40 = vmax.f32 %v3458_v29, 0.0  ;;  %v3014_v28 = vpack.c.bf16 %v788_v25, %v786_v24  ;;  %v818_v10 = vld [vmem:[#allocation10 + $0x220] sm:$0xff]  ;;  %v829_v24 = vld [vmem:[#allocation10 + $0x278] sm:$0xff] }
 0x309   :  { %v633_v38 = vmax.f32 %v3459_v35, 0.0  ;;  %2979 = vmatpush1.bf16.msra.mxu1 %v2978_v27  ;;  %v793_v27 = vld [vmem:[#allocation10 + $0x158] sm:$0xff]  ;;  %v3046_v18 = vpack.c.bf16 %v820_v13, %v818_v10  ;;  %v367_v5 = vld [vmem:[%s4809_s29 + $0x28] sm:$0xff] }
 0x30a   :  { %2981 = vmatprep.subr.bf16.mxu1 %v2980_v31  ;;  %v3016_v29 = vpack.c.bf16 %v793_v27, %v791_v26  ;;  %v792_v31 = vld [vmem:[#allocation10 + $0x150] sm:$0xff]  ;;  %v366_v15 = vld [vmem:[%s4809_s29 + $0x20] sm:$0xff] }
 0x30b   :  { %742 = vmatprep.mubr.f32.mxu1 %v633_v38  ;;  %v3018_v35 = vpack.c.bf16 %v792_v31, %v790_v30  ;;  %v796_v38 = vld [vmem:[#allocation10 + $0x170] sm:$0xff]  ;;  %v826_v27 = vld [vmem:[#allocation10 + $0x260] sm:$0xff]  ;;  %v833_v30 = vld [vmem:[#allocation10 + $0x298] sm:$0xff] }
 0x30c   :  { %743 = vmatmul.mubr.f32.gmra.mrb[2].mxu1 %v632_v40  ;;  %v801_v40 = vld [vmem:[#allocation10 + $0x198] sm:$0xff] }
 0x30d   :  { %2983 = vmatpush1.bf16.msra.mxu1 %v2982_v39  ;;  %922 = vmatprep.mubr.f32.mxu1 %v363_v44  ;;  %v799_v39 = vld [vmem:[#allocation10 + $0x188] sm:$0xff]  ;;  %v800_v44 = vld [vmem:[#allocation10 + $0x190] sm:$0xff]  ;;  %v1039_v13 = vld [vmem:[#allocation13 + $0xb8] sm:$0xff] }
 0x30e   :  { %2985 = vmatprep.subr.bf16.mxu1 %v2984_v41  ;;  %v3022_v41 = vpack.c.bf16 %v796_v38, %v794_v37  ;;  %v3024_v42 = vpack.c.bf16 %v801_v40, %v799_v39  ;;  %v837_v37 = vld [vmem:[#allocation10 + $0x2b8] sm:$0xff]  ;;  %v834_v40 = vld [vmem:[#allocation10 + $0x2a0] sm:$0xff] }
 0x30f   :  { %v1038_v10 = vld [vmem:[#allocation13 + $0xb0] sm:$0xff] }
 0x311   :  { %2987 = vmatpush1.bf16.msra.mxu1 %v2986_v47  ;;  %v3026_v47 = vpack.c.bf16 %v800_v44, %v798_v43  ;;  %v841_v43 = vld [vmem:[#allocation10 + $0x2d8] sm:$0xff] }
 0x312   :  { %2989 = vmatprep.subr.bf16.mxu1 %v2988_v48  ;;  %v3028_v48 = vpack.c.bf16 %v805_v46, %v803_v45  ;;  %v838_v46 = vld [vmem:[#allocation10 + $0x2c0] sm:$0xff] }
 0x315   :  { %2991 = vmatpush1.bf16.msra.mxu1 %v2990_v53  ;;  %v3030_v53 = vpack.c.bf16 %v804_v50, %v802_v49  ;;  %v845_v49 = vld [vmem:[#allocation10 + $0x2f8] sm:$0xff] }
 0x316   :  { %2993 = vmatprep.subr.bf16.mxu1 %v2992_v54  ;;  %v3032_v54 = vpack.c.bf16 %v809_v52, %v807_v51  ;;  %v842_v52 = vld [vmem:[#allocation10 + $0x2e0] sm:$0xff] }
 0x319   :  { %2995 = vmatpush1.bf16.msra.mxu1 %v2994_v59  ;;  %v3034_v59 = vpack.c.bf16 %v808_v56, %v806_v55  ;;  %v364_v55 = vld [vmem:[%s4809_s29 + $0x10] sm:$0xff]  ;;  %v1032_v56 = vld [vmem:[#allocation13 + $0x80] sm:$0xff] }
 0x31a   :  { %2997 = vmatprep.subr.bf16.mxu1 %v2996_v60  ;;  %v3036_v60 = vpack.c.bf16 %v813_v58, %v811_v57  ;;  %v1033_v57 = vld [vmem:[#allocation13 + $0x88] sm:$0xff]  ;;  %v1016_v58 = vld [vmem:[#allocation13] sm:$0xff] }
 0x31d   :  { %2999 = vmatpush1.bf16.msra.mxu1 %v2998_v1  ;;  %v3038_v1 = vpack.c.bf16 %v812_v62, %v810_v61  ;;  %v1034_v61 = vld [vmem:[#allocation13 + $0x90] sm:$0xff]  ;;  %v1035_v62 = vld [vmem:[#allocation13 + $0x98] sm:$0xff] }
 0x31e   :  { %3001 = vmatprep.subr.bf16.mxu1 %v3000_v2  ;;  %v3040_v2 = vpack.c.bf16 %v817_v0, %v815_v63  ;;  %v3076_v0 = vpack.c.bf16 %v1035_v62, %v1034_v61  ;;  %v1150_v61 = vld [vmem:[#allocation17 + $0x10] sm:$0xff]  ;;  %v1151_v62 = vld [vmem:[#allocation17 + $0x18] sm:$0xff] }
 0x321   :  { %3003 = vmatpush1.bf16.msra.mxu1 %v3002_v7  ;;  %v362_v7 = vld [vmem:[%s4809_s29] sm:$0xff] }
 0x322   :  { %3005 = vmatprep.subr.bf16.mxu1 %v3004_v8  ;;  %v3042_v8 = vpack.c.bf16 %v816_v4, %v814_v3  ;;  %v1036_v3 = vld [vmem:[#allocation13 + $0xa0] sm:$0xff]  ;;  %v1037_v4 = vld [vmem:[#allocation13 + $0xa8] sm:$0xff] }
 0x325   :  { %3007 = vmatpush1.bf16.msra.mxu1 %v3006_v16  ;;  %v823_v16 = vld [vmem:[#allocation10 + $0x248] sm:$0xff] }
 0x326   :  { %3009 = vmatprep.subr.bf16.mxu1 %v3008_v17  ;;  %v825_v17 = vld [vmem:[#allocation10 + $0x258] sm:$0xff] }
 0x327   :  { %v3048_v20 = vpack.c.bf16 %v825_v17, %v823_v16  ;;  %v3084_v16 = vpack.c.bf16 %v1039_v13, %v1038_v10  ;;  %v1022_v17 = vld [vmem:[#allocation13 + $0x30] sm:$0xff] }
 0x328   :  { %v1154_v13 = vld [vmem:[#allocation17 + $0x30] sm:$0xff] }
 0x329   :  { %3011 = vmatpush1.bf16.msra.mxu1 %v3010_v22  ;;  %v824_v22 = vld [vmem:[#allocation10 + $0x250] sm:$0xff] }
 0x32a   :  { %3013 = vmatprep.subr.bf16.mxu1 %v3012_v23  ;;  %v827_v23 = vld [vmem:[#allocation10 + $0x268] sm:$0xff]  ;;  %v3050_v25 = vpack.c.bf16 %v824_v22, %v822_v21 }
 0x32b   :  { %v3052_v26 = vpack.c.bf16 %v829_v24, %v827_v23  ;;  %v1024_v23 = vld [vmem:[#allocation13 + $0x40] sm:$0xff]  ;;  %v1025_v24 = vld [vmem:[#allocation13 + $0x48] sm:$0xff] }
 0x32d   :  { %3015 = vmatpush1.bf16.msra.mxu1 %v3014_v28  ;;  %v828_v28 = vld [vmem:[#allocation10 + $0x270] sm:$0xff] }
 0x32e   :  { %3017 = vmatprep.subr.bf16.mxu1 %v3016_v29  ;;  %v831_v29 = vld [vmem:[#allocation10 + $0x288] sm:$0xff]  ;;  %v3054_v31 = vpack.c.bf16 %v828_v28, %v826_v27  ;;  %v3090_v27 = vpack.c.bf16 %v1025_v24, %v1024_v23 }
 0x32f   :  { %v3056_v32 = vpack.c.bf16 %v833_v30, %v831_v29  ;;  %v1026_v29 = vld [vmem:[#allocation13 + $0x50] sm:$0xff]  ;;  %v1027_v30 = vld [vmem:[#allocation13 + $0x58] sm:$0xff]  ;;  %v1160_v23 = vld [vmem:[#allocation17 + $0x60] sm:$0xff] }
 0x330   :  { %v1161_v24 = vld [vmem:[#allocation17 + $0x68] sm:$0xff] }
 0x331   :  { %3019 = vmatpush1.bf16.msra.mxu1 %v3018_v35  ;;  %v832_v35 = vld [vmem:[#allocation10 + $0x290] sm:$0xff] }
 0x332   :  { %3021 = vmatprep.subr.bf16.mxu1 %v3020_v36  ;;  %v835_v36 = vld [vmem:[#allocation10 + $0x2a8] sm:$0xff]  ;;  %v3058_v38 = vpack.c.bf16 %v832_v35, %v830_v33  ;;  %v3094_v33 = vpack.c.bf16 %v1027_v30, %v1026_v29 }
 0x333   :  { %v3060_v39 = vpack.c.bf16 %v837_v37, %v835_v36  ;;  %v1028_v36 = vld [vmem:[#allocation13 + $0x60] sm:$0xff]  ;;  %v1029_v37 = vld [vmem:[#allocation13 + $0x68] sm:$0xff] }
 0x334   :  { %v1132_v29 = vld [vmem:[#allocation16] sm:$0xff]  ;;  %v1133_v30 = vld [vmem:[#allocation16 + $0x8] sm:$0xff] }
 0x335   :  { %3023 = vmatpush1.bf16.msra.mxu1 %v3022_v41  ;;  %v836_v41 = vld [vmem:[#allocation10 + $0x2b0] sm:$0xff] }
 0x336   :  { %3025 = vmatprep.subr.bf16.mxu1 %v3024_v42  ;;  %v839_v42 = vld [vmem:[#allocation10 + $0x2c8] sm:$0xff]  ;;  %v3062_v44 = vpack.c.bf16 %v836_v41, %v834_v40  ;;  %v1047_v40 = vld [vmem:[#allocation13 + $0xf8] sm:$0xff] }
 0x337   :  { %v3064_v45 = vpack.c.bf16 %v841_v43, %v839_v42  ;;  %v1030_v42 = vld [vmem:[#allocation13 + $0x70] sm:$0xff]  ;;  %v1031_v43 = vld [vmem:[#allocation13 + $0x78] sm:$0xff] }
 0x339   :  { %3027 = vmatpush1.bf16.msra.mxu1 %v3026_v47  ;;  %v840_v47 = vld [vmem:[#allocation10 + $0x2d0] sm:$0xff] }
 0x33a   :  { %3029 = vmatprep.subr.bf16.mxu1 %v3028_v48  ;;  %v843_v48 = vld [vmem:[#allocation10 + $0x2e8] sm:$0xff]  ;;  %v3066_v50 = vpack.c.bf16 %v840_v47, %v838_v46 }
 0x33b   :  { %v3068_v51 = vpack.c.bf16 %v845_v49, %v843_v48  ;;  %v1149_v46 = vld [vmem:[#allocation17 + $0x8] sm:$0xff] }
 0x33d   :  { %3031 = vmatpush1.bf16.msra.mxu1 %v3030_v53  ;;  %v844_v53 = vld [vmem:[#allocation10 + $0x2f0] sm:$0xff] }
 0x33e   :  { %3033 = vmatprep.subr.bf16.mxu1 %v3032_v54  ;;  %v3070_v54 = vpack.c.bf16 %v844_v53, %v842_v52 }
 0x341   :  { %3035 = vmatpush1.bf16.msra.mxu1 %v3034_v59  ;;  %v3072_v59 = vpack.c.bf16 %v1033_v57, %v1032_v56 }
 0x342   :  { %3037 = vmatprep.subr.bf16.mxu1 %v3036_v60  ;;  %v1017_v60 = vld [vmem:[#allocation13 + $0x8] sm:$0xff] }
 0x343   :  { %v3074_v63 = vpack.c.bf16 %v1017_v60, %v1016_v58  ;;  %3073 = vmatprep.subr.bf16.mxu0 %v3072_v59 }
 0x345   :  { %3039 = vmatpush1.bf16.msra.mxu1 %v3038_v1  ;;  %v1018_v1 = vld [vmem:[#allocation13 + $0x10] sm:$0xff]  ;;  %3075 = vmatpush3.bf16.msra.mxu0 %v3074_v63 }
 0x346   :  { %3041 = vmatprep.subr.bf16.mxu1 %v3040_v2  ;;  %v1019_v2 = vld [vmem:[#allocation13 + $0x18] sm:$0xff]  ;;  %3077 = vmatprep.subr.bf16.mxu0 %v3076_v0 }
 0x347   :  { %v3078_v6 = vpack.c.bf16 %v1019_v2, %v1018_v1 }
 0x348   :  { %923 = vmatmul.mubr.f32.vlgmr.msra.gmra.mrb[4].mxu1 %v362_v7  ;;  %v3080_v7 = vpack.c.bf16 %v1037_v4, %v1036_v3  ;;  %v3108_v4 = vpack.c.bf16 %v1151_v62, %v1150_v61 }
 0x349   :  { %3043 = vmatpush1.bf16.msra.mxu1 %v3042_v8  ;;  %928 = vmatprep.mubr.f32.mxu1 %v366_v15  ;;  %v1020_v8 = vld [vmem:[#allocation13 + $0x20] sm:$0xff] }
 0x34a   :  { %3045 = vmatprep.subr.bf16.mxu1 %v3044_v9  ;;  %v1021_v9 = vld [vmem:[#allocation13 + $0x28] sm:$0xff]  ;;  %3079 = vmatpush3.bf16.msra.mxu0 %v3078_v6 }
 0x34b   :  { %v3082_v15 = vpack.c.bf16 %v1021_v9, %v1020_v8  ;;  %3081 = vmatprep.subr.bf16.mxu0 %v3080_v7  ;;  %v1152_v6 = vld [vmem:[#allocation17 + $0x20] sm:$0xff]  ;;  %v1153_v7 = vld [vmem:[#allocation17 + $0x28] sm:$0xff] }
 0x34c   :  { %929 = vmatmul.mubr.f32.gmra.mrb[6].mxu1 %v365_v19  ;;  %v1040_v19 = vld [vmem:[#allocation13 + $0xc0] sm:$0xff]  ;;  %v3112_v10 = vpack.c.bf16 %v1153_v7, %v1152_v6 }
 0x34d   :  { %3047 = vmatpush1.bf16.msra.mxu1 %v3046_v18  ;;  %999 = vmatprep.mubr.f32.mxu1 %v4063_v34  ;;  %v1023_v18 = vld [vmem:[#allocation13 + $0x38] sm:$0xff] }
 0x34e   :  { %3049 = vmatprep.subr.bf16.mxu1 %v3048_v20  ;;  %v1041_v20 = vld [vmem:[#allocation13 + $0xc8] sm:$0xff]  ;;  %3083 = vmatpush3.bf16.msra.mxu0 %v3082_v15  ;;  %v3086_v21 = vpack.c.bf16 %v1023_v18, %v1022_v17  ;;  %v1155_v15 = vld [vmem:[#allocation17 + $0x38] sm:$0xff] }
 0x34f   :  { %3085 = vmatprep.subr.bf16.mxu0 %v3084_v16  ;;  %v3088_v22 = vpack.c.bf16 %v1041_v20, %v1040_v19  ;;  %v3116_v16 = vpack.c.bf16 %v1155_v15, %v1154_v13  ;;  %v1156_v17 = vld [vmem:[#allocation17 + $0x40] sm:$0xff]  ;;  %v1157_v18 = vld [vmem:[#allocation17 + $0x48] sm:$0xff]  ;;  %v1158_v20 = vld [vmem:[#allocation17 + $0x50] sm:$0xff] }
 0x350   :  { %v3120_v19 = vpack.c.bf16 %v1157_v18, %v1156_v17  ;;  %v1138_v15 = vld [vmem:[#allocation16 + $0x30] sm:$0xff]  ;;  %v1141_v18 = vld [vmem:[#allocation16 + $0x48] sm:$0xff] }
 0x351   :  { %3051 = vmatpush1.bf16.msra.mxu1 %v3050_v25  ;;  %v1042_v25 = vld [vmem:[#allocation13 + $0xd0] sm:$0xff] }
 0x352   :  { %3053 = vmatprep.subr.bf16.mxu1 %v3052_v26  ;;  %v1043_v26 = vld [vmem:[#allocation13 + $0xd8] sm:$0xff]  ;;  %3087 = vmatpush3.bf16.msra.mxu0 %v3086_v21 }
 0x353   :  { %3089 = vmatprep.subr.bf16.mxu0 %v3088_v22  ;;  %v3092_v28 = vpack.c.bf16 %v1043_v26, %v1042_v25  ;;  %v1159_v21 = vld [vmem:[#allocation17 + $0x58] sm:$0xff]  ;;  %v3128_v25 = vpack.c.bf16 %v1161_v24, %v1160_v23  ;;  %v1162_v26 = vld [vmem:[#allocation17 + $0x70] sm:$0xff]  ;;  %v1144_v23 = vld [vmem:[#allocation16 + $0x60] sm:$0xff] }
 0x354   :  { %v3124_v22 = vpack.c.bf16 %v1159_v21, %v1158_v20  ;;  %v1142_v20 = vld [vmem:[#allocation16 + $0x50] sm:$0xff]  ;;  %v1143_v21 = vld [vmem:[#allocation16 + $0x58] sm:$0xff]  ;;  %v1145_v24 = vld [vmem:[#allocation16 + $0x68] sm:$0xff] }
 0x355   :  { %3055 = vmatpush1.bf16.msra.mxu1 %v3054_v31  ;;  %v1044_v31 = vld [vmem:[#allocation13 + $0xe0] sm:$0xff] }
 0x356   :  { %3057 = vmatprep.subr.bf16.mxu1 %v3056_v32  ;;  %v1045_v32 = vld [vmem:[#allocation13 + $0xe8] sm:$0xff]  ;;  %3091 = vmatpush3.bf16.msra.mxu0 %v3090_v27  ;;  %v1163_v27 = vld [vmem:[#allocation17 + $0x78] sm:$0xff] }
 0x357   :  { %3093 = vmatprep.subr.bf16.mxu0 %v3092_v28  ;;  %v3096_v35 = vpack.c.bf16 %v1045_v32, %v1044_v31  ;;  %v3132_v28 = vpack.c.bf16 %v1163_v27, %v1162_v26  ;;  %v3136_v31 = vpack.c.bf16 %v1133_v30, %v1132_v29  ;;  %v1325_v32 = vld [vmem:[#allocation20] sm:$0xff]  ;;  %v1146_v26 = vld [vmem:[#allocation16 + $0x70] sm:$0xff]  ;;  %v1147_v27 = vld [vmem:[#allocation16 + $0x78] sm:$0xff] }
 0x359   :  { %3059 = vmatpush1.bf16.msra.mxu1 %v3058_v38  ;;  %v3098_v38 = vpack.c.bf16 %v1029_v37, %v1028_v36  ;;  %v1328_v37 = vld [vmem:[#allocation20 + $0x18] sm:$0xff] }
 0x35a   :  { %3061 = vmatprep.subr.bf16.mxu1 %v3060_v39  ;;  %3095 = vmatpush3.bf16.msra.mxu0 %v3094_v33  ;;  %v1046_v39 = vld [vmem:[#allocation13 + $0xf0] sm:$0xff] }
 0x35b   :  { %3097 = vmatprep.subr.bf16.mxu0 %v3096_v35  ;;  %v3100_v41 = vpack.c.bf16 %v1047_v40, %v1046_v39  ;;  %v1326_v33 = vld [vmem:[#allocation20 + $0x8] sm:$0xff]  ;;  %v1327_v35 = vld [vmem:[#allocation20 + $0x10] sm:$0xff]  ;;  %v1329_v39 = vld [vmem:[#allocation20 + $0x20] sm:$0xff] }
 0x35c   :  { %v3168_v36 = vpack.c.bf16 %v1326_v33, %v1325_v32  ;;  %v1330_v40 = vld [vmem:[#allocation20 + $0x28] sm:$0xff]  ;;  %v1340_v32 = vld [vmem:[#allocation20 + $0x78] sm:$0xff] }
 0x35d   :  { %3063 = vmatpush1.bf16.msra.mxu1 %v3062_v44  ;;  %v3102_v44 = vpack.c.bf16 %v1031_v43, %v1030_v42  ;;  %v1331_v42 = vld [vmem:[#allocation20 + $0x30] sm:$0xff]  ;;  %v1332_v43 = vld [vmem:[#allocation20 + $0x38] sm:$0xff] }
 0x35e   :  { %3065 = vmatprep.subr.bf16.mxu1 %v3064_v45  ;;  %3099 = vmatpush3.bf16.msra.mxu0 %v3098_v38  ;;  %v1148_v45 = vld [vmem:[#allocation17] sm:$0xff]  ;;  %v3172_v38 = vpack.c.bf16 %v1328_v37, %v1327_v35 }
 0x35f   :  { %3101 = vmatprep.subr.bf16.mxu0 %v3100_v41  ;;  %v3104_v47 = vpack.c.bf16 %v1149_v46, %v1148_v45  ;;  %v3176_v41 = vpack.c.bf16 %v1330_v40, %v1329_v39  ;;  %v1333_v45 = vld [vmem:[#allocation20 + $0x40] sm:$0xff]  ;;  %v1334_v46 = vld [vmem:[#allocation20 + $0x48] sm:$0xff] }
 0x360   :  { %v1425_v35 = vld [vmem:[#allocation23] sm:$0xff] }
 0x361   :  { %3067 = vmatpush1.bf16.msra.mxu1 %v3066_v50 }
 0x362   :  { %3069 = vmatprep.subr.bf16.mxu1 %v3068_v51  ;;  %3103 = vmatpush3.bf16.msra.mxu0 %v3102_v44  ;;  %v3180_v44 = vpack.c.bf16 %v1332_v43, %v1331_v42  ;;  %v1427_v42 = vld [vmem:[#allocation23 + $0x10] sm:$0xff]  ;;  %v1428_v43 = vld [vmem:[#allocation23 + $0x18] sm:$0xff] }
 0x363   :  { %3105 = vmatprep.subr.bf16.mxu0 %v3104_v47 }
 0x365   :  { %3071 = vmatpush1.bf16.msra.mxu1 %v3070_v54  ;;  %v846_v54 = vld [vmem:[#allocation11] sm:$0x3] }
 0x366   :  { %v855_v56 = vrot.slane %v846_v54, %v4532_v14  ;;  %3169 = vmatprep.subr.bf16.mxu1 %v3168_v36 }
 0x368   :  { %1000 = vmatmul.mubr.f32.vlgmr.msra.gmra.mrb[4].mxu1 %v364_v55  ;;  %v851_v55 = vrot.slane %v846_v54, %v4529_v12  ;;  %v1338_v54 = vld [vmem:[#allocation20 + $0x68] sm:$0xff] }
 0x369   :  { %1005 = vmatprep.mubr.f32.mxu1 %v4063_v34  ;;  %3171 = vmatpush3.bf16.msra.mxu1 %v3168_v36  ;;  %v1426_v36 = vld [vmem:[#allocation23 + $0x8] sm:$0xff] }
 0x36a   :  { %3173 = vmatprep.subr.bf16.mxu1 %v3172_v38  ;;  %v3200_v37 = vpack.c.bf16 %v1426_v36, %v1425_v35  ;;  %v1546_v35 = vld [vmem:[#allocation26 + $0xa8] sm:$0xff]  ;;  %v1548_v36 = vld [vmem:[#allocation26 + $0xb8] sm:$0xff] }
 0x36c   :  { %1006 = vmatmul.mubr.f32.gmra.mrb[6].mxu1 %v367_v5 }
 0x36d   :  { %3175 = vmatpush3.bf16.msra.mxu1 %v3172_v38  ;;  %v2373_v38 = vld [vmem:[#allocation19] ss:$0 sm:$0xff] }
 0x36e   :  { %3177 = vmatprep.subr.bf16.mxu1 %v3176_v41 }
 0x371   :  { %3179 = vmatpush3.bf16.msra.mxu1 %v3176_v41 }
 0x372   :  { %3181 = vmatprep.subr.bf16.mxu1 %v3180_v44 }
 0x375   :  { %3183 = vmatpush3.bf16.msra.mxu1 %v3180_v44 }
 0x3db   :  { %v2410_v48 = vpop.f32.mrb[0].mxu1 }
 0x3dc   :  { %v2411_v49 = vpop.f32.mrb[1].mxu1 }
 0x3dd   :  { %v4556_v50 = vadd.f32 %v2411_v49, %v2410_v48  ;;  %v1335_v48 = vld [vmem:[#allocation20 + $0x50] sm:$0xff]  ;;  %v1336_v49 = vld [vmem:[#allocation20 + $0x58] sm:$0xff] }
 0x3df   :  { %v2413_v51 = vpop.f32.mrb[2].mxu1 }
 0x3e0   :  { %v2414_v52 = vpop.f32.mrb[3].mxu1 }
 0x3e1   :  { %v4558_v53 = vadd.f32 %v2414_v52, %v2413_v51  ;;  %v3188_v51 = vpack.c.bf16 %v1336_v49, %v1335_v48  ;;  %v1337_v52 = vld [vmem:[#allocation20 + $0x60] sm:$0xff]  ;;  %v1430_v48 = vld [vmem:[#allocation23 + $0x28] sm:$0xff] }
 0x43b   :  { %v1001_v57 = vpop.f32.mrb[4].mxu1 }
 0x43c   :  { %v3460_v58 = vadd.f32 %v1001_v57, %v851_v55  ;;  %v1003_v59 = vpop.f32.mrb[5].mxu1  ;;  %v2372_v57 = vld [vmem:[#allocation14] ss:$0 sm:$0xff] }
 0x43d   :  { %v3461_v60 = vadd.f32 %v1003_v59, %v855_v56 }
 0x43e   :  { %v1012_v1 = vmax.f32 %v3460_v58, 0.0 }
 0x43f   :  { %v1013_v63 = vmax.f32 %v3461_v60, 0.0  ;;  %v1007_v0 = vpop.f32.mrb[6].mxu1  ;;  %v2371_v60 = vld [vmem:[#allocation8] ss:$0 sm:$0xff] }
 0x440   :  { %v3462_v2 = vadd.f32 %v1007_v0, %v851_v55  ;;  %v1009_v3 = vpop.f32.mrb[7].mxu1  ;;  %v3192_v55 = vpack.c.bf16 %v1338_v54, %v1337_v52  ;;  %v745_v29 = vadd.f32 %v4558_v53, %v2371_v60  ;;  %v1432_v52 = vld [vmem:[#allocation23 + $0x38] sm:$0xff] }
 0x441   :  { %v3463_v5 = vadd.f32 %v1009_v3, %v855_v56  ;;  %1119 = vmatprep.mubr.f32.mxu0 %v1013_v63  ;;  %v1134_v3 = vld [vmem:[#allocation16 + $0x10] sm:$0xff] }
 0x442   :  { %1120 = vmatmul.mubr.f32.vlgmr.msra.gmra.mrb[4].mxu0 %v1012_v1  ;;  %v1014_v9 = vmax.f32 %v3462_v2, 0.0  ;;  %v740_v2 = vadd.f32 %v4556_v50, %v2371_v60  ;;  %v1140_v50 = vld [vmem:[#allocation16 + $0x40] sm:$0xff]  ;;  %v749_v30 = vmax.f32 %v745_v29, 0.0 }
 0x443   :  { %v1015_v8 = vmax.f32 %v3463_v5, 0.0  ;;  %3107 = vmatpush3.bf16.msra.mxu0 %v3104_v47  ;;  %v3184_v47 = vpack.c.bf16 %v1334_v46, %v1333_v45  ;;  %v3204_v46 = vpack.c.bf16 %v1428_v43, %v1427_v42  ;;  %v1544_v29 = vld [vmem:[#allocation26 + $0x98] sm:$0xff] }
 0x444   :  { %3109 = vmatprep.subr.bf16.mxu0 %v3108_v4 }
 0x445   :  { %1124 = vmatprep.mubr.f32.mxu0 %v1015_v8  ;;  %3185 = vmatprep.subr.bf16.mxu1 %v3184_v47  ;;  %v748_v8 = vmax.f32 %v740_v2, 0.0 }
 0x446   :  { %1125 = vmatmul.mubr.f32.gmra.mrb[6].mxu0 %v1014_v9  ;;  %3187 = vmatpush3.bf16.msra.mxu1 %v3184_v47  ;;  %v1136_v9 = vld [vmem:[#allocation16 + $0x20] sm:$0xff] }
 0x447   :  { %3111 = vmatpush3.bf16.msra.mxu0 %v3108_v4  ;;  %3189 = vmatprep.subr.bf16.mxu1 %v3188_v51  ;;  %v1135_v4 = vld [vmem:[#allocation16 + $0x18] sm:$0xff]  ;;  %v1429_v47 = vld [vmem:[#allocation23 + $0x20] sm:$0xff] }
 0x448   :  { %3113 = vmatprep.subr.bf16.mxu0 %v3112_v10  ;;  %v3140_v7 = vpack.c.bf16 %v1135_v4, %v1134_v3  ;;  %v3208_v49 = vpack.c.bf16 %v1430_v48, %v1429_v47  ;;  %v1526_v3 = vld [vmem:[#allocation26 + $0x8] sm:$0xff]  ;;  %v1528_v4 = vld [vmem:[#allocation26 + $0x18] sm:$0xff] }
 0x449   :  { %v2374_v47 = vld [vmem:[#allocation22] ss:$0 sm:$0xff] }
 0x44a   :  { %3191 = vmatpush3.bf16.msra.mxu1 %v3188_v51  ;;  %v1431_v51 = vld [vmem:[#allocation23 + $0x30] sm:$0xff] }
 0x44b   :  { %3115 = vmatpush3.bf16.msra.mxu0 %v3112_v10  ;;  %3193 = vmatprep.subr.bf16.mxu1 %v3192_v55  ;;  %v1137_v10 = vld [vmem:[#allocation16 + $0x28] sm:$0xff]  ;;  %v3212_v54 = vpack.c.bf16 %v1432_v52, %v1431_v51 }
 0x44c   :  { %3117 = vmatprep.subr.bf16.mxu0 %v3116_v16  ;;  %v3144_v13 = vpack.c.bf16 %v1137_v10, %v1136_v9  ;;  %v1532_v9 = vld [vmem:[#allocation26 + $0x38] sm:$0xff] }
 0x44e   :  { %3195 = vmatpush3.bf16.msra.mxu1 %v3192_v55  ;;  %v1433_v55 = vld [vmem:[#allocation23 + $0x40] sm:$0xff] }
 0x44f   :  { %3119 = vmatpush3.bf16.msra.mxu0 %v3116_v16  ;;  %v1139_v16 = vld [vmem:[#allocation16 + $0x38] sm:$0xff] }
 0x450   :  { %3121 = vmatprep.subr.bf16.mxu0 %v3120_v19  ;;  %v3148_v17 = vpack.c.bf16 %v1139_v16, %v1138_v15  ;;  %v1529_v15 = vld [vmem:[#allocation26 + $0x20] sm:$0xff]  ;;  %v1531_v16 = vld [vmem:[#allocation26 + $0x30] sm:$0xff] }
 0x453   :  { %3123 = vmatpush3.bf16.msra.mxu0 %v3120_v19  ;;  %v3152_v19 = vpack.c.bf16 %v1141_v18, %v1140_v50  ;;  %v1536_v50 = vld [vmem:[#allocation26 + $0x58] sm:$0xff]  ;;  %v3238_v18 = vpack.c.bf16 %v1531_v16, %v1529_v15 }
 0x454   :  { %3125 = vmatprep.subr.bf16.mxu0 %v3124_v22  ;;  %v1654_v16 = vld [vmem:[%s4759_s19 + $0x20] sm:$0xff] }
 0x457   :  { %3127 = vmatpush3.bf16.msra.mxu0 %v3124_v22  ;;  %v3156_v22 = vpack.c.bf16 %v1143_v21, %v1142_v20  ;;  %v1533_v20 = vld [vmem:[#allocation26 + $0x40] sm:$0xff]  ;;  %v1535_v21 = vld [vmem:[#allocation26 + $0x50] sm:$0xff] }
 0x458   :  { %3129 = vmatprep.subr.bf16.mxu0 %v3128_v25 }
 0x45b   :  { %3131 = vmatpush3.bf16.msra.mxu0 %v3128_v25  ;;  %v3160_v25 = vpack.c.bf16 %v1145_v24, %v1144_v23  ;;  %v1540_v23 = vld [vmem:[#allocation26 + $0x78] sm:$0xff]  ;;  %v3242_v24 = vpack.c.bf16 %v1535_v21, %v1533_v20  ;;  %v1656_v21 = vld [vmem:[%s4759_s19 + $0x30] sm:$0xff] }
 0x45c   :  { %3133 = vmatprep.subr.bf16.mxu0 %v3132_v28 }
 0x45f   :  { %3135 = vmatpush3.bf16.msra.mxu0 %v3132_v28  ;;  %v3164_v28 = vpack.c.bf16 %v1147_v27, %v1146_v26  ;;  %v1537_v26 = vld [vmem:[#allocation26 + $0x60] sm:$0xff]  ;;  %v1539_v27 = vld [vmem:[#allocation26 + $0x70] sm:$0xff] }
 0x460   :  { %3137 = vmatprep.subr.bf16.mxu0 %v3136_v31 }
 0x515   :  { %v2448_v56 = vpop.f32.mrb[4].mxu0 }
 0x516   :  { %v2449_v58 = vpop.f32.mrb[5].mxu0 }
 0x517   :  { %v2450_v59 = vadd.f32 %v2449_v58, %v2448_v56  ;;  %v1434_v56 = vld [vmem:[#allocation23 + $0x48] sm:$0xff]  ;;  %v1435_v58 = vld [vmem:[#allocation23 + $0x50] sm:$0xff] }
 0x519   :  { %v1122_v61 = vadd.f32 %v2450_v59, %v2372_v57  ;;  %v2451_v62 = vpop.f32.mrb[6].mxu0  ;;  %v1436_v59 = vld [vmem:[#allocation23 + $0x58] sm:$0xff] }
 0x51a   :  { %v2452_v63 = vpop.f32.mrb[7].mxu0  ;;  %v3220_v60 = vpack.c.bf16 %v1436_v59, %v1435_v58  ;;  %v1553_v59 = vld [vmem:[#allocation26 + $0xe0] sm:$0xff] }
 0x51b   :  { %v1130_v0 = vmax.f32 %v1122_v61, 0.0  ;;  %v2453_v1 = vadd.f32 %v2452_v63, %v2451_v62  ;;  %v1437_v61 = vld [vmem:[#allocation23 + $0x60] sm:$0xff]  ;;  %v1438_v62 = vld [vmem:[#allocation23 + $0x68] sm:$0xff] }
 0x51c   :  { %v3224_v63 = vpack.c.bf16 %v1438_v62, %v1437_v61  ;;  %v1666_v62 = vld [vmem:[%s4759_s19 + $0x80] sm:$0xff] }
 0x51d   :  { %v1127_v5 = vadd.f32 %v2453_v1, %v2372_v57  ;;  %2670 = vmatprep.mubr.f32.mxu0 %v1130_v0  ;;  %v3216_v57 = vpack.c.bf16 %v1434_v56, %v1433_v55  ;;  %v1439_v0 = vld [vmem:[#allocation23 + $0x70] sm:$0xff]  ;;  %v1440_v1 = vld [vmem:[#allocation23 + $0x78] sm:$0xff] }
 0x51e   :  { %v3228_v2 = vpack.c.bf16 %v1440_v1, %v1439_v0  ;;  %v1554_v56 = vld [vmem:[#allocation26 + $0xe8] sm:$0xff]  ;;  %v1650_v0 = vld [vmem:[%s4759_s19] sm:$0xff] }
 0x51f   :  { %v1131_v6 = vmax.f32 %v1127_v5, 0.0  ;;  %v1525_v5 = vld [vmem:[#allocation26] sm:$0xff] }
 0x521   :  { %2671 = vmatmul.mubr.f32.vlgmr.msra.gmra.mrb[8].mxu0 %v1131_v6  ;;  %v3232_v6 = vpack.c.bf16 %v1528_v4, %v1526_v3  ;;  %v1668_v3 = vld [vmem:[%s4759_s19 + $0x90] sm:$0xff]  ;;  %v1669_v4 = vld [vmem:[%s4759_s19 + $0x98] sm:$0xff] }
 0x522   :  { %3139 = vmatpush3.bf16.msra.mxu0 %v3136_v31  ;;  %2705 = vmatprep.mubr.f32.mxu0 %v748_v8  ;;  %v1339_v31 = vld [vmem:[#allocation20 + $0x70] sm:$0xff] }
 0x523   :  { %3141 = vmatprep.subr.bf16.mxu0 %v3140_v7  ;;  %v3196_v33 = vpack.c.bf16 %v1340_v32, %v1339_v31  ;;  %v1530_v8 = vld [vmem:[#allocation26 + $0x28] sm:$0xff]  ;;  %v1541_v32 = vld [vmem:[#allocation26 + $0x80] sm:$0xff] }
 0x525   :  { %3197 = vmatprep.subr.bf16.mxu1 %v3196_v33 }
 0x526   :  { %3143 = vmatpush3.bf16.msra.mxu0 %v3140_v7  ;;  %3199 = vmatpush3.bf16.msra.mxu1 %v3196_v33  ;;  %v1527_v7 = vld [vmem:[#allocation26 + $0x10] sm:$0xff] }
 0x527   :  { %3145 = vmatprep.subr.bf16.mxu0 %v3144_v13  ;;  %3201 = vmatprep.subr.bf16.mxu1 %v3200_v37  ;;  %v3234_v10 = vpack.c.bf16 %v1527_v7, %v1525_v5  ;;  %v1543_v33 = vld [vmem:[#allocation26 + $0x90] sm:$0xff]  ;;  %v1652_v7 = vld [vmem:[%s4759_s19 + $0x10] sm:$0xff] }
 0x52a   :  { %3147 = vmatpush3.bf16.msra.mxu0 %v3144_v13  ;;  %v3236_v13 = vpack.c.bf16 %v1532_v9, %v1530_v8  ;;  %v1653_v8 = vld [vmem:[%s4759_s19 + $0x18] sm:$0xff]  ;;  %v1670_v9 = vld [vmem:[%s4759_s19 + $0xa0] sm:$0xff] }
 0x52b   :  { %3149 = vmatprep.subr.bf16.mxu0 %v3148_v17 }
 0x52e   :  { %3151 = vmatpush3.bf16.msra.mxu0 %v3148_v17  ;;  %v1534_v17 = vld [vmem:[#allocation26 + $0x48] sm:$0xff] }
 0x52f   :  { %3153 = vmatprep.subr.bf16.mxu0 %v3152_v19 }
 0x532   :  { %3155 = vmatpush3.bf16.msra.mxu0 %v3152_v19  ;;  %v3240_v19 = vpack.c.bf16 %v1536_v50, %v1534_v17  ;;  %v1655_v17 = vld [vmem:[%s4759_s19 + $0x28] sm:$0xff]  ;;  %v1672_v50 = vld [vmem:[%s4759_s19 + $0xb0] sm:$0xff] }
 0x533   :  { %3157 = vmatprep.subr.bf16.mxu0 %v3156_v22 }
 0x536   :  { %3159 = vmatpush3.bf16.msra.mxu0 %v3156_v22  ;;  %v1538_v22 = vld [vmem:[#allocation26 + $0x68] sm:$0xff] }
 0x537   :  { %3161 = vmatprep.subr.bf16.mxu0 %v3160_v25 }
 0x53a   :  { %3163 = vmatpush3.bf16.msra.mxu0 %v3160_v25  ;;  %v3244_v25 = vpack.c.bf16 %v1540_v23, %v1538_v22  ;;  %v1657_v22 = vld [vmem:[%s4759_s19 + $0x38] sm:$0xff]  ;;  %v1674_v23 = vld [vmem:[%s4759_s19 + $0xc0] sm:$0xff] }
 0x53b   :  { %3165 = vmatprep.subr.bf16.mxu0 %v3164_v28 }
 0x53e   :  { %3167 = vmatpush3.bf16.msra.mxu0 %v3164_v28  ;;  %v1542_v28 = vld [vmem:[#allocation26 + $0x88] sm:$0xff] }
 0x53f   :  { %3233 = vmatprep.subr.bf16.mxu0 %v3232_v6  ;;  %v3248_v31 = vpack.c.bf16 %v1544_v29, %v1542_v28  ;;  %v3268_v6 = vpack.c.bf16 %v1669_v4, %v1668_v3  ;;  %v1659_v28 = vld [vmem:[%s4759_s19 + $0x48] sm:$0xff]  ;;  %v1676_v29 = vld [vmem:[%s4759_s19 + $0xd0] sm:$0xff]  ;;  %v1775_v3 = vld [vmem:[#allocation31 + $0x48] sm:$0xff] }
 0x540   :  { %v1768_v4 = vld [vmem:[#allocation31 + $0x10] sm:$0xff] }
 0x541   :  { %2706 = vmatmul.mubr.f32.vlgmr.msra.gmra.mrb[8].mxu0 %v749_v30  ;;  %v3246_v30 = vpack.c.bf16 %v1539_v27, %v1537_v26  ;;  %v1658_v27 = vld [vmem:[%s4759_s19 + $0x40] sm:$0xff] }
 0x542   :  { %1633 = vmatprep.mubr.f32.mxu0 %v4063_v34  ;;  %3235 = vmatpush1.bf16.msra.mxu0 %v3234_v10  ;;  %v1671_v10 = vld [vmem:[%s4759_s19 + $0xa8] sm:$0xff] }
 0x543   :  { %3237 = vmatprep.subr.bf16.mxu0 %v3236_v13  ;;  %v3270_v13 = vpack.c.bf16 %v1653_v8, %v1652_v7  ;;  %v3272_v15 = vpack.c.bf16 %v1671_v10, %v1670_v9  ;;  %v1782_v7 = vld [vmem:[#allocation31 + $0x80] sm:$0xff] }
 0x546   :  { %3239 = vmatpush1.bf16.msra.mxu0 %v3238_v18  ;;  %v1673_v18 = vld [vmem:[%s4759_s19 + $0xb8] sm:$0xff] }
 0x547   :  { %3241 = vmatprep.subr.bf16.mxu0 %v3240_v19  ;;  %v3274_v19 = vpack.c.bf16 %v1655_v17, %v1654_v16  ;;  %v3276_v20 = vpack.c.bf16 %v1673_v18, %v1672_v50  ;;  %v1785_v16 = vld [vmem:[#allocation31 + $0x98] sm:$0xff]  ;;  %v1788_v17 = vld [vmem:[#allocation31 + $0xb0] sm:$0xff] }
 0x548   :  { %v3308_v18 = vpack.c.bf16 %v1788_v17, %v1785_v16  ;;  %v1804_v16 = vld [vmem:[#allocation31 + $0x130] sm:$0xff] }
 0x54a   :  { %3243 = vmatpush1.bf16.msra.mxu0 %v3242_v24  ;;  %v1675_v24 = vld [vmem:[%s4759_s19 + $0xc8] sm:$0xff] }
 0x54b   :  { %3245 = vmatprep.subr.bf16.mxu0 %v3244_v25  ;;  %v3278_v25 = vpack.c.bf16 %v1657_v22, %v1656_v21  ;;  %v3280_v26 = vpack.c.bf16 %v1675_v24, %v1674_v23  ;;  %v1791_v21 = vld [vmem:[#allocation31 + $0xc8] sm:$0xff]  ;;  %v1794_v22 = vld [vmem:[#allocation31 + $0xe0] sm:$0xff] }
 0x54c   :  { %v3312_v24 = vpack.c.bf16 %v1794_v22, %v1791_v21  ;;  %v1810_v22 = vld [vmem:[#allocation31 + $0x160] sm:$0xff] }
 0x54e   :  { %3247 = vmatpush1.bf16.msra.mxu0 %v3246_v30  ;;  %v1677_v30 = vld [vmem:[%s4759_s19 + $0xd8] sm:$0xff] }
 0x54f   :  { %3249 = vmatprep.subr.bf16.mxu0 %v3248_v31  ;;  %v3282_v31 = vpack.c.bf16 %v1659_v28, %v1658_v27  ;;  %v1797_v27 = vld [vmem:[#allocation31 + $0xf8] sm:$0xff]  ;;  %v1800_v28 = vld [vmem:[#allocation31 + $0x110] sm:$0xff] }
 0x614   :  { %v2707_v39 = vpop.f32.mrb[8].mxu0 }
 0x615   :  { %v1322_v40 = vadd.f32 %v2707_v39, %v2373_v38  ;;  %v1305_v41 = vpop.f32.mrb[9].mxu0  ;;  %v1545_v39 = vld [vmem:[#allocation26 + $0xa0] sm:$0xff] }
 0x616   :  { %v1321_v53 = vadd.f32 %v2373_v38, %v1305_v41  ;;  %v3252_v38 = vpack.c.bf16 %v1548_v36, %v1546_v35  ;;  %v1550_v41 = vld [vmem:[#allocation26 + $0xc8] sm:$0xff]  ;;  %v1678_v36 = vld [vmem:[%s4759_s19 + $0xe0] sm:$0xff] }
 0x617   :  { %v1324_v45 = vmax.f32 %v1322_v40, 0.0  ;;  %v1547_v40 = vld [vmem:[#allocation26 + $0xb0] sm:$0xff] }
 0x618   :  { %v1323_v44 = vmax.f32 %v1321_v53, 0.0  ;;  %v1552_v53 = vld [vmem:[#allocation26 + $0xd8] sm:$0xff]  ;;  %v3254_v42 = vpack.c.bf16 %v1547_v40, %v1545_v39  ;;  %v1661_v35 = vld [vmem:[%s4759_s19 + $0x58] sm:$0xff] }
 0x619   :  { %v3256_v43 = vpack.c.bf16 %v1552_v53, %v1550_v41  ;;  %v2375_v40 = vld [vmem:[#allocation25] ss:$0 sm:$0xff] }
 0x61a   :  { %2740 = vmatprep.mubr.f32.mxu1 %v1323_v44  ;;  %v1549_v44 = vld [vmem:[#allocation26 + $0xc0] sm:$0xff] }
 0x61b   :  { %2741 = vmatmul.mubr.f32.vlgmr.msra.gmra.mrb[8].mxu1 %v1324_v45  ;;  %v1551_v45 = vld [vmem:[#allocation26 + $0xd0] sm:$0xff] }
 0x61c   :  { %3203 = vmatpush3.bf16.msra.mxu1 %v3200_v37  ;;  %v3250_v37 = vpack.c.bf16 %v1543_v33, %v1541_v32  ;;  %v3284_v32 = vpack.c.bf16 %v1677_v30, %v1676_v29  ;;  %v1660_v33 = vld [vmem:[%s4759_s19 + $0x50] sm:$0xff]  ;;  %v3316_v30 = vpack.c.bf16 %v1800_v28, %v1797_v27 }
 0x61d   :  { %3205 = vmatprep.subr.bf16.mxu1 %v3204_v46 }
 0x61e   :  { %3251 = vmatpush1.bf16.msra.mxu0 %v3250_v37  ;;  %v1679_v37 = vld [vmem:[%s4759_s19 + $0xe8] sm:$0xff] }
 0x61f   :  { %3253 = vmatprep.subr.bf16.mxu0 %v3252_v38  ;;  %v3286_v38 = vpack.c.bf16 %v1661_v35, %v1660_v33  ;;  %v3288_v39 = vpack.c.bf16 %v1679_v37, %v1678_v36  ;;  %v1803_v33 = vld [vmem:[#allocation31 + $0x128] sm:$0xff]  ;;  %v1806_v35 = vld [vmem:[#allocation31 + $0x140] sm:$0xff] }
 0x620   :  { %3207 = vmatpush3.bf16.msra.mxu1 %v3204_v46  ;;  %v3258_v46 = vpack.c.bf16 %v1551_v45, %v1549_v44  ;;  %v3320_v37 = vpack.c.bf16 %v1806_v35, %v1803_v33 }
 0x621   :  { %3209 = vmatprep.subr.bf16.mxu1 %v3208_v49 }
 0x622   :  { %3255 = vmatpush1.bf16.msra.mxu0 %v3254_v42 }
 0x623   :  { %3257 = vmatprep.subr.bf16.mxu0 %v3256_v43 }
 0x624   :  { %3211 = vmatpush3.bf16.msra.mxu1 %v3208_v49 }
 0x625   :  { %3213 = vmatprep.subr.bf16.mxu1 %v3212_v54 }
 0x626   :  { %3259 = vmatpush1.bf16.msra.mxu0 %v3258_v46  ;;  %v1662_v46 = vld [vmem:[%s4759_s19 + $0x60] sm:$0xff] }
 0x628   :  { %3215 = vmatpush3.bf16.msra.mxu1 %v3212_v54 }
 0x629   :  { %3217 = vmatprep.subr.bf16.mxu1 %v3216_v57 }
 0x62c   :  { %3219 = vmatpush3.bf16.msra.mxu1 %v3216_v57  ;;  %v1556_v57 = vld [vmem:[#allocation26 + $0xf8] sm:$0xff] }
 0x62d   :  { %3221 = vmatprep.subr.bf16.mxu1 %v3220_v60  ;;  %v3260_v58 = vpack.c.bf16 %v1556_v57, %v1554_v56  ;;  %v1767_v57 = vld [vmem:[#allocation31 + $0x8] sm:$0xff] }
 0x62f   :  { %3261 = vmatprep.subr.bf16.mxu0 %v3260_v58  ;;  %v1770_v58 = vld [vmem:[#allocation31 + $0x20] sm:$0xff] }
 0x630   :  { %3223 = vmatpush3.bf16.msra.mxu1 %v3220_v60  ;;  %v1555_v60 = vld [vmem:[#allocation26 + $0xf0] sm:$0xff] }
 0x631   :  { %3225 = vmatprep.subr.bf16.mxu1 %v3224_v63  ;;  %v3262_v61 = vpack.c.bf16 %v1555_v60, %v1553_v59  ;;  %v1766_v59 = vld [vmem:[#allocation31] sm:$0xff]  ;;  %v3296_v60 = vpack.c.bf16 %v1770_v58, %v1767_v57 }
 0x633   :  { %3263 = vmatpush1.bf16.msra.mxu0 %v3262_v61  ;;  %v1769_v61 = vld [vmem:[#allocation31 + $0x18] sm:$0xff] }
 0x634   :  { %3227 = vmatpush3.bf16.msra.mxu1 %v3224_v63  ;;  %v1667_v63 = vld [vmem:[%s4759_s19 + $0x88] sm:$0xff]  ;;  %3297 = vmatprep.subr.bf16.mxu0 %v3296_v60  ;;  %v1786_v60 = vld [vmem:[#allocation31 + $0xa0] sm:$0xff] }
 0x635   :  { %3229 = vmatprep.subr.bf16.mxu1 %v3228_v2  ;;  %v3264_v1 = vpack.c.bf16 %v1667_v63, %v1666_v62  ;;  %v1773_v62 = vld [vmem:[#allocation31 + $0x38] sm:$0xff]  ;;  %v1776_v63 = vld [vmem:[#allocation31 + $0x50] sm:$0xff] }
 0x638   :  { %3231 = vmatpush3.bf16.msra.mxu1 %v3228_v2  ;;  %v1651_v2 = vld [vmem:[%s4759_s19 + $0x8] sm:$0xff] }
 0x639   :  { %v3266_v5 = vpack.c.bf16 %v1651_v2, %v1650_v0  ;;  %3265 = vmatprep.subr.bf16.mxu1 %v3264_v1  ;;  %v3298_v0 = vpack.c.bf16 %v1769_v61, %v1766_v59  ;;  %v3300_v1 = vpack.c.bf16 %v1776_v63, %v1773_v62  ;;  %v1772_v2 = vld [vmem:[#allocation31 + $0x30] sm:$0xff]  ;;  %v1789_v61 = vld [vmem:[#allocation31 + $0xb8] sm:$0xff] }
 0x63a   :  { %v3302_v8 = vpack.c.bf16 %v1775_v3, %v1772_v2  ;;  %v3340_v62 = vpack.c.bf16 %v1789_v61, %v1786_v60  ;;  %v1792_v63 = vld [vmem:[#allocation31 + $0xd0] sm:$0xff]  ;;  %v1802_v2 = vld [vmem:[#allocation31 + $0x120] sm:$0xff]  ;;  %v1805_v3 = vld [vmem:[#allocation31 + $0x138] sm:$0xff] }
 0x63b   :  { %v2011_v60 = vld [vmem:[#allocation32 + $0xb0] sm:$0xff]  ;;  %v2012_v61 = vld [vmem:[#allocation32 + $0xb8] sm:$0xff] }
 0x6ee   :  { %v2742_v48 = vpop.f32.mrb[8].mxu1 }
 0x6ef   :  { %v1420_v49 = vadd.f32 %v2742_v48, %v2374_v47  ;;  %v1414_v51 = vpop.f32.mrb[9].mxu1 }
 0x6f0   :  { %v1415_v52 = vadd.f32 %v2374_v47, %v1414_v51  ;;  %v1663_v47 = vld [vmem:[%s4759_s19 + $0x68] sm:$0xff]  ;;  %v1681_v51 = vld [vmem:[%s4759_s19 + $0xf8] sm:$0xff] }
 0x6f1   :  { %v1424_v55 = vmax.f32 %v1420_v49, 0.0  ;;  %v3290_v48 = vpack.c.bf16 %v1663_v47, %v1662_v46  ;;  %v1680_v49 = vld [vmem:[%s4759_s19 + $0xf0] sm:$0xff] }
 0x6f2   :  { %v1423_v54 = vmax.f32 %v1415_v52, 0.0  ;;  %v3292_v52 = vpack.c.bf16 %v1681_v51, %v1680_v49 }
 0x6f4   :  { %2775 = vmatprep.mubr.f32.mxu1 %v1423_v54  ;;  %v1664_v54 = vld [vmem:[%s4759_s19 + $0x70] sm:$0xff] }
 0x6f5   :  { %2776 = vmatmul.mubr.f32.vlgmr.msra.gmra.mrb[10].mxu1 %v1424_v55  ;;  %v1665_v55 = vld [vmem:[%s4759_s19 + $0x78] sm:$0xff] }
 0x6f6   :  { %3267 = vmatpush3.bf16.msra.mxu1 %v3266_v5  ;;  %v3294_v56 = vpack.c.bf16 %v1665_v55, %v1664_v54  ;;  %v1771_v5 = vld [vmem:[#allocation31 + $0x28] sm:$0xff]  ;;  %v1780_v55 = vld [vmem:[#allocation31 + $0x70] sm:$0xff] }
 0x6f7   :  { %3269 = vmatprep.subr.bf16.mxu1 %v3268_v6  ;;  %v1779_v6 = vld [vmem:[#allocation31 + $0x68] sm:$0xff]  ;;  %v3328_v9 = vpack.c.bf16 %v1771_v5, %v1768_v4  ;;  %v1798_v4 = vld [vmem:[#allocation31 + $0x100] sm:$0xff]  ;;  %v3322_v5 = vpack.c.bf16 %v1805_v3, %v1802_v2 }
 0x6f8   :  { %v3304_v10 = vpack.c.bf16 %v1782_v7, %v1779_v6  ;;  %v1801_v6 = vld [vmem:[#allocation31 + $0x118] sm:$0xff]  ;;  %v2013_v2 = vld [vmem:[#allocation32 + $0xc0] sm:$0xff]  ;;  %v2014_v3 = vld [vmem:[#allocation32 + $0xc8] sm:$0xff] }
 0x6f9   :  { %v3348_v7 = vpack.c.bf16 %v1801_v6, %v1798_v4  ;;  %v1997_v6 = vld [vmem:[#allocation32 + $0x40] sm:$0xff] }
 0x6fa   :  { %3271 = vmatpush3.bf16.msra.mxu1 %v3270_v13  ;;  %v1778_v13 = vld [vmem:[#allocation31 + $0x60] sm:$0xff] }
 0x6fb   :  { %3273 = vmatprep.subr.bf16.mxu1 %v3272_v15  ;;  %v1781_v15 = vld [vmem:[#allocation31 + $0x78] sm:$0xff] }
 0x6fc   :  { %v3306_v50 = vpack.c.bf16 %v1781_v15, %v1778_v13  ;;  %v1808_v13 = vld [vmem:[#allocation31 + $0x150] sm:$0xff]  ;;  %v1811_v15 = vld [vmem:[#allocation31 + $0x168] sm:$0xff] }
 0x6fd   :  { %v3326_v17 = vpack.c.bf16 %v1811_v15, %v1808_v13  ;;  %v2000_v13 = vld [vmem:[#allocation32 + $0x58] sm:$0xff]  ;;  %v2017_v15 = vld [vmem:[#allocation32 + $0xe0] sm:$0xff] }
 0x6fe   :  { %3275 = vmatpush3.bf16.msra.mxu1 %v3274_v19  ;;  %v1784_v19 = vld [vmem:[#allocation31 + $0x90] sm:$0xff] }
 0x6ff   :  { %3277 = vmatprep.subr.bf16.mxu1 %v3276_v20  ;;  %v1787_v20 = vld [vmem:[#allocation31 + $0xa8] sm:$0xff] }
 0x700   :  { %v3310_v23 = vpack.c.bf16 %v1787_v20, %v1784_v19  ;;  %v2005_v19 = vld [vmem:[#allocation32 + $0x80] sm:$0xff]  ;;  %v2006_v20 = vld [vmem:[#allocation32 + $0x88] sm:$0xff] }
 0x701   :  { %v3360_v21 = vpack.c.bf16 %v2006_v20, %v2005_v19  ;;  %v2002_v19 = vld [vmem:[#allocation32 + $0x68] sm:$0xff]  ;;  %v2019_v20 = vld [vmem:[#allocation32 + $0xf0] sm:$0xff] }
 0x702   :  { %3279 = vmatpush3.bf16.msra.mxu1 %v3278_v25  ;;  %v1790_v25 = vld [vmem:[#allocation31 + $0xc0] sm:$0xff] }
 0x703   :  { %3281 = vmatprep.subr.bf16.mxu1 %v3280_v26  ;;  %v1793_v26 = vld [vmem:[#allocation31 + $0xd8] sm:$0xff] }
 0x704   :  { %v3314_v29 = vpack.c.bf16 %v1793_v26, %v1790_v25  ;;  %v2376_v26 = vld [vmem:[#allocation29] ss:$0 sm:$0xff] }
 0x706   :  { %3283 = vmatpush3.bf16.msra.mxu1 %v3282_v31  ;;  %v1796_v31 = vld [vmem:[#allocation31 + $0xf0] sm:$0xff] }
 0x707   :  { %3285 = vmatprep.subr.bf16.mxu1 %v3284_v32  ;;  %v1799_v32 = vld [vmem:[#allocation31 + $0x108] sm:$0xff] }
 0x708   :  { %v3318_v36 = vpack.c.bf16 %v1799_v32, %v1796_v31  ;;  %v2007_v31 = vld [vmem:[#allocation32 + $0x90] sm:$0xff]  ;;  %v2008_v32 = vld [vmem:[#allocation32 + $0x98] sm:$0xff] }
 0x70a   :  { %3287 = vmatpush3.bf16.msra.mxu1 %v3286_v38  ;;  %v1557_v38 = vld [vmem:[#allocation28] sm:$0x3] }
 0x70b   :  { %3289 = vmatprep.subr.bf16.mxu1 %v3288_v39  ;;  %v1562_v39 = vrot.slane %v1557_v38, %v4529_v12 }
 0x70e   :  { %3291 = vmatpush3.bf16.msra.mxu1 %v3290_v48 }
 0x70f   :  { %3293 = vmatprep.subr.bf16.mxu1 %v3292_v52 }
 0x712   :  { %3295 = vmatpush3.bf16.msra.mxu1 %v3294_v56  ;;  %v1783_v56 = vld [vmem:[#allocation31 + $0x88] sm:$0xff] }
 0x713   :  { %3329 = vmatprep.subr.bf16.mxu1 %v3328_v9  ;;  %v3336_v59 = vpack.c.bf16 %v1783_v56, %v1780_v55  ;;  %v1993_v56 = vld [vmem:[#allocation32 + $0x20] sm:$0xff] }
 0x7c8   :  { %v2777_v41 = vpop.f32.mrb[10].mxu1 }
 0x7c9   :  { %v1514_v53 = vpop.f32.mrb[11].mxu1  ;;  %v1520_v43 = vadd.f32 %v2777_v41, %v2375_v40 }
 0x7ca   :  { %v1515_v42 = vadd.f32 %v2375_v40, %v1514_v53  ;;  %v1566_v40 = vrot.slane %v1557_v38, %v4532_v14 }
 0x7cb   :  { %v1524_v45 = vmax.f32 %v1520_v43, 0.0 }
 0x7cc   :  { %v1523_v44 = vmax.f32 %v1515_v42, 0.0 }
 0x7ce   :  { %1634 = vmatmul.mubr.f32.vlgmr.msra.gmra.mrb[10].mxu0 %v1523_v44  ;;  %v1774_v44 = vld [vmem:[#allocation31 + $0x40] sm:$0xff] }
 0x7cf   :  { %1639 = vmatprep.mubr.f32.mxu0 %v4063_v34  ;;  %3299 = vmatpush1.bf16.msra.mxu0 %v3298_v0  ;;  %v1795_v0 = vld [vmem:[#allocation31 + $0xe8] sm:$0xff] }
 0x7d0   :  { %3301 = vmatprep.subr.bf16.mxu0 %v3300_v1  ;;  %v3344_v1 = vpack.c.bf16 %v1795_v0, %v1792_v63  ;;  %v3372_v63 = vpack.c.bf16 %v2012_v61, %v2011_v60  ;;  %v1995_v0 = vld [vmem:[#allocation32 + $0x30] sm:$0xff] }
 0x7d1   :  { %v2123_v61 = vld [vmem:[#allocation34 + $0x90] sm:$0xff] }
 0x7d2   :  { %1640 = vmatmul.mubr.f32.gmra.mrb[12].mxu0 %v1524_v45  ;;  %v1777_v45 = vld [vmem:[#allocation31 + $0x58] sm:$0xff] }
 0x7d3   :  { %1895 = vmatprep.mubr.f32.mxu0 %v4063_v34  ;;  %3303 = vmatpush1.bf16.msra.mxu0 %v3302_v8  ;;  %v3332_v52 = vpack.c.bf16 %v1777_v45, %v1774_v44  ;;  %v1809_v8 = vld [vmem:[#allocation31 + $0x158] sm:$0xff]  ;;  %v2009_v44 = vld [vmem:[#allocation32 + $0xa0] sm:$0xff]  ;;  %v2010_v45 = vld [vmem:[#allocation32 + $0xa8] sm:$0xff] }
 0x7d4   :  { %3305 = vmatprep.subr.bf16.mxu0 %v3304_v10  ;;  %v3368_v55 = vpack.c.bf16 %v2010_v45, %v2009_v44  ;;  %v2120_v44 = vld [vmem:[#allocation34 + $0x78] sm:$0xff] }
 0x7d7   :  { %3307 = vmatpush1.bf16.msra.mxu0 %v3306_v50  ;;  %v1807_v50 = vld [vmem:[#allocation31 + $0x148] sm:$0xff] }
 0x7d8   :  { %3309 = vmatprep.subr.bf16.mxu0 %v3308_v18  ;;  %v3352_v18 = vpack.c.bf16 %v1807_v50, %v1804_v16  ;;  %v2018_v16 = vld [vmem:[#allocation32 + $0xe8] sm:$0xff] }
 0x7d9   :  { %v3384_v50 = vpack.c.bf16 %v2018_v16, %v2017_v15  ;;  %v2135_v16 = vld [vmem:[#allocation34 + $0xf0] sm:$0xff] }
 0x7db   :  { %3311 = vmatpush1.bf16.msra.mxu0 %v3310_v23  ;;  %v1813_v23 = vld [vmem:[#allocation31 + $0x178] sm:$0xff] }
 0x7dc   :  { %3313 = vmatprep.subr.bf16.mxu0 %v3312_v24  ;;  %v3356_v24 = vpack.c.bf16 %v1813_v23, %v1810_v22 }
 0x7df   :  { %3315 = vmatpush1.bf16.msra.mxu0 %v3314_v29  ;;  %v1989_v29 = vld [vmem:[#allocation32] sm:$0xff] }
 0x7e0   :  { %3317 = vmatprep.subr.bf16.mxu0 %v3316_v30  ;;  %v1990_v30 = vld [vmem:[#allocation32 + $0x8] sm:$0xff] }
 0x7e3   :  { %3319 = vmatpush1.bf16.msra.mxu0 %v3318_v36 }
 0x7e4   :  { %3321 = vmatprep.subr.bf16.mxu0 %v3320_v37  ;;  %v3362_v37 = vpack.c.bf16 %v1990_v30, %v1989_v29  ;;  %v2105_v30 = vld [vmem:[#allocation34] sm:$0xff] }
 0x7e7   :  { %3323 = vmatpush1.bf16.msra.mxu0 %v3322_v5  ;;  %v3376_v5 = vpack.c.bf16 %v2014_v3, %v2013_v2  ;;  %v2128_v2 = vld [vmem:[#allocation34 + $0xb8] sm:$0xff] }
 0x8a1   :  { %v1635_v41 = vpop.f32.mrb[10].mxu0 }
 0x8a2   :  { %v4665_v53 = vadd.f32 %v1635_v41, %v1562_v39  ;;  %v1637_v42 = vpop.f32.mrb[11].mxu0  ;;  %v1991_v41 = vld [vmem:[#allocation32 + $0x10] sm:$0xff] }
 0x8a3   :  { %v4667_v43 = vadd.f32 %v1637_v42, %v1566_v40  ;;  %v1992_v42 = vld [vmem:[#allocation32 + $0x18] sm:$0xff] }
 0x8a4   :  { %v1646_v48 = vmax.f32 %v4665_v53, 0.0  ;;  %v2110_v53 = vld [vmem:[#allocation34 + $0x28] sm:$0xff] }
 0x8a5   :  { %v1647_v46 = vmax.f32 %v4667_v43, 0.0  ;;  %v1641_v47 = vpop.f32.mrb[12].mxu0 }
 0x8a6   :  { %v4671_v49 = vadd.f32 %v1641_v47, %v1562_v39  ;;  %v1643_v51 = vpop.f32.mrb[13].mxu0 }
 0x8a7   :  { %v4673_v54 = vadd.f32 %v1643_v51, %v1566_v40  ;;  %1753 = vmatprep.mubr.f32.mxu1 %v1647_v46  ;;  %v3364_v40 = vpack.c.bf16 %v2008_v32, %v2007_v31  ;;  %v3366_v51 = vpack.c.bf16 %v1992_v42, %v1991_v41  ;;  %v2108_v31 = vld [vmem:[#allocation34 + $0x18] sm:$0xff]  ;;  %v2117_v42 = vld [vmem:[#allocation34 + $0x60] sm:$0xff] }
 0x8a8   :  { %1754 = vmatmul.mubr.f32.vlgmr.msra.gmra.mrb[12].mxu1 %v1646_v48  ;;  %v1648_v58 = vmax.f32 %v4671_v49, 0.0  ;;  %v3394_v32 = vpack.c.bf16 %v2108_v31, %v2105_v30  ;;  %v2121_v49 = vld [vmem:[#allocation34 + $0x80] sm:$0xff]  ;;  %v2116_v41 = vld [vmem:[#allocation34 + $0x58] sm:$0xff]  ;;  %v2146_v31 = vld [vmem:[#allocation34 + $0x148] sm:$0xff] }
 0x8a9   :  { %v1649_v57 = vmax.f32 %v4673_v54, 0.0  ;;  %3331 = vmatpush3.bf16.msra.mxu1 %v3328_v9  ;;  %v1812_v9 = vld [vmem:[#allocation31 + $0x170] sm:$0xff] }
 0x8aa   :  { %3333 = vmatprep.subr.bf16.mxu1 %v3332_v52  ;;  %v3324_v10 = vpack.c.bf16 %v1812_v9, %v1809_v8  ;;  %v2015_v8 = vld [vmem:[#allocation32 + $0xd0] sm:$0xff]  ;;  %v2016_v9 = vld [vmem:[#allocation32 + $0xd8] sm:$0xff] }
 0x8ab   :  { %1758 = vmatprep.mubr.f32.mxu1 %v1649_v57 }
 0x8ac   :  { %1759 = vmatmul.mubr.f32.gmra.mrb[14].mxu1 %v1648_v58  ;;  %3325 = vmatprep.subr.bf16.mxu0 %v3324_v10  ;;  %v1999_v10 = vld [vmem:[#allocation32 + $0x50] sm:$0xff] }
 0x8ad   :  { %3335 = vmatpush3.bf16.msra.mxu1 %v3332_v52  ;;  %3327 = vmatpush1.bf16.msra.mxu0 %v3326_v17  ;;  %v3382_v17 = vpack.c.bf16 %v2000_v13, %v1999_v10 }
 0x8ae   :  { %3337 = vmatprep.subr.bf16.mxu1 %v3336_v59  ;;  %3361 = vmatprep.subr.bf16.mxu0 %v3360_v21  ;;  %v2020_v21 = vld [vmem:[#allocation32 + $0xf8] sm:$0xff] }
 0x8af   :  { %v3388_v23 = vpack.c.bf16 %v2020_v21, %v2019_v20  ;;  %v2137_v20 = vld [vmem:[#allocation34 + $0x100] sm:$0xff] }
 0x8b1   :  { %3339 = vmatpush3.bf16.msra.mxu1 %v3336_v59  ;;  %v1994_v59 = vld [vmem:[#allocation32 + $0x28] sm:$0xff] }
 0x8b2   :  { %3341 = vmatprep.subr.bf16.mxu1 %v3340_v62 }
 0x8b5   :  { %3343 = vmatpush3.bf16.msra.mxu1 %v3340_v62  ;;  %v3370_v62 = vpack.c.bf16 %v1994_v59, %v1993_v56  ;;  %v2122_v56 = vld [vmem:[#allocation34 + $0x88] sm:$0xff] }
 0x8b6   :  { %3345 = vmatprep.subr.bf16.mxu1 %v3344_v1 }
 0x8b9   :  { %3347 = vmatpush3.bf16.msra.mxu1 %v3344_v1  ;;  %v1996_v1 = vld [vmem:[#allocation32 + $0x38] sm:$0xff] }
 0x8ba   :  { %3349 = vmatprep.subr.bf16.mxu1 %v3348_v7  ;;  %v3374_v4 = vpack.c.bf16 %v1996_v1, %v1995_v0  ;;  %v2133_v0 = vld [vmem:[#allocation34 + $0xe0] sm:$0xff] }
 0x8bb   :  { %v2125_v1 = vld [vmem:[#allocation34 + $0xa0] sm:$0xff] }
 0x8bd   :  { %3351 = vmatpush3.bf16.msra.mxu1 %v3348_v7  ;;  %v1998_v7 = vld [vmem:[#allocation32 + $0x48] sm:$0xff] }
 0x8be   :  { %3353 = vmatprep.subr.bf16.mxu1 %v3352_v18  ;;  %v3378_v43 = vpack.c.bf16 %v1998_v7, %v1997_v6  ;;  %v2129_v6 = vld [vmem:[#allocation34 + $0xc0] sm:$0xff]  ;;  %v2132_v7 = vld [vmem:[#allocation34 + $0xd8] sm:$0xff] }
 0x8bf   :  { %v3410_v10 = vpack.c.bf16 %v2132_v7, %v2129_v6 }
 0x8c1   :  { %3355 = vmatpush3.bf16.msra.mxu1 %v3352_v18  ;;  %v2001_v18 = vld [vmem:[#allocation32 + $0x60] sm:$0xff] }
 0x8c2   :  { %3357 = vmatprep.subr.bf16.mxu1 %v3356_v24  ;;  %v3386_v22 = vpack.c.bf16 %v2002_v19, %v2001_v18  ;;  %v2142_v18 = vld [vmem:[#allocation34 + $0x128] sm:$0xff]  ;;  %v2145_v19 = vld [vmem:[#allocation34 + $0x140] sm:$0xff] }
 0x8c3   :  { %v3416_v21 = vpack.c.bf16 %v2145_v19, %v2142_v18 }
 0x8c5   :  { %3359 = vmatpush3.bf16.msra.mxu1 %v3356_v24  ;;  %v2003_v24 = vld [vmem:[#allocation32 + $0x70] sm:$0xff] }
 0x97b   :  { %v2558_v25 = vpop.f32.mrb[12].mxu1 }
 0x97c   :  { %v2559_v27 = vpop.f32.mrb[13].mxu1 }
 0x97d   :  { %v2560_v28 = vadd.f32 %v2559_v27, %v2558_v25  ;;  %v2004_v25 = vld [vmem:[#allocation32 + $0x78] sm:$0xff]  ;;  %v2106_v27 = vld [vmem:[#allocation34 + $0x8] sm:$0xff] }
 0x97f   :  { %v1756_v33 = vadd.f32 %v2560_v28, %v2376_v26  ;;  %v2561_v35 = vpop.f32.mrb[14].mxu1  ;;  %v2109_v28 = vld [vmem:[#allocation34 + $0x20] sm:$0xff] }
 0x980   :  { %v2562_v36 = vpop.f32.mrb[15].mxu1  ;;  %v3392_v29 = vpack.c.bf16 %v2109_v28, %v2106_v27  ;;  %v2148_v27 = vld [vmem:[#allocation34 + $0x158] sm:$0xff]  ;;  %v2151_v28 = vld [vmem:[#allocation34 + $0x170] sm:$0xff] }
 0x981   :  { %v1764_v38 = vmax.f32 %v1756_v33, 0.0  ;;  %v2563_v39 = vadd.f32 %v2562_v36, %v2561_v35  ;;  %v2112_v33 = vld [vmem:[#allocation34 + $0x38] sm:$0xff]  ;;  %v2115_v35 = vld [vmem:[#allocation34 + $0x50] sm:$0xff]  ;;  %v3420_v30 = vpack.c.bf16 %v2151_v28, %v2148_v27 }
 0x982   :  { %3393 = vmatprep.subr.bf16.mxu1 %v3392_v29  ;;  %v2107_v36 = vld [vmem:[#allocation34 + $0x10] sm:$0xff] }
 0x983   :  { %v1761_v47 = vadd.f32 %v2563_v39, %v2376_v26  ;;  %1896 = vmatmul.mubr.f32.vlgmr.msra.gmra.mrb[14].mxu0 %v1764_v38  ;;  %2810 = vmatprep.mubr.f32.mxu1 %v1764_v38  ;;  %v3390_v26 = vpack.c.bf16 %v2004_v25, %v2003_v24  ;;  %v2114_v38 = vld [vmem:[#allocation34 + $0x48] sm:$0xff]  ;;  %v3424_v54 = vpack.c.bf16 %v2110_v53, %v2107_v36  ;;  %v2144_v24 = vld [vmem:[#allocation34 + $0x138] sm:$0xff]  ;;  %v2143_v29 = vld [vmem:[#allocation34 + $0x130] sm:$0xff] }
 0x984   :  { %3363 = vmatpush3.bf16.msra.mxu0 %v3362_v37  ;;  %1901 = vmatprep.mubr.f32.mxu0 %v4063_v34  ;;  %v3396_v37 = vpack.c.bf16 %v2115_v35, %v2112_v33  ;;  %v2118_v39 = vld [vmem:[#allocation34 + $0x68] sm:$0xff]  ;;  %v3448_v35 = vpack.c.bf16 %v2146_v31, %v2143_v29  ;;  %v2152_v53 = vld [vmem:[#allocation34 + $0x178] sm:$0xff] }
 0x985   :  { %v1765_v52 = vmax.f32 %v1761_v47, 0.0  ;;  %3365 = vmatprep.subr.bf16.mxu0 %v3364_v40  ;;  %v3400_v40 = vpack.c.bf16 %v2121_v49, %v2118_v39  ;;  %v2124_v47 = vld [vmem:[#allocation34 + $0x98] sm:$0xff]  ;;  %v2150_v33 = vld [vmem:[#allocation34 + $0x168] sm:$0xff] }
 0x987   :  { %1902 = vmatmul.mubr.f32.gmra.mrb[16].mxu0 %v1765_v52  ;;  %2811 = vmatmul.mubr.f32.vlgmr.msra.gmra.mrb[16].mxu1 %v1765_v52  ;;  %v2119_v52 = vld [vmem:[#allocation34 + $0x70] sm:$0xff] }
 0x988   :  { %3367 = vmatpush3.bf16.msra.mxu0 %v3366_v51  ;;  %2092 = vmatprep.mubr.f32.mxu0 %v1647_v46  ;;  %v3380_v46 = vpack.c.bf16 %v2016_v9, %v2015_v8  ;;  %v2127_v51 = vld [vmem:[#allocation34 + $0xb0] sm:$0xff]  ;;  %v3432_v60 = vpack.c.bf16 %v2122_v56, %v2119_v52  ;;  %v2136_v8 = vld [vmem:[#allocation34 + $0xf8] sm:$0xff] }
 0x989   :  { %3369 = vmatprep.subr.bf16.mxu0 %v3368_v55  ;;  %2234 = vmatprep.mubr.f32.mxu1 %v4063_v34  ;;  %v3402_v55 = vpack.c.bf16 %v2120_v44, %v2117_v42  ;;  %v3404_v59 = vpack.c.bf16 %v2127_v51, %v2124_v47  ;;  %v2139_v9 = vld [vmem:[#allocation34 + $0x110] sm:$0xff] }
 0x98a   :  { %3395 = vmatpush1.bf16.msra.mxu1 %v3394_v32  ;;  %v3412_v13 = vpack.c.bf16 %v2139_v9, %v2136_v8  ;;  %v2147_v32 = vld [vmem:[#allocation34 + $0x150] sm:$0xff] }
 0x98b   :  { %3397 = vmatprep.subr.bf16.mxu1 %v3396_v37  ;;  %v3422_v36 = vpack.c.bf16 %v2150_v33, %v2147_v32  ;;  %v2149_v37 = vld [vmem:[#allocation34 + $0x160] sm:$0xff] }
 0x98c   :  { %3371 = vmatpush3.bf16.msra.mxu0 %v3370_v62  ;;  %v2126_v62 = vld [vmem:[#allocation34 + $0xa8] sm:$0xff] }
 0x98d   :  { %3373 = vmatprep.subr.bf16.mxu0 %v3372_v63  ;;  %v2130_v63 = vld [vmem:[#allocation34 + $0xc8] sm:$0xff]  ;;  %v3406_v3 = vpack.c.bf16 %v2126_v62, %v2123_v61 }
 0x990   :  { %3375 = vmatpush3.bf16.msra.mxu0 %v3374_v4  ;;  %v3408_v4 = vpack.c.bf16 %v2133_v0, %v2130_v63 }
 0x991   :  { %3377 = vmatprep.subr.bf16.mxu0 %v3376_v5  ;;  %v3436_v5 = vpack.c.bf16 %v2128_v2, %v2125_v1 }
 0x994   :  { %3379 = vmatpush3.bf16.msra.mxu0 %v3378_v43  ;;  %v2131_v43 = vld [vmem:[#allocation34 + $0xd0] sm:$0xff] }
 0x995   :  { %3381 = vmatprep.subr.bf16.mxu0 %v3380_v46  ;;  %v2134_v46 = vld [vmem:[#allocation34 + $0xe8] sm:$0xff] }
 0x996   :  { %v3440_v15 = vpack.c.bf16 %v2134_v46, %v2131_v43 }
 0x998   :  { %3383 = vmatpush3.bf16.msra.mxu0 %v3382_v17  ;;  %v2138_v17 = vld [vmem:[#allocation34 + $0x108] sm:$0xff] }
 0x999   :  { %3385 = vmatprep.subr.bf16.mxu0 %v3384_v50  ;;  %v3414_v50 = vpack.c.bf16 %v2138_v17, %v2135_v16 }
 0x99c   :  { %3387 = vmatpush3.bf16.msra.mxu0 %v3386_v22  ;;  %v2140_v22 = vld [vmem:[#allocation34 + $0x118] sm:$0xff] }
 0x99d   :  { %3389 = vmatprep.subr.bf16.mxu0 %v3388_v23  ;;  %v2141_v23 = vld [vmem:[#allocation34 + $0x120] sm:$0xff]  ;;  %v3444_v25 = vpack.c.bf16 %v2140_v22, %v2137_v20 }
 0x9a0   :  { %3391 = vmatpush3.bf16.msra.mxu0 %v3390_v26  ;;  %v3418_v26 = vpack.c.bf16 %v2144_v24, %v2141_v23 }
 0x9a1   :  { %3425 = vmatprep.subr.bf16.mxu0 %v3424_v54 }
 0x9a3   :  { %2093 = vmatmul.mubr.f32.vlgmr.msra.gmra.mrb[18].mxu0 %v1646_v48  ;;  %v2111_v48 = vld [vmem:[#allocation34 + $0x30] sm:$0xff] }
 0x9a4   :  { %2097 = vmatprep.mubr.f32.mxu0 %v1649_v57  ;;  %v3398_v57 = vpack.c.bf16 %v2114_v38, %v2111_v48  ;;  %3427 = vmatpush3.bf16.msra.mxu0 %v3424_v54  ;;  %v3452_v48 = vpack.c.bf16 %v2152_v53, %v2149_v37  ;;  %v1814_v38 = vld [vmem:[%s4762_s22] sm:$0x7] }
 0x9a5   :  { %v1819_v54 = vrot.slane %v1814_v38, %v4529_v12  ;;  %v1823_v39 = vrot.slane %v1814_v38, %v4532_v14 }
 0x9a6   :  { %3399 = vmatpush1.bf16.msra.mxu1 %v3398_v57  ;;  %v1826_v57 = vsub.s32 2, %v4526_v11 }
 0x9a7   :  { %2098 = vmatmul.mubr.f32.gmra.mrb[20].mxu0 %v1648_v58  ;;  %v2113_v58 = vld [vmem:[#allocation34 + $0x40] sm:$0xff]  ;;  %3401 = vmatprep.subr.bf16.mxu1 %v3400_v40 }
 0x9a8   :  { %v3428_v45 = vpack.c.bf16 %v2116_v41, %v2113_v58  ;;  %v1827_v41 = vrot.slane %v1814_v38, %v1826_v57 }
 0x9aa   :  { %3429 = vmatprep.subr.bf16.mxu0 %v3428_v45  ;;  %3403 = vmatpush1.bf16.msra.mxu1 %v3402_v55 }
 0x9ab   :  { %3431 = vmatpush3.bf16.msra.mxu0 %v3428_v45  ;;  %3405 = vmatprep.subr.bf16.mxu1 %v3404_v59 }
 0x9ac   :  { %3433 = vmatprep.subr.bf16.mxu0 %v3432_v60 }
 0x9ae   :  { %3407 = vmatpush1.bf16.msra.mxu1 %v3406_v3 }
 0x9af   :  { %3435 = vmatpush3.bf16.msra.mxu0 %v3432_v60  ;;  %3409 = vmatprep.subr.bf16.mxu1 %v3408_v4  ;;  %v2377_v60 = vld [vmem:[%s4764_s24] ss:$0 sm:$0xff] }
 0x9b0   :  { %3437 = vmatprep.subr.bf16.mxu0 %v3436_v5 }
 0x9b2   :  { %3411 = vmatpush1.bf16.msra.mxu1 %v3410_v10 }
 0x9b3   :  { %3439 = vmatpush3.bf16.msra.mxu0 %v3436_v5  ;;  %3413 = vmatprep.subr.bf16.mxu1 %v3412_v13 }
 0x9b4   :  { %3441 = vmatprep.subr.bf16.mxu0 %v3440_v15 }
 0x9b6   :  { %3415 = vmatpush1.bf16.msra.mxu1 %v3414_v50 }
 0x9b7   :  { %3443 = vmatpush3.bf16.msra.mxu0 %v3440_v15  ;;  %3417 = vmatprep.subr.bf16.mxu1 %v3416_v21 }
 0x9b8   :  { %3445 = vmatprep.subr.bf16.mxu0 %v3444_v25 }
 0x9ba   :  { %3419 = vmatpush1.bf16.msra.mxu1 %v3418_v26 }
 0x9bb   :  { %3447 = vmatpush3.bf16.msra.mxu0 %v3444_v25  ;;  %3421 = vmatprep.subr.bf16.mxu1 %v3420_v30 }
 0x9bc   :  { %3449 = vmatprep.subr.bf16.mxu0 %v3448_v35 }
 0x9be   :  { %3423 = vmatpush1.bf16.msra.mxu1 %v3422_v36 }
 0x9bf   :  { %3451 = vmatpush3.bf16.msra.mxu0 %v3448_v35 }
 0x9c0   :  { %3453 = vmatprep.subr.bf16.mxu0 %v3452_v48 }
 0x9c3   :  { %3455 = vmatpush3.bf16.msra.mxu0 %v3452_v48 }
 0xa56   :  { %v1897_v49 = vpop.f32.mrb[14].mxu0 }
 0xa57   :  { %v1898_v58 = vadd.f32 %v1897_v49, %v1819_v54  ;;  %v1899_v40 = vpop.f32.mrb[15].mxu0 }
 0xa58   :  { %v1900_v42 = vadd.f32 %v1899_v40, %v1823_v39 }
 0xa59   :  { %1983 = vst [vmem:[#allocation35] sm:$0xff] %v1898_v58 }
 0xa5a   :  { %1984 = vst [vmem:[#allocation35 + $0x8] sm:$0xff] %v1900_v42  ;;  %v1903_v44 = vpop.f32.mrb[16].mxu0  ;;  %v2812_v45 = vpop.f32.mrb[16].mxu1 }
 0xa5b   :  { %v1904_v47 = vadd.f32 %v1903_v44, %v1819_v54  ;;  %v1980_v51 = vadd.f32 %v2812_v45, %v1827_v41  ;;  %v1905_v52 = vpop.f32.mrb[17].mxu0  ;;  %v1974_v55 = vpop.f32.mrb[17].mxu1 }
 0xa5c   :  { %v1906_v56 = vadd.f32 %v1905_v52, %v1823_v39  ;;  %v1975_v59 = vadd.f32 %v1974_v55, %v1827_v41 }
 0xa5d   :  { %1986 = vst [vmem:[#allocation35 + $0x18] sm:$0xff] %v1904_v47  ;;  %1988 = vst [vmem:[#allocation35 + $0x28] sm:$0xff] %v1980_v51 }
 0xa5e   :  { %1987 = vst [vmem:[#allocation35 + $0x20] sm:$0xff] %v1906_v56  ;;  %1985 = vst [vmem:[#allocation35 + $0x10] sm:$0xff] %v1975_v59 }
 0xa76   :  { %v2614_v11 = vpop.f32.mrb[18].mxu0 }
 0xa77   :  { %v2615_v61 = vpop.f32.mrb[19].mxu0 }
 0xa78   :  { %v2616_v62 = vadd.f32 %v2615_v61, %v2614_v11 }
 0xa7a   :  { %v2095_v63 = vadd.f32 %v2616_v62, %v2377_v60  ;;  %v2617_v0 = vpop.f32.mrb[20].mxu0 }
 0xa7b   :  { %v2618_v1 = vpop.f32.mrb[21].mxu0 }
 0xa7c   :  { %v2103_v2 = vmax.f32 %v2095_v63, 0.0  ;;  %v2619_v3 = vadd.f32 %v2618_v1, %v2617_v0 }
 0xa7e   :  { %v2100_v4 = vadd.f32 %v2619_v3, %v2377_v60  ;;  %2235 = vmatmul.mubr.f32.vlgmr.msra.gmra.mrb[18].mxu1 %v2103_v2  ;;  %2845 = vmatprep.mubr.f32.mxu0 %v2103_v2 }
 0xa7f   :  { %2240 = vmatprep.mubr.f32.mxu1 %v4063_v34 }
 0xa80   :  { %v2104_v5 = vmax.f32 %v2100_v4, 0.0 }
 0xa82   :  { %2241 = vmatmul.mubr.f32.gmra.mrb[20].mxu1 %v2104_v5  ;;  %2846 = vmatmul.mubr.f32.vlgmr.msra.gmra.mrb[22].mxu0 %v2104_v5 }
 0xa83   :  { %3977 = shalt.err (!%p3974_p4)
}
 0xa84   :  { %s3978_s25 = scalar_lea.hbm %s4767_s27, 768 }
 0xa85   :  { %p3979_p5 = scmp.ne.s32.totalorder %s4767_s27, %s3978_s25  ;;  %p3982_p6 = scmp.lt.u32.totalorder %s3978_s25, %s4767_s27 }
 0xa87   :  { %p3984_p7 = pnand %p3982_p6, %p3979_p5 }
 0xa89   :  { %3987 = shalt.err (!%p3984_p7)
}
 0xa8a   :  { %2339 = dma.vmem_to_hbm [thread:$0]  %s2334_s30, 768, %s4767_s27, [#allocation4], %s4060_s18, %s4060_s18, %s4061_s5  }
 0xa8b   :  { %v2153_v34 = vld [vmem:[%s4766_s26] sm:$0x7]  ;;  %s4065_s6 = smov [#allocation36]  }
 0xa8c   :  { %v2158_v6 = vrot.slane %v2153_v34, %v4529_v12  ;;  %v2162_v7 = vrot.slane %v2153_v34, %v4532_v14  ;;  %v2166_v46 = vrot.slane %v2153_v34, %v1826_v57  ;;  %s2345_s20 = sshll.u32 %s4065_s6, 4  ;;  %s2346_s20 = int_to_ptr.vmem [resolvable:$true] %s2345_s20 }
 0xa8d   :  { %s3988_s26 = scalar_lea.vmem %s2346_s20, 768  ;;  %p3993_p9 = scmp.lt.s32.totalorder %s2346_s20, %s2346_s20 }
 0xa8e   :  { %p3989_p8 = scmp.ne.s32.totalorder %s2346_s20, %s3988_s26  ;;  %p3994_p10 = scmp.lt.s32.totalorder %s3988_s26, %s3988_s26 }
 0xa90   :  { %p3995_p11 = por %p3994_p10, %p3993_p9 }
 0xa92   :  { %p3996_p12 = pnand %p3995_p11, %p3989_p8 }
 0xb51   :  { %v2236_v8 = vpop.f32.mrb[18].mxu1 }
 0xb52   :  { %v2237_v9 = vadd.f32 %v2236_v8, %v2158_v6  ;;  %v2238_v43 = vpop.f32.mrb[19].mxu1 }
 0xb53   :  { %v2239_v10 = vadd.f32 %v2238_v43, %v2162_v7 }
 0xb54   :  { %2322 = vst [vmem:[#allocation36] sm:$0xff] %v2237_v9 }
 0xb55   :  { %2323 = vst [vmem:[#allocation36 + $0x8] sm:$0xff] %v2239_v10  ;;  %v2242_v13 = vpop.f32.mrb[20].mxu1  ;;  %v2847_v15 = vpop.f32.mrb[22].mxu0 }
 0xb56   :  { %v2243_v16 = vadd.f32 %v2242_v13, %v2158_v6  ;;  %v2319_v17 = vadd.f32 %v2847_v15, %v2166_v46  ;;  %v2244_v50 = vpop.f32.mrb[21].mxu1  ;;  %v2313_v18 = vpop.f32.mrb[23].mxu0 }
 0xb57   :  { %v2245_v19 = vadd.f32 %v2244_v50, %v2162_v7  ;;  %v2314_v20 = vadd.f32 %v2313_v18, %v2166_v46 }
 0xb58   :  { %2325 = vst [vmem:[#allocation36 + $0x18] sm:$0xff] %v2243_v16  ;;  %2327 = vst [vmem:[#allocation36 + $0x28] sm:$0xff] %v2319_v17 }
 0xb59   :  { %2326 = vst [vmem:[#allocation36 + $0x20] sm:$0xff] %v2245_v19  ;;  %2324 = vst [vmem:[#allocation36 + $0x10] sm:$0xff] %v2314_v20 }
 0xb5a   :  { %3999 = shalt.err (!%p3996_p12)
}
 0xb5b   :  { %s4810_s13 = sld [smem:[#allocation64_spill]] }
 0xb61   :  { %s4000_s2 = scalar_lea.hbm %s4810_s13, 768 }
 0xb62   :  { %p4001_p13 = scmp.ne.s32.totalorder %s4810_s13, %s4000_s2  ;;  %p4004_p0 = scmp.lt.u32.totalorder %s4000_s2, %s4810_s13 }
 0xb64   :  { %p4006_p1 = pnand %p4004_p0, %p4001_p13 }
 0xb66   :  { %4009 = shalt.err (!%p4006_p1)
}
 0xb67   :  { %2351 = dma.vmem_to_hbm [thread:$0]  %s2346_s20, 768, %s4810_s13, [#allocation37], %s4060_s18, %s4060_s18, %s4061_s5  }
 0xb68   :  { %4032 = dma.done.wait [#allocation4], 768  }
 0xb69   :  { %4033 = vsyncadd [#allocation4], 4294966528 }
 0xb6a   :  { %4034 = dma.done.wait [#allocation37], 768  }
 0xb6b   :  { %4035 = vsyncadd [#allocation37], 4294966528 }
 0xb6c   :  { %2358 = vsyncpa [#allocation3], 1 }
 0xb6d   :  { %2359 = vsyncpa [#allocation6], 1 }
 0xb6e   :  { %2360 = vsyncpa [#allocation9], 1 }
 0xb6f   :  { %2361 = vsyncpa [#allocation12], 1 }
 0xb70   :  { %2362 = vsyncpa [#allocation15], 1 }
 0xb71   :  { %2363 = vsyncpa [#allocation18], 1 }
 0xb72   :  { %2364 = vsyncpa [#allocation21], 1 }
 0xb73   :  { %2365 = vsyncpa [#allocation24], 1 }
 0xb74   :  { %2366 = vsyncpa [#allocation27], 1 }
 0xb75   :  { %2367 = vsyncpa [#allocation30], 1 }
 0xb76   :  { %2368 = vsyncpa [#allocation33], 1 }
 0xb77   :  { %2369 = vsyncpa [#allocation4], 1 }
 0xb78   :  { %2370 = vsyncpa [#allocation37], 1 }

</bundles_post_ra>
